<compile_context>
chip_gen: v7x
topology: tpu7x:2x2x1
jax: 0.10.0
libtpu: 0.0.40
codegen_flags: <defaults>
</compile_context>

<pallas_src>
import functools

import jax
import jax.numpy as jnp
from jax import lax
from jax.experimental import pallas as pl
from jax.experimental.pallas import tpu as pltpu

INPUT_SIZE = 1
HIDDEN = 100
OUT_SIZE = 1

LANE = 128
SUBLANE = 8

_HIGH = lax.Precision.HIGHEST


def _round_up(x, m):
    return ((x + m - 1) // m) * m


def _vmem_bytes(*arrs):
    """Bytes each array occupies in VMEM with (8,128) tile padding."""
    total = 0
    for a in arrs:
        s = list(a.shape)
        s[-1] = _round_up(s[-1], LANE)
        if len(s) >= 2:
            s[-2] = _round_up(s[-2], SUBLANE)
        n = 1
        for d in s:
            n *= d
        total += n * a.dtype.itemsize
    return total


def _lstm_kernel(x_ref, wih_ref, bg_ref, whh_ref, wlin_ref, blin_ref, out_ref):
    # x_ref   : (T, Bp, 1)   raw inputs (input_size == 1), batch padded
    # wih_ref : (1, 4*Hp)    per-gate input weight row (gate order [i,f,o,g])
    # bg_ref  : (1, 4*Hp)    b_ih + b_hh, gate-padded, same gate order
    # whh_ref : (Hp, 4*Hp)   W_hh^T; rows >= H and per-gate cols >= H are zero
    # wlin_ref: (Hp, Op)     linear head W^T, zero-padded
    # blin_ref: (1, Op)      linear head bias, zero-padded
    # out_ref : (Bp, Op)
    T, Bp, _ = x_ref.shape
    Hp = whh_ref.shape[0]

    h0 = jnp.zeros((Bp, Hp), jnp.float32)
    c0 = jnp.zeros((Bp, Hp), jnp.float32)

    def step(t, carry):
        h, c = carry
        # Input projection (K == 1): broadcast mul-add on the VPU, hidden
        # under the MXU latency of the h @ W_hh^T matmul below.
        xg = x_ref[t] * wih_ref[...] + bg_ref[...]          # (Bp,1)*(1,G)+(1,G)
        # Only this matmul sits on the serial h->h critical path.
        gates = xg + jnp.dot(h, whh_ref[...],
                             preferred_element_type=jnp.float32,
                             precision=_HIGH)
        # Gate order [i, f, o, g]; each gate is 128-lane aligned, so the
        # slices below are pure vreg views.  One sigmoid dispatch covers the
        # three sigmoid gates; one tanh covers the candidate gate.
        sig = jax.nn.sigmoid(gates[:, :3 * Hp])
        g_g = jnp.tanh(gates[:, 3 * Hp:])
        i_g = sig[:, 0 * Hp:1 * Hp]
        f_g = sig[:, 1 * Hp:2 * Hp]
        o_g = sig[:, 2 * Hp:3 * Hp]
        c = f_g * c + i_g * g_g
        h = o_g * jnp.tanh(c)
        return (h, c)

    h, _ = lax.fori_loop(0, T, step, (h0, c0), unroll=min(T, 8))

    # Lane-dense (Bp, Op) store; padded rows/cols are sliced off in the wrapper.
    out_ref[...] = (jnp.dot(h, wlin_ref[...],
                            preferred_element_type=jnp.float32,
                            precision=_HIGH)
                    + blin_ref[...]).astype(out_ref.dtype)


def prepare_params(params):
    """One-time: pad / reorder / transpose weights into kernel layout."""
    f32 = jnp.float32
    w_ih = jnp.asarray(params["w_ih"], f32)       # (4H, IN)
    w_hh = jnp.asarray(params["w_hh"], f32)       # (4H, H)
    w_lin = jnp.asarray(params["w_lin"], f32)     # (O, H)
    b = jnp.asarray(params["b_ih"], f32) + jnp.asarray(params["b_hh"], f32)
    b_lin = jnp.asarray(params["b_lin"], f32)

    H = w_hh.shape[1]
    IN = w_ih.shape[1]
    O = w_lin.shape[0]
    assert IN == 1, "module forward views input as input_size=1"

    Hp = _round_up(H, LANE)          # 100 -> 128
    G = 4 * Hp                       # 512 (each gate 128-lane aligned)
    Op = _round_up(O, LANE)          # 1 -> 128

    # PyTorch gate order [i, f, g, o] -> [i, f, o, g] so the three sigmoid
    # gates are contiguous (single EUP sigmoid dispatch in the kernel).
    perm = jnp.array([0, 1, 3, 2])
    w_ih_g = w_ih.reshape(4, H, IN)[perm]          # (4, H, 1)
    w_hh_g = w_hh.reshape(4, H, H)[perm]           # (4, H, H)
    b_g = b.reshape(4, H)[perm]                    # (4, H)

    wih_row = (jnp.zeros((4, Hp), f32).at[:, :H].set(w_ih_g[..., 0])
               .reshape(1, G))
    bg_row = jnp.zeros((4, Hp), f32).at[:, :H].set(b_g).reshape(1, G)

    # W_hh^T with zero padding on rows >= H and per-gate cols >= H (so padded
    # h lanes never leak into real lanes and vice versa).
    w_hh_p = jnp.zeros((4, Hp, Hp), f32).at[:, :H, :H].set(w_hh_g)
    whh_t = w_hh_p.reshape(G, Hp).T                # (Hp, G)

    wlin_t = jnp.zeros((Op, Hp), f32).at[:O, :H].set(w_lin).T   # (Hp, Op)
    blin_row = jnp.zeros((1, Op), f32).at[0, :O].set(b_lin)

    return {
        "wih_row": wih_row,
        "bg_row": bg_row,
        "whh_t": whh_t,
        "wlin_t": wlin_t,
        "blin": blin_row,
    }


@functools.partial(jax.jit, static_argnames=("out_size",))
def lstm_forward(x, prep, out_size=OUT_SIZE):
    """x: (B, T) float32 -> predictions (B, out_size)."""
    B, T = x.shape
    Bp = _round_up(B, SUBLANE)

    whh_t = prep["whh_t"]
    Op = prep["blin"].shape[1]

    # Raw inputs, time-major, batch padded to 8 sublanes (input_size == 1).
    x_p = jnp.zeros((T, Bp, 1), jnp.float32).at[:, :B, 0].set(x.T)

    # Explicit scoped-VMEM budget derived from the padded array sizes
    # (kept under the v7x-safe ceiling; everything here is tiny).
    need = _vmem_bytes(x_p, prep["wih_row"], prep["bg_row"], whh_t,
                       prep["wlin_t"], prep["blin"]) + Bp * Op * 4
    vmem_limit = int(min(48 * 1024 * 1024, max(32 * 1024 * 1024, 2 * need)))

    out = pl.pallas_call(
        _lstm_kernel,
        out_shape=jax.ShapeDtypeStruct((Bp, Op), jnp.float32),
        compiler_params=pltpu.CompilerParams(vmem_limit_bytes=vmem_limit),
    )(x_p, prep["wih_row"], prep["bg_row"], whh_t, prep["wlin_t"],
      prep["blin"])

    return out[:B, :out_size]


def lstm_reference(x, params):
    """Pure-JAX reference matching torch.nn.LSTM(batch_first=True) + Linear."""
    B, T = x.shape
    H = params["w_hh"].shape[1]
    w_ih, w_hh = params["w_ih"], params["w_hh"]
    b = params["b_ih"] + params["b_hh"]

    def step(carry, x_t):
        h, c = carry
        gates = (jnp.dot(x_t, w_ih.T, precision=_HIGH)
                 + jnp.dot(h, w_hh.T, precision=_HIGH) + b)
        i, f, g, o = jnp.split(gates, 4, axis=-1)
        i = jax.nn.sigmoid(i)
        f = jax.nn.sigmoid(f)
        g = jnp.tanh(g)
        o = jax.nn.sigmoid(o)
        c = f * c + i * g
        h = o * jnp.tanh(c)
        return (h, c), None

    x_tm = x.reshape(B, T, 1).transpose(1, 0, 2)
    (h, _), _ = lax.scan(step, (jnp.zeros((B, H), jnp.float32),
                                jnp.zeros((B, H), jnp.float32)), x_tm)
    return jnp.dot(h, params["w_lin"].T, precision=_HIGH) + params["b_lin"]


def init_params(key, input_size=INPUT_SIZE, hidden=HIDDEN, out_size=OUT_SIZE):
    # Deterministic init mimicking PyTorch's uniform(-1/sqrt(H), 1/sqrt(H)).
    k = 1.0 / jnp.sqrt(hidden)
    keys = jax.random.split(key, 6)
    u = lambda kk, shape: jax.random.uniform(kk, shape, jnp.float32, -k, k)
    return {
        "w_ih": u(keys[0], (4 * hidden, input_size)),
        "w_hh": u(keys[1], (4 * hidden, hidden)),
        "b_ih": u(keys[2], (4 * hidden,)),
        "b_hh": u(keys[3], (4 * hidden,)),
        "w_lin": u(keys[4], (out_size, hidden)),
        "b_lin": u(keys[5], (out_size,)),
    }


if __name__ == "__main__":
    key = jax.random.PRNGKey(0)
    k_param, k_x = jax.random.split(key)

    B, T = 2, 8
    params = init_params(k_param)
    x = jax.random.normal(k_x, (B, T), jnp.float32)   # (batch, seq); input_size=1

    prep = prepare_params(params)          # one-time weight layout prep
    out = lstm_forward(x, prep)            # jit'd per-call path
    out = jax.block_until_ready(out)

    ref = lstm_reference(x, params)
    assert out.shape == (B, OUT_SIZE)
    assert jnp.allclose(out, ref, atol=1e-5, rtol=1e-5), (out, ref)

    print("KERNEL_OK")
</pallas_src>

<mosaic_0001>
module attributes {stable_mosaic.version = 11 : i64} {
  func.func @_lstm_kernel(%arg0: memref<8x8x1xf32, #tpu.memory_space<vmem>>, %arg1: memref<1x512xf32, #tpu.memory_space<vmem>>, %arg2: memref<1x512xf32, #tpu.memory_space<vmem>>, %arg3: memref<128x512xf32, #tpu.memory_space<vmem>>, %arg4: memref<128x128xf32, #tpu.memory_space<vmem>>, %arg5: memref<1x128xf32, #tpu.memory_space<vmem>>, %arg6: memref<8x128xf32, #tpu.memory_space<vmem>>) attributes {dimension_semantics = [], scalar_prefetch = 0 : i64, scratch_operands = 0 : i64, tpu.core_type = #tpu.core_type<tc>} {
    %cst = arith.constant 0.000000e+00 : f32
    %0 = vector.broadcast %cst : f32 to vector<8x128xf32>
    %cst_0 = arith.constant 0.000000e+00 : f32
    %1 = vector.broadcast %cst_0 : f32 to vector<8x128xf32>
    %c0_i32 = arith.constant 0 : i32
    %2 = arith.index_cast %c0_i32 : i32 to index
    %c0 = arith.constant 0 : index
    %c0_1 = arith.constant 0 : index
    %3 = vector.load %arg0[%2, %c0, %c0_1] : memref<8x8x1xf32, #tpu.memory_space<vmem>>, vector<1x8x1xf32>
    %4 = vector.shape_cast %3 : vector<1x8x1xf32> to vector<8x1xf32>
    %c0_2 = arith.constant 0 : index
    %c0_3 = arith.constant 0 : index
    %5 = vector.load %arg1[%c0_2, %c0_3] : memref<1x512xf32, #tpu.memory_space<vmem>>, vector<1x512xf32>
    %6 = vector.broadcast %4 : vector<8x1xf32> to vector<8x512xf32>
    %7 = vector.broadcast %5 : vector<1x512xf32> to vector<8x512xf32>
    %8 = arith.mulf %6, %7 : vector<8x512xf32>
    %c0_4 = arith.constant 0 : index
    %c0_5 = arith.constant 0 : index
    %9 = vector.load %arg2[%c0_4, %c0_5] : memref<1x512xf32, #tpu.memory_space<vmem>>, vector<1x512xf32>
    %10 = vector.broadcast %9 : vector<1x512xf32> to vector<8x512xf32>
    %11 = arith.addf %8, %10 : vector<8x512xf32>
    %c0_6 = arith.constant 0 : index
    %c0_7 = arith.constant 0 : index
    %12 = vector.load %arg3[%c0_6, %c0_7] : memref<128x512xf32, #tpu.memory_space<vmem>>, vector<128x512xf32>
    %cst_8 = arith.constant dense<0.000000e+00> : vector<8x512xf32>
    %13 = tpu.matmul %0, %12, %cst_8 {dimension_numbers = #tpu.dot_dimension_numbers<[1], [0], [0], [1], [0, 0, 1, 1], [], []>, precision = #tpu.contract_precision<fp32>} : vector<8x128xf32>, vector<128x512xf32>, vector<8x512xf32> -> vector<8x512xf32>
    %14 = arith.addf %11, %13 : vector<8x512xf32>
    %15 = vector.extract_strided_slice %14 {offsets = [0, 0], sizes = [8, 384], strides = [1, 1]} : vector<8x512xf32> to vector<8x384xf32>
    %16 = arith.negf %15 : vector<8x384xf32>
    %17 = math.exp %16 : vector<8x384xf32>
    %cst_9 = arith.constant 1.000000e+00 : f32
    %18 = vector.broadcast %cst_9 : f32 to vector<8x384xf32>
    %19 = arith.addf %18, %17 : vector<8x384xf32>
    %20 = arith.divf %18, %19 : vector<8x384xf32>
    %21 = vector.extract_strided_slice %14 {offsets = [0, 384], sizes = [8, 128], strides = [1, 1]} : vector<8x512xf32> to vector<8x128xf32>
    %22 = math.tanh %21 : vector<8x128xf32>
    %23 = vector.extract_strided_slice %20 {offsets = [0, 0], sizes = [8, 128], strides = [1, 1]} : vector<8x384xf32> to vector<8x128xf32>
    %24 = vector.extract_strided_slice %20 {offsets = [0, 128], sizes = [8, 128], strides = [1, 1]} : vector<8x384xf32> to vector<8x128xf32>
    %25 = vector.extract_strided_slice %20 {offsets = [0, 256], sizes = [8, 128], strides = [1, 1]} : vector<8x384xf32> to vector<8x128xf32>
    %26 = arith.mulf %24, %1 : vector<8x128xf32>
    %27 = arith.mulf %23, %22 : vector<8x128xf32>
    %28 = arith.addf %26, %27 : vector<8x128xf32>
    %29 = math.tanh %28 : vector<8x128xf32>
    %30 = arith.mulf %25, %29 : vector<8x128xf32>
    %c1_i32 = arith.constant 1 : i32
    %31 = arith.index_cast %c1_i32 : i32 to index
    %c0_10 = arith.constant 0 : index
    %c0_11 = arith.constant 0 : index
    %32 = vector.load %arg0[%31, %c0_10, %c0_11] : memref<8x8x1xf32, #tpu.memory_space<vmem>>, vector<1x8x1xf32>
    %33 = vector.shape_cast %32 : vector<1x8x1xf32> to vector<8x1xf32>
    %c0_12 = arith.constant 0 : index
    %c0_13 = arith.constant 0 : index
    %34 = vector.load %arg1[%c0_12, %c0_13] : memref<1x512xf32, #tpu.memory_space<vmem>>, vector<1x512xf32>
    %35 = vector.broadcast %33 : vector<8x1xf32> to vector<8x512xf32>
    %36 = vector.broadcast %34 : vector<1x512xf32> to vector<8x512xf32>
    %37 = arith.mulf %35, %36 : vector<8x512xf32>
    %c0_14 = arith.constant 0 : index
    %c0_15 = arith.constant 0 : index
    %38 = vector.load %arg2[%c0_14, %c0_15] : memref<1x512xf32, #tpu.memory_space<vmem>>, vector<1x512xf32>
    %39 = vector.broadcast %38 : vector<1x512xf32> to vector<8x512xf32>
    %40 = arith.addf %37, %39 : vector<8x512xf32>
    %c0_16 = arith.constant 0 : index
    %c0_17 = arith.constant 0 : index
    %41 = vector.load %arg3[%c0_16, %c0_17] : memref<128x512xf32, #tpu.memory_space<vmem>>, vector<128x512xf32>
    %cst_18 = arith.constant dense<0.000000e+00> : vector<8x512xf32>
    %42 = tpu.matmul %30, %41, %cst_18 {dimension_numbers = #tpu.dot_dimension_numbers<[1], [0], [0], [1], [0, 0, 1, 1], [], []>, precision = #tpu.contract_precision<fp32>} : vector<8x128xf32>, vector<128x512xf32>, vector<8x512xf32> -> vector<8x512xf32>
    %43 = arith.addf %40, %42 : vector<8x512xf32>
    %44 = vector.extract_strided_slice %43 {offsets = [0, 0], sizes = [8, 384], strides = [1, 1]} : vector<8x512xf32> to vector<8x384xf32>
    %45 = arith.negf %44 : vector<8x384xf32>
    %46 = math.exp %45 : vector<8x384xf32>
    %cst_19 = arith.constant 1.000000e+00 : f32
    %47 = vector.broadcast %cst_19 : f32 to vector<8x384xf32>
    %48 = arith.addf %47, %46 : vector<8x384xf32>
    %49 = arith.divf %47, %48 : vector<8x384xf32>
    %50 = vector.extract_strided_slice %43 {offsets = [0, 384], sizes = [8, 128], strides = [1, 1]} : vector<8x512xf32> to vector<8x128xf32>
    %51 = math.tanh %50 : vector<8x128xf32>
    %52 = vector.extract_strided_slice %49 {offsets = [0, 0], sizes = [8, 128], strides = [1, 1]} : vector<8x384xf32> to vector<8x128xf32>
    %53 = vector.extract_strided_slice %49 {offsets = [0, 128], sizes = [8, 128], strides = [1, 1]} : vector<8x384xf32> to vector<8x128xf32>
    %54 = vector.extract_strided_slice %49 {offsets = [0, 256], sizes = [8, 128], strides = [1, 1]} : vector<8x384xf32> to vector<8x128xf32>
    %55 = arith.mulf %53, %28 : vector<8x128xf32>
    %56 = arith.mulf %52, %51 : vector<8x128xf32>
    %57 = arith.addf %55, %56 : vector<8x128xf32>
    %58 = math.tanh %57 : vector<8x128xf32>
    %59 = arith.mulf %54, %58 : vector<8x128xf32>
    %c2_i32 = arith.constant 2 : i32
    %60 = arith.index_cast %c2_i32 : i32 to index
    %c0_20 = arith.constant 0 : index
    %c0_21 = arith.constant 0 : index
    %61 = vector.load %arg0[%60, %c0_20, %c0_21] : memref<8x8x1xf32, #tpu.memory_space<vmem>>, vector<1x8x1xf32>
    %62 = vector.shape_cast %61 : vector<1x8x1xf32> to vector<8x1xf32>
    %c0_22 = arith.constant 0 : index
    %c0_23 = arith.constant 0 : index
    %63 = vector.load %arg1[%c0_22, %c0_23] : memref<1x512xf32, #tpu.memory_space<vmem>>, vector<1x512xf32>
    %64 = vector.broadcast %62 : vector<8x1xf32> to vector<8x512xf32>
    %65 = vector.broadcast %63 : vector<1x512xf32> to vector<8x512xf32>
    %66 = arith.mulf %64, %65 : vector<8x512xf32>
    %c0_24 = arith.constant 0 : index
    %c0_25 = arith.constant 0 : index
    %67 = vector.load %arg2[%c0_24, %c0_25] : memref<1x512xf32, #tpu.memory_space<vmem>>, vector<1x512xf32>
    %68 = vector.broadcast %67 : vector<1x512xf32> to vector<8x512xf32>
    %69 = arith.addf %66, %68 : vector<8x512xf32>
    %c0_26 = arith.constant 0 : index
    %c0_27 = arith.constant 0 : index
    %70 = vector.load %arg3[%c0_26, %c0_27] : memref<128x512xf32, #tpu.memory_space<vmem>>, vector<128x512xf32>
    %cst_28 = arith.constant dense<0.000000e+00> : vector<8x512xf32>
    %71 = tpu.matmul %59, %70, %cst_28 {dimension_numbers = #tpu.dot_dimension_numbers<[1], [0], [0], [1], [0, 0, 1, 1], [], []>, precision = #tpu.contract_precision<fp32>} : vector<8x128xf32>, vector<128x512xf32>, vector<8x512xf32> -> vector<8x512xf32>
    %72 = arith.addf %69, %71 : vector<8x512xf32>
    %73 = vector.extract_strided_slice %72 {offsets = [0, 0], sizes = [8, 384], strides = [1, 1]} : vector<8x512xf32> to vector<8x384xf32>
    %74 = arith.negf %73 : vector<8x384xf32>
    %75 = math.exp %74 : vector<8x384xf32>
    %cst_29 = arith.constant 1.000000e+00 : f32
    %76 = vector.broadcast %cst_29 : f32 to vector<8x384xf32>
    %77 = arith.addf %76, %75 : vector<8x384xf32>
    %78 = arith.divf %76, %77 : vector<8x384xf32>
    %79 = vector.extract_strided_slice %72 {offsets = [0, 384], sizes = [8, 128], strides = [1, 1]} : vector<8x512xf32> to vector<8x128xf32>
    %80 = math.tanh %79 : vector<8x128xf32>
    %81 = vector.extract_strided_slice %78 {offsets = [0, 0], sizes = [8, 128], strides = [1, 1]} : vector<8x384xf32> to vector<8x128xf32>
    %82 = vector.extract_strided_slice %78 {offsets = [0, 128], sizes = [8, 128], strides = [1, 1]} : vector<8x384xf32> to vector<8x128xf32>
    %83 = vector.extract_strided_slice %78 {offsets = [0, 256], sizes = [8, 128], strides = [1, 1]} : vector<8x384xf32> to vector<8x128xf32>
    %84 = arith.mulf %82, %57 : vector<8x128xf32>
    %85 = arith.mulf %81, %80 : vector<8x128xf32>
    %86 = arith.addf %84, %85 : vector<8x128xf32>
    %87 = math.tanh %86 : vector<8x128xf32>
    %88 = arith.mulf %83, %87 : vector<8x128xf32>
    %c3_i32 = arith.constant 3 : i32
    %89 = arith.index_cast %c3_i32 : i32 to index
    %c0_30 = arith.constant 0 : index
    %c0_31 = arith.constant 0 : index
    %90 = vector.load %arg0[%89, %c0_30, %c0_31] : memref<8x8x1xf32, #tpu.memory_space<vmem>>, vector<1x8x1xf32>
    %91 = vector.shape_cast %90 : vector<1x8x1xf32> to vector<8x1xf32>
    %c0_32 = arith.constant 0 : index
    %c0_33 = arith.constant 0 : index
    %92 = vector.load %arg1[%c0_32, %c0_33] : memref<1x512xf32, #tpu.memory_space<vmem>>, vector<1x512xf32>
    %93 = vector.broadcast %91 : vector<8x1xf32> to vector<8x512xf32>
    %94 = vector.broadcast %92 : vector<1x512xf32> to vector<8x512xf32>
    %95 = arith.mulf %93, %94 : vector<8x512xf32>
    %c0_34 = arith.constant 0 : index
    %c0_35 = arith.constant 0 : index
    %96 = vector.load %arg2[%c0_34, %c0_35] : memref<1x512xf32, #tpu.memory_space<vmem>>, vector<1x512xf32>
    %97 = vector.broadcast %96 : vector<1x512xf32> to vector<8x512xf32>
    %98 = arith.addf %95, %97 : vector<8x512xf32>
    %c0_36 = arith.constant 0 : index
    %c0_37 = arith.constant 0 : index
    %99 = vector.load %arg3[%c0_36, %c0_37] : memref<128x512xf32, #tpu.memory_space<vmem>>, vector<128x512xf32>
    %cst_38 = arith.constant dense<0.000000e+00> : vector<8x512xf32>
    %100 = tpu.matmul %88, %99, %cst_38 {dimension_numbers = #tpu.dot_dimension_numbers<[1], [0], [0], [1], [0, 0, 1, 1], [], []>, precision = #tpu.contract_precision<fp32>} : vector<8x128xf32>, vector<128x512xf32>, vector<8x512xf32> -> vector<8x512xf32>
    %101 = arith.addf %98, %100 : vector<8x512xf32>
    %102 = vector.extract_strided_slice %101 {offsets = [0, 0], sizes = [8, 384], strides = [1, 1]} : vector<8x512xf32> to vector<8x384xf32>
    %103 = arith.negf %102 : vector<8x384xf32>
    %104 = math.exp %103 : vector<8x384xf32>
    %cst_39 = arith.constant 1.000000e+00 : f32
    %105 = vector.broadcast %cst_39 : f32 to vector<8x384xf32>
    %106 = arith.addf %105, %104 : vector<8x384xf32>
    %107 = arith.divf %105, %106 : vector<8x384xf32>
    %108 = vector.extract_strided_slice %101 {offsets = [0, 384], sizes = [8, 128], strides = [1, 1]} : vector<8x512xf32> to vector<8x128xf32>
    %109 = math.tanh %108 : vector<8x128xf32>
    %110 = vector.extract_strided_slice %107 {offsets = [0, 0], sizes = [8, 128], strides = [1, 1]} : vector<8x384xf32> to vector<8x128xf32>
    %111 = vector.extract_strided_slice %107 {offsets = [0, 128], sizes = [8, 128], strides = [1, 1]} : vector<8x384xf32> to vector<8x128xf32>
    %112 = vector.extract_strided_slice %107 {offsets = [0, 256], sizes = [8, 128], strides = [1, 1]} : vector<8x384xf32> to vector<8x128xf32>
    %113 = arith.mulf %111, %86 : vector<8x128xf32>
    %114 = arith.mulf %110, %109 : vector<8x128xf32>
    %115 = arith.addf %113, %114 : vector<8x128xf32>
    %116 = math.tanh %115 : vector<8x128xf32>
    %117 = arith.mulf %112, %116 : vector<8x128xf32>
    %c4_i32 = arith.constant 4 : i32
    %118 = arith.index_cast %c4_i32 : i32 to index
    %c0_40 = arith.constant 0 : index
    %c0_41 = arith.constant 0 : index
    %119 = vector.load %arg0[%118, %c0_40, %c0_41] : memref<8x8x1xf32, #tpu.memory_space<vmem>>, vector<1x8x1xf32>
    %120 = vector.shape_cast %119 : vector<1x8x1xf32> to vector<8x1xf32>
    %c0_42 = arith.constant 0 : index
    %c0_43 = arith.constant 0 : index
    %121 = vector.load %arg1[%c0_42, %c0_43] : memref<1x512xf32, #tpu.memory_space<vmem>>, vector<1x512xf32>
    %122 = vector.broadcast %120 : vector<8x1xf32> to vector<8x512xf32>
    %123 = vector.broadcast %121 : vector<1x512xf32> to vector<8x512xf32>
    %124 = arith.mulf %122, %123 : vector<8x512xf32>
    %c0_44 = arith.constant 0 : index
    %c0_45 = arith.constant 0 : index
    %125 = vector.load %arg2[%c0_44, %c0_45] : memref<1x512xf32, #tpu.memory_space<vmem>>, vector<1x512xf32>
    %126 = vector.broadcast %125 : vector<1x512xf32> to vector<8x512xf32>
    %127 = arith.addf %124, %126 : vector<8x512xf32>
    %c0_46 = arith.constant 0 : index
    %c0_47 = arith.constant 0 : index
    %128 = vector.load %arg3[%c0_46, %c0_47] : memref<128x512xf32, #tpu.memory_space<vmem>>, vector<128x512xf32>
    %cst_48 = arith.constant dense<0.000000e+00> : vector<8x512xf32>
    %129 = tpu.matmul %117, %128, %cst_48 {dimension_numbers = #tpu.dot_dimension_numbers<[1], [0], [0], [1], [0, 0, 1, 1], [], []>, precision = #tpu.contract_precision<fp32>} : vector<8x128xf32>, vector<128x512xf32>, vector<8x512xf32> -> vector<8x512xf32>
    %130 = arith.addf %127, %129 : vector<8x512xf32>
    %131 = vector.extract_strided_slice %130 {offsets = [0, 0], sizes = [8, 384], strides = [1, 1]} : vector<8x512xf32> to vector<8x384xf32>
    %132 = arith.negf %131 : vector<8x384xf32>
    %133 = math.exp %132 : vector<8x384xf32>
    %cst_49 = arith.constant 1.000000e+00 : f32
    %134 = vector.broadcast %cst_49 : f32 to vector<8x384xf32>
    %135 = arith.addf %134, %133 : vector<8x384xf32>
    %136 = arith.divf %134, %135 : vector<8x384xf32>
    %137 = vector.extract_strided_slice %130 {offsets = [0, 384], sizes = [8, 128], strides = [1, 1]} : vector<8x512xf32> to vector<8x128xf32>
    %138 = math.tanh %137 : vector<8x128xf32>
    %139 = vector.extract_strided_slice %136 {offsets = [0, 0], sizes = [8, 128], strides = [1, 1]} : vector<8x384xf32> to vector<8x128xf32>
    %140 = vector.extract_strided_slice %136 {offsets = [0, 128], sizes = [8, 128], strides = [1, 1]} : vector<8x384xf32> to vector<8x128xf32>
    %141 = vector.extract_strided_slice %136 {offsets = [0, 256], sizes = [8, 128], strides = [1, 1]} : vector<8x384xf32> to vector<8x128xf32>
    %142 = arith.mulf %140, %115 : vector<8x128xf32>
    %143 = arith.mulf %139, %138 : vector<8x128xf32>
    %144 = arith.addf %142, %143 : vector<8x128xf32>
    %145 = math.tanh %144 : vector<8x128xf32>
    %146 = arith.mulf %141, %145 : vector<8x128xf32>
    %c5_i32 = arith.constant 5 : i32
    %147 = arith.index_cast %c5_i32 : i32 to index
    %c0_50 = arith.constant 0 : index
    %c0_51 = arith.constant 0 : index
    %148 = vector.load %arg0[%147, %c0_50, %c0_51] : memref<8x8x1xf32, #tpu.memory_space<vmem>>, vector<1x8x1xf32>
    %149 = vector.shape_cast %148 : vector<1x8x1xf32> to vector<8x1xf32>
    %c0_52 = arith.constant 0 : index
    %c0_53 = arith.constant 0 : index
    %150 = vector.load %arg1[%c0_52, %c0_53] : memref<1x512xf32, #tpu.memory_space<vmem>>, vector<1x512xf32>
    %151 = vector.broadcast %149 : vector<8x1xf32> to vector<8x512xf32>
    %152 = vector.broadcast %150 : vector<1x512xf32> to vector<8x512xf32>
    %153 = arith.mulf %151, %152 : vector<8x512xf32>
    %c0_54 = arith.constant 0 : index
    %c0_55 = arith.constant 0 : index
    %154 = vector.load %arg2[%c0_54, %c0_55] : memref<1x512xf32, #tpu.memory_space<vmem>>, vector<1x512xf32>
    %155 = vector.broadcast %154 : vector<1x512xf32> to vector<8x512xf32>
    %156 = arith.addf %153, %155 : vector<8x512xf32>
    %c0_56 = arith.constant 0 : index
    %c0_57 = arith.constant 0 : index
    %157 = vector.load %arg3[%c0_56, %c0_57] : memref<128x512xf32, #tpu.memory_space<vmem>>, vector<128x512xf32>
    %cst_58 = arith.constant dense<0.000000e+00> : vector<8x512xf32>
    %158 = tpu.matmul %146, %157, %cst_58 {dimension_numbers = #tpu.dot_dimension_numbers<[1], [0], [0], [1], [0, 0, 1, 1], [], []>, precision = #tpu.contract_precision<fp32>} : vector<8x128xf32>, vector<128x512xf32>, vector<8x512xf32> -> vector<8x512xf32>
    %159 = arith.addf %156, %158 : vector<8x512xf32>
    %160 = vector.extract_strided_slice %159 {offsets = [0, 0], sizes = [8, 384], strides = [1, 1]} : vector<8x512xf32> to vector<8x384xf32>
    %161 = arith.negf %160 : vector<8x384xf32>
    %162 = math.exp %161 : vector<8x384xf32>
    %cst_59 = arith.constant 1.000000e+00 : f32
    %163 = vector.broadcast %cst_59 : f32 to vector<8x384xf32>
    %164 = arith.addf %163, %162 : vector<8x384xf32>
    %165 = arith.divf %163, %164 : vector<8x384xf32>
    %166 = vector.extract_strided_slice %159 {offsets = [0, 384], sizes = [8, 128], strides = [1, 1]} : vector<8x512xf32> to vector<8x128xf32>
    %167 = math.tanh %166 : vector<8x128xf32>
    %168 = vector.extract_strided_slice %165 {offsets = [0, 0], sizes = [8, 128], strides = [1, 1]} : vector<8x384xf32> to vector<8x128xf32>
    %169 = vector.extract_strided_slice %165 {offsets = [0, 128], sizes = [8, 128], strides = [1, 1]} : vector<8x384xf32> to vector<8x128xf32>
    %170 = vector.extract_strided_slice %165 {offsets = [0, 256], sizes = [8, 128], strides = [1, 1]} : vector<8x384xf32> to vector<8x128xf32>
    %171 = arith.mulf %169, %144 : vector<8x128xf32>
    %172 = arith.mulf %168, %167 : vector<8x128xf32>
    %173 = arith.addf %171, %172 : vector<8x128xf32>
    %174 = math.tanh %173 : vector<8x128xf32>
    %175 = arith.mulf %170, %174 : vector<8x128xf32>
    %c6_i32 = arith.constant 6 : i32
    %176 = arith.index_cast %c6_i32 : i32 to index
    %c0_60 = arith.constant 0 : index
    %c0_61 = arith.constant 0 : index
    %177 = vector.load %arg0[%176, %c0_60, %c0_61] : memref<8x8x1xf32, #tpu.memory_space<vmem>>, vector<1x8x1xf32>
    %178 = vector.shape_cast %177 : vector<1x8x1xf32> to vector<8x1xf32>
    %c0_62 = arith.constant 0 : index
    %c0_63 = arith.constant 0 : index
    %179 = vector.load %arg1[%c0_62, %c0_63] : memref<1x512xf32, #tpu.memory_space<vmem>>, vector<1x512xf32>
    %180 = vector.broadcast %178 : vector<8x1xf32> to vector<8x512xf32>
    %181 = vector.broadcast %179 : vector<1x512xf32> to vector<8x512xf32>
    %182 = arith.mulf %180, %181 : vector<8x512xf32>
    %c0_64 = arith.constant 0 : index
    %c0_65 = arith.constant 0 : index
    %183 = vector.load %arg2[%c0_64, %c0_65] : memref<1x512xf32, #tpu.memory_space<vmem>>, vector<1x512xf32>
    %184 = vector.broadcast %183 : vector<1x512xf32> to vector<8x512xf32>
    %185 = arith.addf %182, %184 : vector<8x512xf32>
    %c0_66 = arith.constant 0 : index
    %c0_67 = arith.constant 0 : index
    %186 = vector.load %arg3[%c0_66, %c0_67] : memref<128x512xf32, #tpu.memory_space<vmem>>, vector<128x512xf32>
    %cst_68 = arith.constant dense<0.000000e+00> : vector<8x512xf32>
    %187 = tpu.matmul %175, %186, %cst_68 {dimension_numbers = #tpu.dot_dimension_numbers<[1], [0], [0], [1], [0, 0, 1, 1], [], []>, precision = #tpu.contract_precision<fp32>} : vector<8x128xf32>, vector<128x512xf32>, vector<8x512xf32> -> vector<8x512xf32>
    %188 = arith.addf %185, %187 : vector<8x512xf32>
    %189 = vector.extract_strided_slice %188 {offsets = [0, 0], sizes = [8, 384], strides = [1, 1]} : vector<8x512xf32> to vector<8x384xf32>
    %190 = arith.negf %189 : vector<8x384xf32>
    %191 = math.exp %190 : vector<8x384xf32>
    %cst_69 = arith.constant 1.000000e+00 : f32
    %192 = vector.broadcast %cst_69 : f32 to vector<8x384xf32>
    %193 = arith.addf %192, %191 : vector<8x384xf32>
    %194 = arith.divf %192, %193 : vector<8x384xf32>
    %195 = vector.extract_strided_slice %188 {offsets = [0, 384], sizes = [8, 128], strides = [1, 1]} : vector<8x512xf32> to vector<8x128xf32>
    %196 = math.tanh %195 : vector<8x128xf32>
    %197 = vector.extract_strided_slice %194 {offsets = [0, 0], sizes = [8, 128], strides = [1, 1]} : vector<8x384xf32> to vector<8x128xf32>
    %198 = vector.extract_strided_slice %194 {offsets = [0, 128], sizes = [8, 128], strides = [1, 1]} : vector<8x384xf32> to vector<8x128xf32>
    %199 = vector.extract_strided_slice %194 {offsets = [0, 256], sizes = [8, 128], strides = [1, 1]} : vector<8x384xf32> to vector<8x128xf32>
    %200 = arith.mulf %198, %173 : vector<8x128xf32>
    %201 = arith.mulf %197, %196 : vector<8x128xf32>
    %202 = arith.addf %200, %201 : vector<8x128xf32>
    %203 = math.tanh %202 : vector<8x128xf32>
    %204 = arith.mulf %199, %203 : vector<8x128xf32>
    %c7_i32 = arith.constant 7 : i32
    %205 = arith.index_cast %c7_i32 : i32 to index
    %c0_70 = arith.constant 0 : index
    %c0_71 = arith.constant 0 : index
    %206 = vector.load %arg0[%205, %c0_70, %c0_71] : memref<8x8x1xf32, #tpu.memory_space<vmem>>, vector<1x8x1xf32>
    %207 = vector.shape_cast %206 : vector<1x8x1xf32> to vector<8x1xf32>
    %c0_72 = arith.constant 0 : index
    %c0_73 = arith.constant 0 : index
    %208 = vector.load %arg1[%c0_72, %c0_73] : memref<1x512xf32, #tpu.memory_space<vmem>>, vector<1x512xf32>
    %209 = vector.broadcast %207 : vector<8x1xf32> to vector<8x512xf32>
    %210 = vector.broadcast %208 : vector<1x512xf32> to vector<8x512xf32>
    %211 = arith.mulf %209, %210 : vector<8x512xf32>
    %c0_74 = arith.constant 0 : index
    %c0_75 = arith.constant 0 : index
    %212 = vector.load %arg2[%c0_74, %c0_75] : memref<1x512xf32, #tpu.memory_space<vmem>>, vector<1x512xf32>
    %213 = vector.broadcast %212 : vector<1x512xf32> to vector<8x512xf32>
    %214 = arith.addf %211, %213 : vector<8x512xf32>
    %c0_76 = arith.constant 0 : index
    %c0_77 = arith.constant 0 : index
    %215 = vector.load %arg3[%c0_76, %c0_77] : memref<128x512xf32, #tpu.memory_space<vmem>>, vector<128x512xf32>
    %cst_78 = arith.constant dense<0.000000e+00> : vector<8x512xf32>
    %216 = tpu.matmul %204, %215, %cst_78 {dimension_numbers = #tpu.dot_dimension_numbers<[1], [0], [0], [1], [0, 0, 1, 1], [], []>, precision = #tpu.contract_precision<fp32>} : vector<8x128xf32>, vector<128x512xf32>, vector<8x512xf32> -> vector<8x512xf32>
    %217 = arith.addf %214, %216 : vector<8x512xf32>
    %218 = vector.extract_strided_slice %217 {offsets = [0, 0], sizes = [8, 384], strides = [1, 1]} : vector<8x512xf32> to vector<8x384xf32>
    %219 = arith.negf %218 : vector<8x384xf32>
    %220 = math.exp %219 : vector<8x384xf32>
    %cst_79 = arith.constant 1.000000e+00 : f32
    %221 = vector.broadcast %cst_79 : f32 to vector<8x384xf32>
    %222 = arith.addf %221, %220 : vector<8x384xf32>
    %223 = arith.divf %221, %222 : vector<8x384xf32>
    %224 = vector.extract_strided_slice %217 {offsets = [0, 384], sizes = [8, 128], strides = [1, 1]} : vector<8x512xf32> to vector<8x128xf32>
    %225 = math.tanh %224 : vector<8x128xf32>
    %226 = vector.extract_strided_slice %223 {offsets = [0, 0], sizes = [8, 128], strides = [1, 1]} : vector<8x384xf32> to vector<8x128xf32>
    %227 = vector.extract_strided_slice %223 {offsets = [0, 128], sizes = [8, 128], strides = [1, 1]} : vector<8x384xf32> to vector<8x128xf32>
    %228 = vector.extract_strided_slice %223 {offsets = [0, 256], sizes = [8, 128], strides = [1, 1]} : vector<8x384xf32> to vector<8x128xf32>
    %229 = arith.mulf %227, %202 : vector<8x128xf32>
    %230 = arith.mulf %226, %225 : vector<8x128xf32>
    %231 = arith.addf %229, %230 : vector<8x128xf32>
    %232 = math.tanh %231 : vector<8x128xf32>
    %233 = arith.mulf %228, %232 : vector<8x128xf32>
    %c8_i32 = arith.constant 8 : i32
    %c0_80 = arith.constant 0 : index
    %c0_81 = arith.constant 0 : index
    %234 = vector.load %arg4[%c0_80, %c0_81] : memref<128x128xf32, #tpu.memory_space<vmem>>, vector<128x128xf32>
    %cst_82 = arith.constant dense<0.000000e+00> : vector<8x128xf32>
    %235 = tpu.matmul %233, %234, %cst_82 {dimension_numbers = #tpu.dot_dimension_numbers<[1], [0], [0], [1], [0, 0, 1, 1], [], []>, precision = #tpu.contract_precision<fp32>} : vector<8x128xf32>, vector<128x128xf32>, vector<8x128xf32> -> vector<8x128xf32>
    %c0_83 = arith.constant 0 : index
    %c0_84 = arith.constant 0 : index
    %236 = vector.load %arg5[%c0_83, %c0_84] : memref<1x128xf32, #tpu.memory_space<vmem>>, vector<1x128xf32>
    %237 = vector.broadcast %236 : vector<1x128xf32> to vector<8x128xf32>
    %238 = arith.addf %235, %237 : vector<8x128xf32>
    %c0_85 = arith.constant 0 : index
    %c0_86 = arith.constant 0 : index
    %239 = vector.load %arg6[%c0_85, %c0_86] : memref<8x128xf32, #tpu.memory_space<vmem>>, vector<8x128xf32>
    tpu.vector_store %arg6[%c0_85, %c0_86], %238 {strides = array<i32>} : memref<8x128xf32, #tpu.memory_space<vmem>>, vector<8x128xf32>,
    return
  }
}

</mosaic_0001>

<bundles_post_ra>
// kernel: lstm_forward.1
= control target key start
LH: loop header
LB: loop body
LE: loop exit
PB: predicated region body
PF: predicated region fallthrough
CT: control target
= control target key end

     0   :  { %11 = vsyncpa [#allocation3], 0  ;;  %s22153_s0 = inlined_call_operand.vmem [shape: f32[8,8,1], index: 0, kind: input, shape index: {}]   ;;  %s22154_s1 = inlined_call_operand.vmem [shape: f32[1,512], index: 1, kind: input, shape index: {}]   ;;  %s22155_s2 = inlined_call_operand.vmem [shape: f32[1,512], index: 2, kind: input, shape index: {}]   ;;  %s22156_s3 = inlined_call_operand.hbm [shape: f32[128,512], index: 3, kind: input, shape index: {}]   ;;  %s22157_s4 = inlined_call_operand.hbm [shape: f32[128,128], index: 4, kind: input, shape index: {}]   ;;  %s22158_s5 = inlined_call_operand.vmem [shape: f32[1,128], index: 5, kind: input, shape index: {}]   ;;  %s22159_s6 = inlined_call_operand.vmem [shape: f32[8,128], index: 6, kind: output, shape index: {}]  }
   0x1   :  { %12 = vsyncpa [#allocation5], 0  ;;  %s18746_s21 = smov [#allocation2]   ;;  %s18698_s25 = scalar_lea.hbm %s22156_s3, 8192 }
   0x2   :  { %s24_s22 = sshll.u32 %s18746_s21, 4  ;;  %p18699_p0 = scmp.ne.s32.totalorder %s22156_s3, %s18698_s25  ;;  %s25_s22 = int_to_ptr.vmem [resolvable:$true] %s24_s22 }
   0x3   :  { %p18702_p1 = scmp.lt.u32.totalorder %s18698_s25, %s22156_s3 }
   0x5   :  { %p18704_p2 = pnand %p18702_p1, %p18699_p0 }
   0x7   :  { %18707 = shalt.err (!%p18704_p2)
}
   0x8   :  { %s18708_s30 = scalar_lea.vmem %s25_s22, 8192  ;;  %p18713_p4 = scmp.lt.s32.totalorder %s25_s22, %s25_s22 }
   0x9   :  { %p18709_p3 = scmp.ne.s32.totalorder %s25_s22, %s18708_s30  ;;  %p18714_p5 = scmp.lt.s32.totalorder %s18708_s30, %s18708_s30 }
   0xb   :  { %p18715_p6 = por %p18714_p5, %p18713_p4 }
   0xd   :  { %p18716_p7 = pnand %p18715_p6, %p18709_p3 }
   0xf   :  { %18719 = shalt.err (!%p18716_p7)
}
  0x10   :  { %s18747_s7 = smov 512   ;;  %s18748_s8 = smov 32  }
  0x11   :  { %30 = dma.hbm_to_vmem [thread:$0]  %s22156_s3, 8192, %s25_s22, [#allocation3], %s18747_s7, %s18747_s7, %s18748_s8  }
  0x12   :  { %s18749_s11 = smov [#allocation4]   ;;  %s18720_s15 = scalar_lea.hbm %s22157_s4, 2048 }
  0x13   :  { %s36_s12 = sshll.u32 %s18749_s11, 4  ;;  %p18721_p8 = scmp.ne.s32.totalorder %s22157_s4, %s18720_s15  ;;  %s37_s12 = int_to_ptr.vmem [resolvable:$true] %s36_s12 }
  0x14   :  { %p18724_p9 = scmp.lt.u32.totalorder %s18720_s15, %s22157_s4 }
  0x16   :  { %p18726_p10 = pnand %p18724_p9, %p18721_p8 }
  0x18   :  { %18729 = shalt.err (!%p18726_p10)
}
  0x19   :  { %s18730_s20 = scalar_lea.vmem %s37_s12, 2048  ;;  %p18735_p12 = scmp.lt.s32.totalorder %s37_s12, %s37_s12 }
  0x1a   :  { %p18731_p11 = scmp.ne.s32.totalorder %s37_s12, %s18730_s20  ;;  %p18736_p13 = scmp.lt.s32.totalorder %s18730_s20, %s18730_s20 }
  0x1c   :  { %p18737_p0 = por %p18736_p13, %p18735_p12 }
  0x1e   :  { %p18738_p1 = pnand %p18737_p0, %p18731_p11 }
  0x20   :  { %18741 = shalt.err (!%p18738_p1)
}
  0x21   :  { %s18750_s3 = smov 128   ;;  %s18751_s21 = smov 8  }
  0x22   :  { %42 = dma.hbm_to_vmem [thread:$0]  %s22157_s4, 2048, %s37_s12, [#allocation5], %s18750_s3, %s18750_s3, %s18751_s21  }
  0x23   :  { %18742 = dma.done.wait [#allocation3], 8192  }
  0x24   :  { %18743 = vsyncadd [#allocation3], 4294959104 }
  0x25   :  { %18744 = dma.done.wait [#allocation5], 2048  }
  0x26   :  { %18745 = vsyncadd [#allocation5], 4294965248  ;;  %v22160_v0 = vmov 0.0   ;;  %v18817_v1 = vld [vmem:[#allocation2 + $0x8] sm:$0xff]  ;;  %v18821_v3 = vld [vmem:[#allocation2] sm:$0xff]  ;;  %vm18755_vm0 = vmmov 0  }
  0x27   :  { %269 = vmatprep.mubr.f32.mxu1 %v22160_v0  ;;  %738 = vmatprep.mubr.f32.mxu0 %v22160_v0  ;;  %v18819_v2 = vld [vmem:[#allocation2 + $0x28] sm:$0xff]  ;;  %v173_v4 = vand.u32 4294901760, %v18817_v1  ;;  %v18825_v6 = vld [vmem:[#allocation2 + $0x20] sm:$0xff]  ;;  %v175_v7 = vand.u32 4294901760, %v18821_v3 }
  0x28   :  { %v177_v5 = vand.u32 4294901760, %v18819_v2  ;;  %v18828_v8 = vld [vmem:[#allocation2 + $0x48] sm:$0xff]  ;;  %v179_v10 = vand.u32 4294901760, %v18825_v6  ;;  %v18835_v13 = vld [vmem:[#allocation2 + $0x40] sm:$0xff] }
  0x29   :  { %v18830_v9 = vld [vmem:[#allocation2 + $0x68] sm:$0xff]  ;;  %v181_v11 = vand.u32 4294901760, %v18828_v8  ;;  %v18837_v14 = vld [vmem:[#allocation2 + $0x60] sm:$0xff]  ;;  %v183_v17 = vand.u32 4294901760, %v18835_v13 }
  0x2a   :  { %v185_v12 = vand.u32 4294901760, %v18830_v9  ;;  %v18839_v15 = vld [vmem:[#allocation2 + $0x88] sm:$0xff]  ;;  %v18845_v16 = vpack.c.bf16 %v177_v5, %v173_v4  ;;  %v187_v18 = vand.u32 4294901760, %v18837_v14  ;;  %v18852_v21 = vld [vmem:[#allocation2 + $0x80] sm:$0xff]  ;;  %v18860_v23 = vpack.c.bf16 %v179_v10, %v175_v7 }
  0x2b   :  { %v18849_v19 = vld [vmem:[#allocation2 + $0xa8] sm:$0xff]  ;;  %v22175_v20 = vand.u32 4294901760, %v18839_v15  ;;  %v18854_v22 = vld [vmem:[#allocation2 + $0xa0] sm:$0xff]  ;;  %v22173_v29 = vand.u32 4294901760, %v18852_v21 }
  0x2c   :  { %22509 = vst [vmem:[#allocation8_spill] sm:$0xff] %v18845_v16  ;;  %22510 = vst [vmem:[#allocation9_spill] sm:$0xff] %v18860_v23  ;;  %v18866_v24 = vpack.c.bf16 %v185_v12, %v181_v11  ;;  %v22174_v25 = vand.u32 4294901760, %v18849_v19  ;;  %v18869_v26 = vld [vmem:[#allocation2 + $0xc8] sm:$0xff]  ;;  %v18873_v28 = vld [vmem:[#allocation2 + $0xc0] sm:$0xff]  ;;  %15172 = vmatprep.subr.bf16.mxu1 %v18845_v16  ;;  %15268 = vmatprep.subr.bf16.mxu0 %v18845_v16  ;;  %v22172_v30 = vand.u32 4294901760, %v18854_v22 }
  0x2d   :  { %v18871_v27 = vld [vmem:[#allocation2 + $0xe8] sm:$0xff]  ;;  %v22171_v31 = vand.u32 4294901760, %v18869_v26  ;;  %v18880_v32 = vld [vmem:[#allocation2 + $0xe0] sm:$0xff]  ;;  %15174 = vmatpush1.bf16.msra.mxu1 %v18860_v23  ;;  %15270 = vmatpush1.bf16.msra.mxu0 %v18860_v23  ;;  %v18892_v35 = vpack.c.bf16 %v187_v18, %v183_v17  ;;  %v22165_v37 = vand.u32 4294901760, %v18873_v28 }
  0x2e   :  { %22511 = vst [vmem:[#allocation10_spill] sm:$0xff] %v18866_v24  ;;  %v18882_v33 = vld [vmem:[#allocation2 + $0x108] sm:$0xff]  ;;  %v22166_v36 = vand.u32 4294901760, %v18871_v27  ;;  %v22164_v38 = vand.u32 4294901760, %v18880_v32  ;;  %v18897_v39 = vld [vmem:[#allocation2 + $0x100] sm:$0xff]  ;;  %15176 = vmatprep.subr.bf16.mxu1 %v18866_v24  ;;  %15272 = vmatprep.subr.bf16.mxu0 %v18866_v24  ;;  %v18909_v42 = vpack.c.bf16 %v22174_v25, %v22175_v20  ;;  %v18933_v54 = vpack.c.bf16 %v22172_v30, %v22173_v29 }
  0x2f   :  { %v18884_v34 = vld [vmem:[#allocation2 + $0x128] sm:$0xff]  ;;  %22512 = vst [vmem:[#allocation11_spill] sm:$0xff] %v18892_v35  ;;  %v18899_v40 = vld [vmem:[#allocation2 + $0x120] sm:$0xff]  ;;  %v22163_v43 = vand.u32 4294901760, %v18882_v33  ;;  %v22168_v45 = vand.u32 4294901760, %v18897_v39 }
  0x30   :  { %v18901_v41 = vld [vmem:[#allocation2 + $0x148] sm:$0xff]  ;;  %22513 = vst [vmem:[#allocation12_spill] sm:$0xff] %v18909_v42  ;;  %v22162_v44 = vand.u32 4294901760, %v18884_v34  ;;  %v22167_v47 = vand.u32 4294901760, %v18899_v40  ;;  %v18919_v50 = vld [vmem:[#allocation2 + $0x140] sm:$0xff]  ;;  %22514 = vst [vmem:[#allocation13_spill] sm:$0xff] %v18933_v54  ;;  %v18939_v55 = vpack.c.bf16 %v22166_v36, %v22171_v31  ;;  %v18945_v56 = vpack.c.bf16 %v22164_v38, %v22165_v37 }
  0x31   :  { %v18914_v46 = vld [vmem:[#allocation2 + $0x168] sm:$0xff]  ;;  %v22170_v48 = vand.u32 4294901760, %v18901_v41  ;;  %v18921_v51 = vld [vmem:[#allocation2 + $0x160] sm:$0xff]  ;;  %15178 = vmatpush1.bf16.msra.mxu1 %v18892_v35  ;;  %15274 = vmatpush1.bf16.msra.mxu0 %v18892_v35  ;;  %v22177_v60 = vand.u32 4294901760, %v18919_v50  ;;  %v18982_v37 = vsub.f32 %v18817_v1, %v173_v4 }
  0x32   :  { %v22169_v49 = vand.u32 4294901760, %v18914_v46  ;;  %v18923_v52 = vld [vmem:[#allocation2 + $0x188] sm:$0xff]  ;;  %22515 = vst [vmem:[#allocation14_spill] sm:$0xff] %v18939_v55  ;;  %22516 = vst [vmem:[#allocation15_spill] sm:$0xff] %v18945_v56  ;;  %v18947_v57 = vld [vmem:[#allocation2 + $0x180] sm:$0xff]  ;;  %15180 = vmatprep.subr.bf16.mxu1 %v18909_v42  ;;  %15276 = vmatprep.subr.bf16.mxu0 %v18909_v42  ;;  %v18957_v59 = vpack.c.bf16 %v22162_v44, %v22163_v43  ;;  %v22176_v61 = vand.u32 4294901760, %v18921_v51 }
  0x33   :  { %v18925_v53 = vld [vmem:[#allocation2 + $0x1a8] sm:$0xff]  ;;  %v18949_v58 = vld [vmem:[#allocation2 + $0x1a0] sm:$0xff]  ;;  %v22185_v62 = vand.u32 4294901760, %v18923_v52  ;;  %v18968_v0 = vpack.c.bf16 %v22167_v47, %v22168_v45  ;;  %v22189_v36 = vand.u32 4294901760, %v18947_v57  ;;  %v18989_v45 = vsub.f32 %v18819_v2, %v177_v5 }
  0x34   :  { %22517 = vst [vmem:[#allocation16_spill] sm:$0xff] %v18957_v59  ;;  %v18962_v63 = vld [vmem:[#allocation2 + $0x1c8] sm:$0xff]  ;;  %v18974_v44 = vpack.c.bf16 %v22169_v49, %v22170_v48  ;;  %v22184_v43 = vand.u32 4294901760, %v18925_v53  ;;  %v22188_v47 = vand.u32 4294901760, %v18949_v58  ;;  %v18994_v49 = vsub.f32 %v18821_v3, %v175_v7  ;;  %v19013_v5 = vld [vmem:[#allocation2 + $0x1c0] sm:$0xff] }
  0x35   :  { %22518 = vst [vmem:[#allocation17_spill] sm:$0xff] %v18968_v0  ;;  %v18977_v38 = vld [vmem:[#allocation2 + $0x1e8] sm:$0xff]  ;;  %15182 = vmatpush1.bf16.msra.mxu1 %v18933_v54  ;;  %15278 = vmatpush1.bf16.msra.mxu0 %v18933_v54  ;;  %v278_v4 = vand.u32 4294901760, %v18982_v37  ;;  %v19003_v48 = vsub.f32 %v18825_v6, %v179_v10  ;;  %v19008_v2 = vsub.f32 %v18828_v8, %v181_v11  ;;  %v19015_v7 = vld [vmem:[#allocation2 + $0x1e0] sm:$0xff]  ;;  %v290_v31 = vand.u32 4294901760, %v18989_v45 }
  0x36   :  { %22519 = vst [vmem:[#allocation18_spill] sm:$0xff] %v18974_v44  ;;  %15184 = vmatprep.subr.bf16.mxu1 %v18939_v55  ;;  %15280 = vmatprep.subr.bf16.mxu0 %v18939_v55  ;;  %v284_v6 = vand.u32 4294901760, %v18994_v49  ;;  %v19022_v10 = vsub.f32 %v18830_v9, %v185_v12  ;;  %v19028_v8 = vpack.c.bf16 %v22176_v61, %v22177_v60  ;;  %v22526_v54 = vand.u32 4294901760, %v18839_v15 }
  0x37   :  { %v279_v11 = vsub.f32 %v18982_v37, %v278_v4  ;;  %v296_v30 = vand.u32 4294901760, %v19003_v48  ;;  %v302_v29 = vand.u32 4294901760, %v19008_v2  ;;  %v291_v25 = vsub.f32 %v18989_v45, %v290_v31 }
  0x38   :  { %22520 = vst [vmem:[#allocation19_spill] sm:$0xff] %v19028_v8  ;;  %v314_v20 = vand.u32 4294901760, %v19022_v10  ;;  %v19038_v9 = vsub.f32 %v18835_v13, %v183_v17  ;;  %v19043_v12 = vsub.f32 %v18837_v14, %v187_v18  ;;  %v285_v3 = vsub.f32 %v18994_v49, %v284_v6 }
  0x39   :  { %15186 = vmatpush1.bf16.msra.mxu1 %v18945_v56  ;;  %15282 = vmatpush1.bf16.msra.mxu0 %v18945_v56  ;;  %v297_v1 = vsub.f32 %v19003_v48, %v296_v30  ;;  %v19057_v13 = vpack.c.bf16 %v22184_v43, %v22185_v62  ;;  %v19063_v14 = vpack.c.bf16 %v22188_v47, %v22189_v36  ;;  %v22523_v17 = vand.u32 4294901760, %v18962_v63 }
  0x3a   :  { %15188 = vmatprep.subr.bf16.mxu1 %v18957_v59  ;;  %15284 = vmatprep.subr.bf16.mxu0 %v18957_v59  ;;  %v22524_v18 = vand.u32 4294901760, %v18977_v38  ;;  %v280_v61 = vand.u32 4294901760, %v279_v11  ;;  %v292_v59 = vand.u32 4294901760, %v291_v25  ;;  %v303_v56 = vsub.f32 %v19008_v2, %v302_v29 }
  0x3b   :  { %22521 = vst [vmem:[#allocation20_spill] sm:$0xff] %v19057_v13  ;;  %22522 = vst [vmem:[#allocation21_spill] sm:$0xff] %v19063_v14  ;;  %v315_v55 = vsub.f32 %v19022_v10, %v314_v20  ;;  %v308_v43 = vand.u32 4294901760, %v19038_v9  ;;  %v320_v62 = vand.u32 4294901760, %v19043_v12  ;;  %v19078_v47 = vsub.f32 %v18839_v15, %v22526_v54 }
  0x3c   :  { %v19069_v60 = vpack.c.bf16 %v22524_v18, %v22523_v17  ;;  %v22527_v36 = vand.u32 4294901760, %v18849_v19  ;;  %v22529_v25 = vand.u32 4294901760, %v19013_v5  ;;  %v22530_v11 = vand.u32 4294901760, %v19015_v7 }
  0x3d   :  { %15190 = vmatpush1.bf16.msra.mxu1 %v18968_v0  ;;  %15286 = vmatpush1.bf16.msra.mxu0 %v18968_v0  ;;  %v19093_v42 = vpack.c.bf16 %v290_v31, %v278_v4  ;;  %v286_v35 = vand.u32 4294901760, %v285_v3  ;;  %v298_v15 = vand.u32 4294901760, %v297_v1  ;;  %v326_v54 = vand.u32 4294901760, %v19078_v47 }
  0x3e   :  { %22525 = vst [vmem:[#allocation22_spill] sm:$0xff] %v19069_v60  ;;  %v19083_v17 = vsub.f32 %v18849_v19, %v22527_v36  ;;  %v19091_v18 = vpack.c.bf16 %v22530_v11, %v22529_v25  ;;  %15192 = vmatprep.subr.bf16.mxu1 %v18974_v44  ;;  %15288 = vmatprep.subr.bf16.mxu0 %v18974_v44  ;;  %v304_v24 = vand.u32 4294901760, %v303_v56  ;;  %v316_v23 = vand.u32 4294901760, %v315_v55 }
  0x3f   :  { %22532 = vst [vmem:[#allocation25_spill] sm:$0xff] %v19093_v42  ;;  %v19097_v19 = vpack.c.bf16 %v296_v30, %v284_v6  ;;  %v19099_v36 = vpack.c.bf16 %v314_v20, %v302_v29  ;;  %v22535_v25 = vand.u32 4294901760, %v18852_v21  ;;  %v22536_v1 = vand.u32 4294901760, %v18854_v22 }
  0x40   :  { %22528 = vst [vmem:[#allocation23_spill] sm:$0xff] %v19083_v17  ;;  %22531 = vst [vmem:[#allocation24_spill] sm:$0xff] %v19091_v18  ;;  %v338_v0 = vand.u32 4294901760, %v19083_v17  ;;  %v19113_v30 = vpack.c.bf16 %v292_v59, %v280_v61  ;;  %v309_v20 = vsub.f32 %v19038_v9, %v308_v43  ;;  %v321_v29 = vsub.f32 %v19043_v12, %v320_v62 }
  0x41   :  { %22533 = vst [vmem:[#allocation26_spill] sm:$0xff] %v19097_v19  ;;  %22534 = vst [vmem:[#allocation27_spill] sm:$0xff] %v19099_v36  ;;  %v19106_v31 = vsub.f32 %v18852_v21, %v22535_v25  ;;  %v19111_v4 = vsub.f32 %v18854_v22, %v22536_v1  ;;  %v22538_v3 = vand.u32 4294901760, %v18869_v26  ;;  %15194 = vmatpush1.bf16.msra.mxu1 %v19028_v8  ;;  %15290 = vmatpush1.bf16.msra.mxu0 %v19028_v8 }
  0x42   :  { %22537 = vst [vmem:[#allocation28_spill] sm:$0xff] %v19113_v30  ;;  %v19124_v21 = vpack.c.bf16 %v298_v15, %v286_v35  ;;  %v22540_v59 = vand.u32 4294901760, %v18871_v27  ;;  %15196 = vmatprep.subr.bf16.mxu1 %v19057_v13  ;;  %15292 = vmatprep.subr.bf16.mxu0 %v19057_v13  ;;  %v339_v6 = vsub.f32 %v19083_v17, %v338_v0  ;;  %v22542_v11 = vand.u32 4294901760, %v18873_v28 }
  0x43   :  { %v19120_v55 = vsub.f32 %v18869_v26, %v22538_v3  ;;  %v332_v22 = vand.u32 4294901760, %v19106_v31  ;;  %v344_v56 = vand.u32 4294901760, %v19111_v4  ;;  %v327_v26 = vsub.f32 %v19078_v47, %v326_v54 }
  0x44   :  { %22539 = vst [vmem:[#allocation29_spill] sm:$0xff] %v19124_v21  ;;  %v19131_v61 = vsub.f32 %v18871_v27, %v22540_v59  ;;  %v19141_v15 = vsub.f32 %v18873_v28, %v22542_v11  ;;  %v19143_v25 = vpack.c.bf16 %v316_v23, %v304_v24  ;;  %v310_v59 = vand.u32 4294901760, %v309_v20 }
  0x45   :  { %v350_v35 = vand.u32 4294901760, %v19120_v55  ;;  %v333_v27 = vsub.f32 %v19106_v31, %v332_v22  ;;  %v345_v1 = vsub.f32 %v19111_v4, %v344_v56  ;;  %v322_v13 = vand.u32 4294901760, %v321_v29  ;;  %15198 = vmatpush1.bf16.msra.mxu1 %v19063_v14  ;;  %15294 = vmatpush1.bf16.msra.mxu0 %v19063_v14 }
  0x46   :  { %22541 = vst [vmem:[#allocation30_spill] sm:$0xff] %v19131_v61  ;;  %22543 = vst [vmem:[#allocation31_spill] sm:$0xff] %v19143_v25  ;;  %v362_v3 = vand.u32 4294901760, %v19131_v61  ;;  %v22544_v44 = vand.u32 4294901760, %v18880_v32  ;;  %v19156_v23 = vpack.c.bf16 %v320_v62, %v308_v43  ;;  %v19158_v24 = vpack.c.bf16 %v338_v0, %v326_v54  ;;  %15200 = vmatprep.subr.bf16.mxu1 %v19069_v60 }
  0x47   :  { %v351_v8 = vsub.f32 %v19120_v55, %v350_v35  ;;  %15296 = vmatprep.subr.bf16.mxu0 %v19069_v60  ;;  %v328_v20 = vand.u32 4294901760, %v327_v26  ;;  %v340_v29 = vand.u32 4294901760, %v339_v6  ;;  %v356_v11 = vand.u32 4294901760, %v19141_v15 }
  0x48   :  { %v19152_v17 = vsub.f32 %v18880_v32, %v22544_v44  ;;  %22545 = vst [vmem:[#allocation32_spill] sm:$0xff] %v19156_v23  ;;  %22546 = vst [vmem:[#allocation33_spill] sm:$0xff] %v19158_v24  ;;  %v363_v28 = vsub.f32 %v19131_v61, %v362_v3  ;;  %v22547_v32 = vand.u32 4294901760, %v18882_v33  ;;  %v334_v14 = vand.u32 4294901760, %v333_v27 }
  0x49   :  { %v346_v43 = vand.u32 4294901760, %v345_v1  ;;  %v22548_v0 = vand.u32 4294901760, %v18884_v34  ;;  %v22549_v54 = vand.u32 4294901760, %v18897_v39  ;;  %v19179_v26 = vpack.c.bf16 %v322_v13, %v310_v59  ;;  %15202 = vmatpush1.bf16.msra.mxu1 %v19091_v18  ;;  %15298 = vmatpush1.bf16.msra.mxu0 %v19091_v18 }
  0x4a   :  { %v19167_v44 = vsub.f32 %v18882_v33, %v22547_v32  ;;  %v19181_v6 = vpack.c.bf16 %v344_v56, %v332_v22  ;;  %v352_v61 = vand.u32 4294901760, %v351_v8  ;;  %v368_v33 = vand.u32 4294901760, %v19152_v17  ;;  %15204 = vmatprep.subr.bf16.mxu1 %v19113_v30  ;;  %15300 = vmatprep.subr.bf16.mxu0 %v19093_v42 }
  0x4b   :  { %v19172_v62 = vsub.f32 %v18884_v34, %v22548_v0  ;;  %v19177_v60 = vsub.f32 %v18897_v39, %v22549_v54  ;;  %22550 = vst [vmem:[#allocation34_spill] sm:$0xff] %v19179_v26  ;;  %v364_v27 = vand.u32 4294901760, %v363_v28  ;;  %v22552_v32 = vand.u32 4294901760, %v18899_v40 }
  0x4c   :  { %22551 = vst [vmem:[#allocation35_spill] sm:$0xff] %v19181_v6  ;;  %v374_v34 = vand.u32 4294901760, %v19167_v44  ;;  %v19195_v8 = vpack.c.bf16 %v340_v29, %v328_v20  ;;  %v22554_v22 = vand.u32 4294901760, %v18901_v41  ;;  %v22555_v59 = vand.u32 4294901760, %v18914_v46 }
  0x4d   :  { %v386_v1 = vand.u32 4294901760, %v19172_v62  ;;  %v19191_v39 = vsub.f32 %v18899_v40, %v22552_v32  ;;  %v380_v13 = vand.u32 4294901760, %v19177_v60  ;;  %v19208_v40 = vpack.c.bf16 %v346_v43, %v334_v14 }
  0x4e   :  { %22553 = vst [vmem:[#allocation36_spill] sm:$0xff] %v19195_v8  ;;  %v19201_v56 = vsub.f32 %v18901_v41, %v22554_v22  ;;  %v19206_v28 = vsub.f32 %v18914_v46, %v22555_v59  ;;  %v19210_v0 = vpack.c.bf16 %v362_v3, %v350_v35  ;;  %v357_v54 = vsub.f32 %v19141_v15, %v356_v11 }
  0x4f   :  { %22557 = vst [vmem:[#allocation38_spill] sm:$0xff] %v19208_v40  ;;  %v392_v20 = vand.u32 4294901760, %v19191_v39  ;;  %v22559_v29 = vmov 0.0   ;;  %v369_v41 = vsub.f32 %v19152_v17, %v368_v33  ;;  %v19217_v32 = vpack.c.bf16 %v368_v33, %v356_v11 }
  0x50   :  { %22556 = vst [vmem:[#allocation37_spill] sm:$0xff] %v19206_v28  ;;  %22558 = vst [vmem:[#allocation39_spill] sm:$0xff] %v19210_v0  ;;  %270 = vmatmul.mubr.f32.vlgmr.msra.gmra.mrb[0].mxu1 %v22559_v29  ;;  %739 = vmatmul.mubr.f32.vlgmr.msra.gmra.mrb[0].mxu0 %v22559_v29  ;;  %v398_v22 = vand.u32 4294901760, %v19201_v56  ;;  %v410_v46 = vand.u32 4294901760, %v19206_v28  ;;  %v19223_v14 = vpack.c.bf16 %v364_v27, %v352_v61  ;;  %v358_v59 = vand.u32 4294901760, %v357_v54 }
  0x51   :  { %22560 = vst [vmem:[#allocation40_spill] sm:$0xff] %v19217_v32  ;;  %15206 = vmatpush1.bf16.msra.mxu1 %v19124_v21  ;;  %15302 = vmatpush1.bf16.msra.mxu0 %v19097_v19  ;;  %v375_v35 = vsub.f32 %v19167_v44, %v374_v34  ;;  %v387_v3 = vsub.f32 %v19172_v62, %v386_v1  ;;  %v22562_v61 = vand.u32 4294901760, %v18919_v50  ;;  %v22563_v19 = vand.u32 4294901760, %v18921_v51 }
  0x52   :  { %22561 = vst [vmem:[#allocation41_spill] sm:$0xff] %v19223_v14  ;;  %15208 = vmatprep.subr.bf16.mxu1 %v19143_v25  ;;  %15304 = vmatprep.subr.bf16.mxu0 %v19099_v36  ;;  %v381_v11 = vsub.f32 %v19177_v60, %v380_v13  ;;  %v393_v43 = vsub.f32 %v19191_v39, %v392_v20  ;;  %v370_v36 = vand.u32 4294901760, %v369_v41  ;;  %v22565_v54 = vand.u32 4294901760, %v18923_v52 }
  0x53   :  { %v399_v33 = vsub.f32 %v19201_v56, %v398_v22  ;;  %v411_v42 = vsub.f32 %v19206_v28, %v410_v46  ;;  %v19236_v27 = vsub.f32 %v18919_v50, %v22562_v61  ;;  %v19241_v25 = vsub.f32 %v18921_v51, %v22563_v19  ;;  %500 = vmatprep.mubr.f32.mxu1 %v22559_v29 }
  0x54   :  { %905 = vmatprep.mubr.f32.mxu0 %v22559_v29  ;;  %v19245_v21 = vpack.c.bf16 %v386_v1, %v374_v34  ;;  %v19250_v30 = vsub.f32 %v18923_v52, %v22565_v54  ;;  %v22566_v50 = vand.u32 4294901760, %v18925_v53  ;;  %v376_v51 = vand.u32 4294901760, %v375_v35 }
  0x55   :  { %15210 = vmatpush1.bf16.msra.mxu1 %v19179_v26  ;;  %15306 = vmatpush1.bf16.msra.mxu0 %v19156_v23  ;;  %v404_v19 = vand.u32 4294901760, %v19236_v27  ;;  %v416_v34 = vand.u32 4294901760, %v19241_v25  ;;  %v22567_v1 = vand.u32 4294901760, %v18947_v57  ;;  %v388_v52 = vand.u32 4294901760, %v387_v3 }
  0x56   :  { %22564 = vst [vmem:[#allocation42_spill] sm:$0xff] %v19245_v21  ;;  %v19255_v61 = vsub.f32 %v18925_v53, %v22566_v50  ;;  %15212 = vmatprep.subr.bf16.mxu1 %v19195_v8  ;;  %15308 = vmatprep.subr.bf16.mxu0 %v19158_v24  ;;  %v422_v53 = vand.u32 4294901760, %v19250_v30  ;;  %v22568_v35 = vand.u32 4294901760, %v18949_v58  ;;  %v382_v23 = vand.u32 4294901760, %v381_v11 }
  0x57   :  { %v19264_v41 = vsub.f32 %v18947_v57, %v22567_v1  ;;  %v394_v26 = vand.u32 4294901760, %v393_v43  ;;  %v400_v18 = vand.u32 4294901760, %v399_v33  ;;  %v412_v28 = vand.u32 4294901760, %v411_v42 }
  0x58   :  { %v434_v54 = vand.u32 4294901760, %v19255_v61  ;;  %v19273_v50 = vsub.f32 %v18949_v58, %v22568_v35  ;;  %v19275_v57 = vpack.c.bf16 %v370_v36, %v358_v59  ;;  %v19277_v1 = vpack.c.bf16 %v392_v20, %v380_v13 }
  0x59   :  { %v405_v24 = vsub.f32 %v19236_v27, %v404_v19  ;;  %v417_v3 = vsub.f32 %v19241_v25, %v416_v34  ;;  %15214 = vmatpush1.bf16.msra.mxu1 %v19208_v40  ;;  %15310 = vmatpush1.bf16.msra.mxu0 %v19181_v6  ;;  %v423_v8 = vsub.f32 %v19250_v30, %v422_v53  ;;  %v428_v58 = vand.u32 4294901760, %v19264_v41 }
  0x5a   :  { %22569 = vst [vmem:[#allocation43_spill] sm:$0xff] %v19275_v57  ;;  %22570 = vst [vmem:[#allocation44_spill] sm:$0xff] %v19277_v1  ;;  %v440_v11 = vand.u32 4294901760, %v19273_v50  ;;  %v22571_v42 = vand.u32 4294901760, %v18962_v63  ;;  %15216 = vmatprep.subr.bf16.mxu1 %v19223_v14  ;;  %15312 = vmatprep.subr.bf16.mxu0 %v19210_v0  ;;  %v19293_v13 = vpack.c.bf16 %v388_v52, %v376_v51  ;;  %v22576_v6 = vand.u32 4294901760, %v18977_v38  ;;  %v19504_v0 = vld [vmem:[#allocation2 + $0x118] sm:$0xff] }
  0x5b   :  { %v19295_v20 = vpack.c.bf16 %v410_v46, %v398_v22  ;;  %v435_v43 = vsub.f32 %v19255_v61, %v434_v54  ;;  %v19298_v33 = vpack.c.bf16 %v394_v26, %v382_v23  ;;  %v19300_v59 = vpack.c.bf16 %v412_v28, %v400_v18 }
  0x5c   :  { %v19289_v36 = vsub.f32 %v18962_v63, %v22571_v42  ;;  %22572 = vst [vmem:[#allocation45_spill] sm:$0xff] %v19293_v13  ;;  %v19306_v63 = vsub.f32 %v18977_v38, %v22576_v6  ;;  %v406_v42 = vand.u32 4294901760, %v405_v24  ;;  %v418_v14 = vand.u32 4294901760, %v417_v3 }
  0x5d   :  { %22573 = vst [vmem:[#allocation46_spill] sm:$0xff] %v19295_v20  ;;  %22574 = vst [vmem:[#allocation47_spill] sm:$0xff] %v19298_v33  ;;  %v22577_v51 = vand.u32 4294901760, %v19013_v5  ;;  %v22578_v46 = vand.u32 4294901760, %v19015_v7  ;;  %15218 = vmatpush1.bf16.msra.mxu1 %v19275_v57  ;;  %15314 = vmatpush1.bf16.msra.mxu0 %v19217_v32  ;;  %v424_v18 = vand.u32 4294901760, %v423_v8  ;;  %v429_v38 = vsub.f32 %v19264_v41, %v428_v58 }
  0x5e   :  { %22575 = vst [vmem:[#allocation48_spill] sm:$0xff] %v19300_v59  ;;  %v446_v35 = vand.u32 4294901760, %v19289_v36  ;;  %v441_v24 = vsub.f32 %v19273_v50, %v440_v11  ;;  %v458_v26 = vand.u32 4294901760, %v19306_v63  ;;  %15220 = vmatprep.subr.bf16.mxu1 %v19293_v13  ;;  %15316 = vmatprep.subr.bf16.mxu0 %v19245_v21  ;;  %v19329_v8 = vpack.c.bf16 %v418_v14, %v406_v42  ;;  %v19538_v13 = vld [vmem:[#allocation2 + $0x150] sm:$0xff] }
  0x5f   :  { %v19311_v22 = vsub.f32 %v19013_v5, %v22577_v51  ;;  %v19316_v23 = vsub.f32 %v19015_v7, %v22578_v46  ;;  %v436_v5 = vand.u32 4294901760, %v435_v43  ;;  %v19331_v3 = vpack.c.bf16 %v416_v34, %v404_v19 }
  0x60   :  { %v447_v6 = vsub.f32 %v19289_v36, %v446_v35  ;;  %v459_v52 = vsub.f32 %v19306_v63, %v458_v26  ;;  %22579 = vst [vmem:[#allocation49_spill] sm:$0xff] %v19329_v8  ;;  %v430_v51 = vand.u32 4294901760, %v429_v38  ;;  %v442_v46 = vand.u32 4294901760, %v441_v24 }
  0x61   :  { %v452_v7 = vand.u32 4294901760, %v19311_v22  ;;  %v464_v28 = vand.u32 4294901760, %v19316_v23  ;;  %22580 = vst [vmem:[#allocation50_spill] sm:$0xff] %v19331_v3  ;;  %15222 = vmatpush1.bf16.msra.mxu1 %v19298_v33  ;;  %15318 = vmatpush1.bf16.msra.mxu0 %v19277_v1  ;;  %v19339_v32 = vpack.c.bf16 %v436_v5, %v424_v18  ;;  %v19341_v14 = vpack.c.bf16 %v434_v54, %v422_v53 }
  0x62   :  { %15224 = vmatprep.subr.bf16.mxu1 %v19300_v59  ;;  %15320 = vmatprep.subr.bf16.mxu0 %v19295_v20  ;;  %v448_v19 = vand.u32 4294901760, %v447_v6  ;;  %v460_v34 = vand.u32 4294901760, %v459_v52  ;;  %v19345_v42 = vpack.c.bf16 %v442_v46, %v430_v51  ;;  %v19347_v38 = vpack.c.bf16 %v440_v11, %v428_v58  ;;  %v51_v11 = vld [vmem:[%s22153_s0] sm:$0xff]  ;;  %v22602_v6 = vld [vmem:[#allocation13_spill] sm:$0xff]  ;;  %v19434_v51 = vld [vmem:[#allocation2 + $0x18] sm:$0xff] }
  0x63   :  { %v453_v43 = vsub.f32 %v19311_v22, %v452_v7  ;;  %v465_v21 = vsub.f32 %v19316_v23, %v464_v28  ;;  %22581 = vst [vmem:[#allocation51_spill] sm:$0xff] %v19339_v32  ;;  %22582 = vst [vmem:[#allocation52_spill] sm:$0xff] %v19341_v14  ;;  %v19353_v53 = vpack.c.bf16 %v458_v26, %v446_v35  ;;  %v22600_v35 = vld [vmem:[#allocation30_spill] sm:$0xff] }
  0x64   :  { %22583 = vst [vmem:[#allocation53_spill] sm:$0xff] %v19345_v42  ;;  %22584 = vst [vmem:[#allocation54_spill] sm:$0xff] %v19347_v38  ;;  %v19351_v18 = vpack.c.bf16 %v460_v34, %v448_v19  ;;  %v19359_v5 = vpack.c.bf16 %v464_v28, %v452_v7  ;;  %v19371_v58 = vpack.c.bf16 %v19003_v48, %v18994_v49  ;;  %v22594_v48 = vld [vmem:[#allocation10_spill] sm:$0xff]  ;;  %v22595_v49 = vld [vmem:[#allocation23_spill] sm:$0xff] }
  0x65   :  { %15226 = vmatpush1.bf16.msra.mxu1 %v19329_v8  ;;  %15322 = vmatpush1.bf16.msra.mxu0 %v19331_v3  ;;  %v454_v24 = vand.u32 4294901760, %v453_v43  ;;  %v466_v1 = vand.u32 4294901760, %v465_v21  ;;  %22586 = vst [vmem:[#allocation56_spill] sm:$0xff] %v19353_v53  ;;  %v19365_v21 = vpack.c.bf16 %v18989_v45, %v18982_v37  ;;  %v22592_v37 = vld [vmem:[#allocation9_spill] sm:$0xff]  ;;  %v19385_v45 = vpack.c.bf16 %v19043_v12, %v19038_v9  ;;  %v22597_v9 = vld [vmem:[#allocation11_spill] sm:$0xff]  ;;  %v22613_v46 = vld [vmem:[#allocation18_spill] sm:$0xff] }
  0x66   :  { %15228 = vmatprep.subr.bf16.mxu1 %v19339_v32  ;;  %15324 = vmatprep.subr.bf16.mxu0 %v19341_v14  ;;  %22585 = vst [vmem:[#allocation55_spill] sm:$0xff] %v19351_v18  ;;  %22588 = vst [vmem:[#allocation58_spill] sm:$0xff] %v19359_v5  ;;  %v19402_v12 = vpack.c.bf16 %v19111_v4, %v19106_v31  ;;  %v19408_v26 = vpack.c.bf16 %v22600_v35, %v19120_v55  ;;  %v22604_v31 = vld [vmem:[#allocation14_spill] sm:$0xff]  ;;  %v22606_v55 = vld [vmem:[#allocation15_spill] sm:$0xff] }
  0x67   :  { %v19357_v54 = vpack.c.bf16 %v466_v1, %v454_v24  ;;  %22589 = vst [vmem:[#allocation59_spill] sm:$0xff] %v19365_v21  ;;  %22590 = vst [vmem:[#allocation60_spill] sm:$0xff] %v19371_v58  ;;  %v19377_v1 = vpack.c.bf16 %v19022_v10, %v19008_v2  ;;  %v19391_v2 = vpack.c.bf16 %v22595_v49, %v19078_v47  ;;  %v18753_v10 = vmov 0   ;;  %v22599_v47 = vld [vmem:[#allocation12_spill] sm:$0xff]  ;;  %v19454_v34 = vld [vmem:[#allocation2 + $0x30] sm:$0xff] }
  0x68   :  { %22593 = vst [vmem:[#allocation62_spill] sm:$0xff] %v19385_v45  ;;  %18568 = vset.pattern.permute.xlu0 %v18753_v10  ;;  %18569 = vset.pattern.permute.xlu1 %v18753_v10  ;;  %22598 = vst [vmem:[#allocation63_spill] sm:$0xff] %v19402_v12  ;;  %v19414_v7 = vpack.c.bf16 %v19152_v17, %v19141_v15  ;;  %v19420_v4 = vpack.c.bf16 %v19172_v62, %v19167_v44  ;;  %v22608_v17 = vld [vmem:[#allocation16_spill] sm:$0xff]  ;;  %v22609_v15 = vld [vmem:[#allocation37_spill] sm:$0xff]  ;;  %v1021_v3 = vand.u32 4294901760, %v19454_v34 }
  0x69   :  { %15230 = vmatpush1.bf16.msra.mxu1 %v19345_v42  ;;  %15326 = vmatpush1.bf16.msra.mxu0 %v19347_v38  ;;  %22587 = vst [vmem:[#allocation57_spill] sm:$0xff] %v19357_v54  ;;  %22591 = vst [vmem:[#allocation61_spill] sm:$0xff] %v19377_v1  ;;  %v19426_v28 = vpack.c.bf16 %v19191_v39, %v19177_v60  ;;  %v19432_v52 = vpack.c.bf16 %v22609_v15, %v19201_v56  ;;  %v19436_v44 = vld [vmem:[#allocation2 + $0x38] sm:$0xff]  ;;  %v22611_v62 = vld [vmem:[#allocation17_spill] sm:$0xff] }
  0x6a   :  { %15232 = vmatprep.subr.bf16.mxu1 %v19351_v18  ;;  %15328 = vmatprep.subr.bf16.mxu0 %v19353_v53  ;;  %22596 = vst [vmem:[#allocation23_spill] sm:$0xff] %v19391_v2  ;;  %22601 = vst [vmem:[#allocation30_spill] sm:$0xff] %v19408_v26  ;;  %v19442_v60 = vpack.c.bf16 %v19241_v25, %v19236_v27  ;;  %v19444_v39 = vld [vmem:[#allocation2 + $0x10] sm:$0xff]  ;;  %v19450_v56 = vpack.c.bf16 %v19255_v61, %v19250_v30  ;;  %v19456_v24 = vld [vmem:[#allocation2 + $0x58] sm:$0xff] }
  0x6b   :  { %55 = vperm.xlu0 %18568, %v51_v11   ;;  %22603 = vst [vmem:[#allocation64_spill] sm:$0xff] %v19414_v7  ;;  %22605 = vst [vmem:[#allocation65_spill] sm:$0xff] %v19420_v4  ;;  %v19458_v25 = vld [vmem:[#allocation2 + $0x78] sm:$0xff]  ;;  %v19460_v27 = vld [vmem:[#allocation2 + $0x50] sm:$0xff]  ;;  %v19476_v15 = vpack.c.bf16 %v19273_v50, %v19264_v41  ;;  %v19480_v19 = vpack.c.bf16 %v19306_v63, %v19289_v36  ;;  %v19492_v14 = vpack.c.bf16 %v19316_v23, %v19311_v22 }
  0x6c   :  { %22607 = vst [vmem:[#allocation66_spill] sm:$0xff] %v19426_v28  ;;  %22610 = vst [vmem:[#allocation37_spill] sm:$0xff] %v19432_v52  ;;  %v19462_v49 = vld [vmem:[#allocation2 + $0x70] sm:$0xff]  ;;  %v19464_v10 = vld [vmem:[#allocation2 + $0x98] sm:$0xff]  ;;  %v22620_v41 = vand.u32 4294901760, %v19434_v51  ;;  %v22621_v50 = vand.u32 4294901760, %v19436_v44 }
  0x6d   :  { %15234 = vmatpush1.bf16.msra.mxu1 %v19357_v54  ;;  %15330 = vmatpush1.bf16.msra.mxu0 %v19359_v5  ;;  %22612 = vst [vmem:[#allocation67_spill] sm:$0xff] %v19442_v60  ;;  %22614 = vst [vmem:[#allocation68_spill] sm:$0xff] %v19450_v56  ;;  %v19466_v11 = vld [vmem:[#allocation2 + $0xb8] sm:$0xff]  ;;  %v19468_v30 = vld [vmem:[#allocation2 + $0x90] sm:$0xff]  ;;  %v1017_v63 = vand.u32 4294901760, %v19444_v39  ;;  %v1027_v22 = vand.u32 4294901760, %v19458_v25 }
  0x6e   :  { %15236 = vmatprep.subr.bf16.mxu1 %v19365_v21  ;;  %15332 = vmatprep.subr.bf16.mxu0 %v18845_v16  ;;  %v19470_v61 = vld [vmem:[#allocation2 + $0xb0] sm:$0xff]  ;;  %v22615_v35 = vld [vmem:[#allocation19_spill] sm:$0xff]  ;;  %22616 = vst [vmem:[#allocation69_spill] sm:$0xff] %v19476_v15  ;;  %22617 = vst [vmem:[#allocation70_spill] sm:$0xff] %v19480_v19  ;;  %v19498_v36 = vpack.c.bf16 %v22621_v50, %v22620_v41  ;;  %v1025_v23 = vand.u32 4294901760, %v19460_v27 }
  0x6f   :  { %v19482_v43 = vld [vmem:[#allocation2 + $0xd8] sm:$0xff]  ;;  %v19486_v53 = vld [vmem:[#allocation2 + $0xd0] sm:$0xff]  ;;  %v22618_v38 = vld [vmem:[#allocation20_spill] sm:$0xff]  ;;  %22619 = vst [vmem:[#allocation71_spill] sm:$0xff] %v19492_v14  ;;  %v19540_v57 = vpack.c.bf16 %v1021_v3, %v1017_v63 }
  0x70   :  { %501 = vmatmul.mubr.f32.vlgmr.msra.gmra.mrb[0].mxu1 %v22559_v29  ;;  %906 = vmatmul.mubr.f32.vlgmr.msra.gmra.mrb[0].mxu0 %v22559_v29  ;;  %v19484_v5 = vld [vmem:[#allocation2 + $0xf8] sm:$0xff]  ;;  %22622 = vst [vmem:[#allocation72_spill] sm:$0xff] %v19498_v36  ;;  %v19502_v20 = vld [vmem:[#allocation2 + $0xf0] sm:$0xff]  ;;  %v1041_v21 = vand.u32 4294901760, %v19486_v53  ;;  %v22625_v42 = vld [vmem:[#allocation24_spill] sm:$0xff] }
  0x71   :  { %15238 = vmatpush1.bf16.msra.mxu1 %v19371_v58  ;;  %15334 = vmatpush1.bf16.msra.mxu0 %v22592_v37  ;;  %v19512_v41 = vld [vmem:[#allocation2 + $0x110] sm:$0xff]  ;;  %v1043_v58 = vand.u32 4294901760, %v19484_v5  ;;  %v1045_v54 = vand.u32 4294901760, %v19502_v20 }
  0x72   :  { %15240 = vmatprep.subr.bf16.mxu1 %v19377_v1  ;;  %15336 = vmatprep.subr.bf16.mxu0 %v22594_v48  ;;  %v19514_v50 = vld [vmem:[#allocation2 + $0x130] sm:$0xff]  ;;  %v1039_v1 = vand.u32 4294901760, %v19482_v43 }
  0x73   :  { %635 = vmatprep.mubr.f32.mxu1 %v22559_v29  ;;  %1008 = vmatprep.mubr.f32.mxu0 %v22559_v29  ;;  %v22624_v18 = vld [vmem:[#allocation22_spill] sm:$0xff]  ;;  %v19557_v33 = vpack.c.bf16 %v1045_v54, %v1041_v21 }
  0x74   :  { %v19552_v8 = vpack.c.bf16 %v1043_v58, %v1039_v1  ;;  %v19554_v59 = vld [vmem:[#allocation2 + $0x170] sm:$0xff] }
  0x75   :  { %15242 = vmatpush1.bf16.msra.mxu1 %v19385_v45  ;;  %15338 = vmatpush1.bf16.msra.mxu0 %v22597_v9  ;;  %v22623_v45 = vld [vmem:[#allocation21_spill] sm:$0xff] }
  0x76   :  { %15244 = vmatprep.subr.bf16.mxu1 %v19391_v2  ;;  %15340 = vmatprep.subr.bf16.mxu0 %v22599_v47  ;;  %v19522_v2 = vld [vmem:[#allocation2 + $0x178] sm:$0xff] }
  0x79   :  { %15246 = vmatpush1.bf16.msra.mxu1 %v19402_v12  ;;  %15342 = vmatpush1.bf16.msra.mxu0 %v22602_v6  ;;  %v19520_v12 = vld [vmem:[#allocation2 + $0x158] sm:$0xff] }
  0x7a   :  { %15248 = vmatprep.subr.bf16.mxu1 %v19408_v26  ;;  %15344 = vmatprep.subr.bf16.mxu0 %v22604_v31  ;;  %v1037_v26 = vand.u32 4294901760, %v19470_v61 }
  0x7d   :  { %15250 = vmatpush1.bf16.msra.mxu1 %v19414_v7  ;;  %15346 = vmatpush1.bf16.msra.mxu0 %v22606_v55  ;;  %v1033_v7 = vand.u32 4294901760, %v19468_v30 }
  0x7e   :  { %15252 = vmatprep.subr.bf16.mxu1 %v19420_v4  ;;  %15348 = vmatprep.subr.bf16.mxu0 %v22608_v17  ;;  %v1035_v4 = vand.u32 4294901760, %v19466_v11  ;;  %v22633_v17 = vand.u32 4294901760, %v19522_v2 }
  0x81   :  { %15254 = vmatpush1.bf16.msra.mxu1 %v19426_v28  ;;  %15350 = vmatpush1.bf16.msra.mxu0 %v22611_v62  ;;  %v1031_v28 = vand.u32 4294901760, %v19464_v10  ;;  %v19572_v62 = vld [vmem:[#allocation2 + $0x198] sm:$0xff] }
  0x82   :  { %15256 = vmatprep.subr.bf16.mxu1 %v19432_v52  ;;  %15352 = vmatprep.subr.bf16.mxu0 %v22613_v46  ;;  %v1029_v52 = vand.u32 4294901760, %v19462_v49  ;;  %v19594_v46 = vsub.f32 %v19444_v39, %v1017_v63  ;;  %v19612_v39 = vsub.f32 %v19460_v27, %v1025_v23  ;;  %v19635_v27 = vsub.f32 %v19482_v43, %v1039_v1 }
  0x83   :  { %v19548_v32 = vpack.c.bf16 %v1035_v4, %v1031_v28 }
  0x84   :  { %v19615_v63 = vsub.f32 %v19462_v49, %v1029_v52  ;;  %v19638_v49 = vsub.f32 %v19484_v5, %v1043_v58  ;;  %v22317_v58 = vand.u32 4294901760, %v19612_v39 }
  0x85   :  { %15258 = vmatpush1.bf16.msra.mxu1 %v19442_v60  ;;  %15354 = vmatpush1.bf16.msra.mxu0 %v22615_v35  ;;  %v1023_v60 = vand.u32 4294901760, %v19456_v24 }
  0x86   :  { %15260 = vmatprep.subr.bf16.mxu1 %v19450_v56  ;;  %15356 = vmatprep.subr.bf16.mxu0 %v22618_v38  ;;  %v19506_v56 = vld [vmem:[#allocation2 + $0x138] sm:$0xff]  ;;  %v22316_v43 = vand.u32 4294901760, %v19615_v63 }
  0x87   :  { %v19542_v40 = vpack.c.bf16 %v1027_v22, %v1023_v60 }
  0x89   :  { %15262 = vmatpush1.bf16.msra.mxu1 %v19476_v15  ;;  %15358 = vmatpush1.bf16.msra.mxu0 %v22623_v45  ;;  %v19550_v15 = vpack.c.bf16 %v1037_v26, %v1033_v7  ;;  %v22627_v45 = vand.u32 4294901760, %v19506_v56 }
  0x8a   :  { %15264 = vmatprep.subr.bf16.mxu1 %v19480_v19  ;;  %15360 = vmatprep.subr.bf16.mxu0 %v22624_v18  ;;  %v19544_v19 = vpack.c.bf16 %v1029_v52, %v1025_v23  ;;  %v22626_v18 = vand.u32 4294901760, %v19504_v0  ;;  %v22638_v23 = vand.u32 4294901760, %v19506_v56 }
  0x8c   :  { %v19563_v38 = vpack.c.bf16 %v22627_v45, %v22626_v18  ;;  %v19581_v18 = vld [vmem:[#allocation2 + $0x1b8] sm:$0xff]  ;;  %v22635_v45 = vand.u32 4294901760, %v19434_v51 }
  0x8d   :  { %15266 = vmatpush1.bf16.msra.mxu1 %v19492_v14  ;;  %15362 = vmatpush1.bf16.msra.mxu0 %v22625_v42  ;;  %v22629_v14 = vand.u32 4294901760, %v19512_v41  ;;  %v22630_v42 = vand.u32 4294901760, %v19514_v50 }
  0x8e   :  { %15364 = vmatprep.subr.bf16.mxu1 %v19498_v36  ;;  %22628 = vst [vmem:[#allocation73_spill] sm:$0xff] %v19563_v38  ;;  %15556 = vmatprep.subr.bf16.mxu0 %v18845_v16  ;;  %v22632_v36 = vand.u32 4294901760, %v19520_v12  ;;  %v19586_v38 = vsub.f32 %v19434_v51, %v22635_v45  ;;  %v19603_v51 = vsub.f32 %v19456_v24, %v1023_v60 }
  0x8f   :  { %v19569_v35 = vpack.c.bf16 %v22630_v42, %v22629_v14  ;;  %v22636_v14 = vand.u32 4294901760, %v19436_v44  ;;  %v19606_v45 = vsub.f32 %v19458_v25, %v1027_v22  ;;  %v19626_v24 = vsub.f32 %v19468_v30, %v1033_v7 }
  0x90   :  { %v19579_v55 = vpack.c.bf16 %v22633_v17, %v22632_v36  ;;  %636 = vmatmul.mubr.f32.vlgmr.msra.gmra.mrb[0].mxu1 %v22559_v29  ;;  %1009 = vmatmul.mubr.f32.vlgmr.msra.gmra.mrb[0].mxu0 %v22559_v29  ;;  %v19600_v36 = vsub.f32 %v19454_v34, %v1021_v3  ;;  %v19618_v3 = vsub.f32 %v19464_v10, %v1031_v28  ;;  %v22327_v52 = vand.u32 4294901760, %v19586_v38 }
  0x91   :  { %22631 = vst [vmem:[#allocation74_spill] sm:$0xff] %v19569_v35  ;;  %v19591_v42 = vsub.f32 %v19436_v44, %v22636_v14  ;;  %15366 = vmatpush1.bf16.msra.mxu1 %v19540_v57  ;;  %1111 = vmatprep.mubr.f32.mxu1 %v22559_v29  ;;  %v19623_v34 = vsub.f32 %v19466_v11, %v1035_v4  ;;  %v22321_v7 = vand.u32 4294901760, %v19594_v46  ;;  %v22315_v1 = vand.u32 4294901760, %v19603_v51 }
  0x92   :  { %22634 = vst [vmem:[#allocation75_spill] sm:$0xff] %v19579_v55  ;;  %15368 = vmatprep.subr.bf16.mxu1 %v19542_v40  ;;  %v19629_v25 = vsub.f32 %v19470_v61, %v1037_v26  ;;  %15558 = vmatpush1.bf16.msra.mxu0 %v22592_v37  ;;  %v22318_v26 = vand.u32 4294901760, %v19600_v36  ;;  %v19645_v4 = vsub.f32 %v19486_v53, %v1041_v21  ;;  %v22314_v5 = vand.u32 4294901760, %v19606_v45 }
  0x93   :  { %v22322_v28 = vand.u32 4294901760, %v19591_v42  ;;  %15560 = vmatprep.subr.bf16.mxu0 %v22594_v48  ;;  %1996 = vmatprep.mubr.f32.mxu0 %v22559_v29  ;;  %v19648_v10 = vsub.f32 %v19502_v20, %v1045_v54  ;;  %v22320_v11 = vand.u32 4294901760, %v19618_v3  ;;  %v22319_v53 = vand.u32 4294901760, %v19623_v34 }
  0x94   :  { %v22324_v21 = vand.u32 4294901760, %v19626_v24  ;;  %v22323_v20 = vand.u32 4294901760, %v19629_v25  ;;  %v22637_v61 = vand.u32 4294901760, %v19504_v0  ;;  %v19670_v14 = vsub.f32 %v19506_v56, %v22638_v23 }
  0x95   :  { %15370 = vmatpush1.bf16.msra.mxu1 %v19544_v19  ;;  %v22326_v60 = vand.u32 4294901760, %v19645_v4  ;;  %v22325_v44 = vand.u32 4294901760, %v19648_v10  ;;  %v22639_v17 = vand.u32 4294901760, %v19512_v41  ;;  %v22640_v54 = vand.u32 4294901760, %v19514_v50 }
  0x96   :  { %15372 = vmatprep.subr.bf16.mxu1 %v19548_v32  ;;  %v19665_v22 = vsub.f32 %v19504_v0, %v22637_v61  ;;  %15562 = vmatpush1.bf16.msra.mxu0 %v22597_v9  ;;  %v19691_v56 = vpack.c.bf16 %v22322_v28, %v22327_v52  ;;  %v163_v61 = vld [vmem:[#allocation2 + $0x1b0] sm:$0xff]  ;;  %v19716_v23 = vpack.c.bf16 %v22319_v53, %v22320_v11  ;;  %v168_v53 = vld [vmem:[#allocation2 + $0x1d8] sm:$0xff]  ;;  %v22653_v52 = vand.u32 4294901760, %v19538_v13 }
  0x97   :  { %v19678_v30 = vsub.f32 %v19512_v41, %v22639_v17  ;;  %v19683_v0 = vsub.f32 %v19514_v50, %v22640_v54  ;;  %15564 = vmatprep.subr.bf16.mxu0 %v22599_v47  ;;  %v19697_v41 = vpack.c.bf16 %v22318_v26, %v22321_v7  ;;  %v19703_v50 = vpack.c.bf16 %v22314_v5, %v22315_v1  ;;  %v159_v54 = vld [vmem:[#allocation2 + $0x190] sm:$0xff]  ;;  %v172_v11 = vld [vmem:[#allocation2 + $0x1f8] sm:$0xff] }
  0x98   :  { %22641 = vst [vmem:[#allocation76_spill] sm:$0xff] %v19691_v56  ;;  %v19709_v17 = vpack.c.bf16 %v22316_v43, %v22317_v58  ;;  %22645 = vst [vmem:[#allocation80_spill] sm:$0xff] %v19716_v23  ;;  %v19722_v5 = vpack.c.bf16 %v22323_v20, %v22324_v21  ;;  %v22647_v1 = vand.u32 4294901760, %v19635_v27  ;;  %v22648_v43 = vand.u32 4294901760, %v19638_v49 }
  0x99   :  { %15374 = vmatpush1.bf16.msra.mxu1 %v19550_v15  ;;  %22642 = vst [vmem:[#allocation77_spill] sm:$0xff] %v19697_v41  ;;  %22643 = vst [vmem:[#allocation78_spill] sm:$0xff] %v19703_v50  ;;  %v19734_v26 = vpack.c.bf16 %v22325_v44, %v22326_v60  ;;  %v22651_v20 = vand.u32 4294901760, %v19520_v12  ;;  %v19754_v28 = vsub.f32 %v19538_v13, %v22653_v52  ;;  %v22654_v7 = vand.u32 4294901760, %v19554_v59 }
  0x9a   :  { %22644 = vst [vmem:[#allocation79_spill] sm:$0xff] %v19709_v17  ;;  %15376 = vmatprep.subr.bf16.mxu1 %v19552_v8  ;;  %22646 = vst [vmem:[#allocation81_spill] sm:$0xff] %v19722_v5  ;;  %v19728_v58 = vpack.c.bf16 %v22648_v43, %v22647_v1  ;;  %v22652_v1 = vand.u32 4294901760, %v19522_v2  ;;  %15566 = vmatpush1.bf16.msra.mxu0 %v22602_v6  ;;  %v1065_v60 = vand.u32 4294901760, %v159_v54  ;;  %v1069_v44 = vand.u32 4294901760, %v163_v61  ;;  %v22669_v5 = vld [vmem:[#allocation15_spill] sm:$0xff] }
  0x9b   :  { %22650 = vst [vmem:[#allocation83_spill] sm:$0xff] %v19734_v26  ;;  %v19741_v21 = vsub.f32 %v19520_v12, %v22651_v20  ;;  %v19759_v12 = vsub.f32 %v19554_v59, %v22654_v7  ;;  %15568 = vmatprep.subr.bf16.mxu0 %v22604_v31  ;;  %v22656_v20 = vmov %v22654_v7  ;;  %v22659_v6 = vand.u32 4294901760, %v19670_v14  ;;  %v22661_v7 = vld [vmem:[#allocation73_spill] sm:$0xff] }
  0x9c   :  { %22649 = vst [vmem:[#allocation82_spill] sm:$0xff] %v19728_v58  ;;  %v19746_v43 = vsub.f32 %v19522_v2, %v22652_v1  ;;  %v22655_v2 = vmov %v22653_v52  ;;  %v22658_v52 = vand.u32 4294901760, %v19665_v22  ;;  %v22662_v31 = vand.u32 4294901760, %v19572_v62 }
  0x9d   :  { %15378 = vmatpush1.bf16.msra.mxu1 %v19557_v33  ;;  %v19767_v1 = vpack.c.bf16 %v22656_v20, %v22655_v2  ;;  %v22663_v9 = vand.u32 4294901760, %v19581_v18  ;;  %v1071_v13 = vand.u32 4294901760, %v168_v53  ;;  %v1075_v59 = vand.u32 4294901760, %v172_v11  ;;  %v167_v2 = vld [vmem:[#allocation2 + $0x1d0] sm:$0xff] }
  0x9e   :  { %v19773_v47 = vpack.c.bf16 %v22659_v6, %v22658_v52  ;;  %15380 = vmatprep.subr.bf16.mxu1 %v22661_v7  ;;  %v171_v20 = vld [vmem:[#allocation2 + $0x1f0] sm:$0xff]  ;;  %v22665_v37 = vand.u32 4294901760, %v19678_v30  ;;  %v22666_v16 = vand.u32 4294901760, %v19683_v0  ;;  %15570 = vmatpush1.bf16.msra.mxu0 %v22669_v5  ;;  %v19805_v6 = vsub.f32 %v163_v61, %v1069_v44  ;;  %v22670_v52 = vld [vmem:[#allocation16_spill] sm:$0xff] }
  0x9f   :  { %22657 = vst [vmem:[#allocation84_spill] sm:$0xff] %v19767_v1  ;;  %v19780_v48 = vpack.c.bf16 %v22663_v9, %v22662_v31  ;;  %15572 = vmatprep.subr.bf16.mxu0 %v22670_v52  ;;  %v22673_v23 = vand.u32 4294901760, %v19746_v43  ;;  %v22677_v17 = vand.u32 4294901760, %v19600_v36  ;;  %v22678_v50 = vand.u32 4294901760, %v19754_v28 }
  0xa0   :  { %22660 = vst [vmem:[#allocation85_spill] sm:$0xff] %v19773_v47  ;;  %v19786_v26 = vpack.c.bf16 %v22666_v16, %v22665_v37  ;;  %v22668_v47 = vmov %v22662_v31  ;;  %v19798_v31 = vsub.f32 %v19581_v18, %v22663_v9  ;;  %v19803_v37 = vsub.f32 %v159_v54, %v1065_v60 }
  0xa1   :  { %22664 = vst [vmem:[#allocation86_spill] sm:$0xff] %v19780_v48  ;;  %v19793_v58 = vsub.f32 %v19572_v62, %v22668_v47  ;;  %15382 = vmatpush1.bf16.msra.mxu1 %v19569_v35  ;;  %v1073_v47 = vand.u32 4294901760, %v167_v2  ;;  %v1077_v62 = vand.u32 4294901760, %v171_v20  ;;  %v22672_v9 = vand.u32 4294901760, %v19741_v21 }
  0xa2   :  { %22667 = vst [vmem:[#allocation87_spill] sm:$0xff] %v19786_v26  ;;  %v22671_v26 = vand.u32 4294901760, %v19586_v38  ;;  %15384 = vmatprep.subr.bf16.mxu1 %v19579_v55  ;;  %v22675_v54 = vand.u32 4294901760, %v19591_v42  ;;  %v22676_v16 = vand.u32 4294901760, %v19594_v46  ;;  %v22679_v41 = vand.u32 4294901760, %v19759_v12  ;;  %v22681_v55 = vld [vmem:[#allocation17_spill] sm:$0xff] }
  0xa3   :  { %v19816_v5 = vpack.c.bf16 %v22673_v23, %v22672_v9  ;;  %v22352_v9 = vand.u32 4294901760, %v19793_v58  ;;  %v19836_v56 = vsub.f32 %v168_v53, %v1071_v13  ;;  %15574 = vmatpush1.bf16.msra.mxu0 %v22681_v55  ;;  %v19843_v35 = vsub.f32 %v167_v2, %v1073_v47  ;;  %v22693_v55 = vld [vmem:[#allocation19_spill] sm:$0xff] }
  0xa4   :  { %v1121_v18 = vsub.f32 %v19586_v38, %v22671_v26  ;;  %v1133_v61 = vsub.f32 %v19591_v42, %v22675_v54  ;;  %v1127_v52 = vsub.f32 %v19594_v46, %v22676_v16  ;;  %v1139_v26 = vsub.f32 %v19600_v36, %v22677_v17 }
  0xa5   :  { %22674 = vst [vmem:[#allocation88_spill] sm:$0xff] %v19816_v5  ;;  %v19832_v23 = vpack.c.bf16 %v22679_v41, %v22678_v50  ;;  %v22351_v5 = vand.u32 4294901760, %v19798_v31  ;;  %v19838_v54 = vsub.f32 %v172_v11, %v1075_v59  ;;  %v19845_v7 = vsub.f32 %v171_v20, %v1077_v62  ;;  %v22682_v41 = vld [vmem:[#allocation18_spill] sm:$0xff]  ;;  %15386 = vmatpush1.bf16.msra.mxu1 %v19767_v1 }
  0xa6   :  { %15576 = vmatprep.subr.bf16.mxu0 %v22682_v41  ;;  %v19849_v50 = vpack.c.bf16 %v1069_v44, %v1065_v60  ;;  %v19851_v53 = vpack.c.bf16 %v1075_v59, %v1071_v13  ;;  %v1122_v11 = vand.u32 4294901760, %v1121_v18  ;;  %15388 = vmatprep.subr.bf16.mxu1 %v19780_v48  ;;  %v1134_v2 = vand.u32 4294901760, %v1133_v61 }
  0xa7   :  { %22680 = vst [vmem:[#allocation89_spill] sm:$0xff] %v19832_v23  ;;  %v19857_v16 = vpack.c.bf16 %v22351_v5, %v22352_v9  ;;  %v22686_v20 = vand.u32 4294901760, %v19603_v51  ;;  %v22687_v41 = vand.u32 4294901760, %v19606_v45  ;;  %v22688_v60 = vand.u32 4294901760, %v19803_v37  ;;  %15578 = vmatpush1.bf16.msra.mxu0 %v22693_v55 }
  0xa8   :  { %22683 = vst [vmem:[#allocation90_spill] sm:$0xff] %v19849_v50  ;;  %22684 = vst [vmem:[#allocation91_spill] sm:$0xff] %v19851_v53  ;;  %v22689_v13 = vand.u32 4294901760, %v19805_v6  ;;  %v19872_v18 = vpack.c.bf16 %v1077_v62, %v1073_v47  ;;  %v22692_v5 = vand.u32 4294901760, %v19612_v39  ;;  %v22362_v9 = vand.u32 4294901760, %v19836_v56 }
  0xa9   :  { %22685 = vst [vmem:[#allocation92_spill] sm:$0xff] %v19857_v16  ;;  %v1145_v17 = vsub.f32 %v19603_v51, %v22686_v20  ;;  %v1157_v44 = vsub.f32 %v19606_v45, %v22687_v41  ;;  %v1128_v16 = vand.u32 4294901760, %v1127_v52  ;;  %v1140_v41 = vand.u32 4294901760, %v1139_v26  ;;  %15390 = vmatpush1.bf16.msra.mxu1 %v19849_v50  ;;  %v22704_v50 = vld [vmem:[#allocation21_spill] sm:$0xff] }
  0xaa   :  { %v19870_v59 = vpack.c.bf16 %v22689_v13, %v22688_v60  ;;  %22691 = vst [vmem:[#allocation94_spill] sm:$0xff] %v19872_v18  ;;  %v1151_v61 = vsub.f32 %v19612_v39, %v22692_v5  ;;  %v22694_v60 = vld [vmem:[#allocation20_spill] sm:$0xff]  ;;  %v22695_v47 = vand.u32 4294901760, %v19615_v63  ;;  %v22696_v62 = vand.u32 4294901760, %v19618_v3  ;;  %15392 = vmatprep.subr.bf16.mxu1 %v19851_v53 }
  0xab   :  { %15580 = vmatprep.subr.bf16.mxu0 %v22694_v60  ;;  %v22697_v20 = vand.u32 4294901760, %v19623_v34  ;;  %v22698_v26 = vand.u32 4294901760, %v19838_v54  ;;  %v19900_v23 = vpack.c.bf16 %v1134_v2, %v1122_v11  ;;  %v1146_v60 = vand.u32 4294901760, %v1145_v17  ;;  %v22707_v2 = vld [vmem:[#allocation22_spill] sm:$0xff] }
  0xac   :  { %22690 = vst [vmem:[#allocation93_spill] sm:$0xff] %v19870_v59  ;;  %v1163_v5 = vsub.f32 %v19615_v63, %v22695_v47  ;;  %v1169_v13 = vsub.f32 %v19618_v3, %v22696_v62  ;;  %v1158_v47 = vand.u32 4294901760, %v1157_v44  ;;  %v22701_v55 = vand.u32 4294901760, %v19843_v35  ;;  %15582 = vmatpush1.bf16.msra.mxu0 %v22704_v50 }
  0xad   :  { %v1181_v52 = vsub.f32 %v19623_v34, %v22697_v20  ;;  %v19897_v48 = vpack.c.bf16 %v22698_v26, %v22362_v9  ;;  %22700 = vst [vmem:[#allocation96_spill] sm:$0xff] %v19900_v23  ;;  %v22702_v62 = vand.u32 4294901760, %v19845_v7  ;;  %v1152_v20 = vand.u32 4294901760, %v1151_v61  ;;  %15584 = vmatprep.subr.bf16.mxu0 %v22707_v2  ;;  %15394 = vmatpush1.bf16.msra.mxu1 %v19872_v18  ;;  %v22712_v2 = vld [vmem:[#allocation24_spill] sm:$0xff] }
  0xae   :  { %v22705_v1 = vand.u32 4294901760, %v19626_v24  ;;  %v22706_v9 = vand.u32 4294901760, %v19629_v25  ;;  %v19917_v17 = vpack.c.bf16 %v1140_v41, %v1128_v16  ;;  %v1164_v44 = vand.u32 4294901760, %v1163_v5  ;;  %15396 = vmatprep.subr.bf16.mxu1 %v19900_v23 }
  0xaf   :  { %22699 = vst [vmem:[#allocation95_spill] sm:$0xff] %v19897_v48  ;;  %v19906_v59 = vpack.c.bf16 %v22702_v62, %v22701_v55  ;;  %v1170_v55 = vand.u32 4294901760, %v1169_v13  ;;  %v1182_v62 = vand.u32 4294901760, %v1181_v52  ;;  %v19920_v61 = vpack.c.bf16 %v1158_v47, %v1146_v60  ;;  %v22715_v47 = vld [vmem:[#allocation28_spill] sm:$0xff] }
  0xb0   :  { %v1175_v26 = vsub.f32 %v19626_v24, %v22705_v1  ;;  %v1187_v11 = vsub.f32 %v19629_v25, %v22706_v9  ;;  %22708 = vst [vmem:[#allocation98_spill] sm:$0xff] %v19917_v17  ;;  %v22710_v50 = vand.u32 4294901760, %v19635_v27  ;;  %15586 = vmatpush1.bf16.msra.mxu0 %v22712_v2  ;;  %1112 = vmatmul.mubr.f32.vlgmr.msra.gmra.mrb[2].mxu1 %v22559_v29  ;;  %v22713_v5 = vand.u32 4294901760, %v19645_v4 }
  0xb1   :  { %22703 = vst [vmem:[#allocation97_spill] sm:$0xff] %v19906_v59  ;;  %22709 = vst [vmem:[#allocation99_spill] sm:$0xff] %v19920_v61  ;;  %v22711_v59 = vand.u32 4294901760, %v19638_v49  ;;  %v22714_v60 = vand.u32 4294901760, %v19648_v10  ;;  %15588 = vmatprep.subr.bf16.mxu0 %v22715_v47  ;;  %15398 = vmatpush1.bf16.msra.mxu1 %v19917_v17  ;;  %v22728_v17 = vand.u32 4294901760, %v19759_v12 }
  0xb2   :  { %v1193_v1 = vsub.f32 %v19635_v27, %v22710_v50  ;;  %v1176_v16 = vand.u32 4294901760, %v1175_v26  ;;  %v1188_v41 = vand.u32 4294901760, %v1187_v11  ;;  %v1199_v13 = vsub.f32 %v19645_v4, %v22713_v5  ;;  %1342 = vmatprep.mubr.f32.mxu1 %v22559_v29  ;;  %15400 = vmatprep.subr.bf16.mxu1 %v19920_v61 }
  0xb3   :  { %v1205_v9 = vsub.f32 %v19638_v49, %v22711_v59  ;;  %v1211_v52 = vsub.f32 %v19648_v10, %v22714_v60  ;;  %v19938_v50 = vpack.c.bf16 %v1164_v44, %v1152_v20  ;;  %v19940_v59 = vpack.c.bf16 %v1182_v62, %v1170_v55 }
  0xb4   :  { %v1194_v26 = vand.u32 4294901760, %v1193_v1  ;;  %v22718_v5 = vand.u32 4294901760, %v19665_v22  ;;  %v22719_v60 = vand.u32 4294901760, %v19670_v14  ;;  %v19950_v23 = vpack.c.bf16 %v1188_v41, %v1176_v16 }
  0xb5   :  { %22716 = vst [vmem:[#allocation100_spill] sm:$0xff] %v19938_v50  ;;  %22717 = vst [vmem:[#allocation101_spill] sm:$0xff] %v19940_v59  ;;  %v1206_v11 = vand.u32 4294901760, %v1205_v9  ;;  %v1200_v20 = vand.u32 4294901760, %v1199_v13  ;;  %v1212_v44 = vand.u32 4294901760, %v1211_v52  ;;  %15402 = vmatpush1.bf16.msra.mxu1 %v19938_v50  ;;  %v22721_v55 = vand.u32 4294901760, %v19678_v30 }
  0xb6   :  { %v1217_v2 = vsub.f32 %v19665_v22, %v22718_v5  ;;  %v1229_v47 = vsub.f32 %v19670_v14, %v22719_v60  ;;  %22720 = vst [vmem:[#allocation102_spill] sm:$0xff] %v19950_v23  ;;  %v22722_v1 = vand.u32 4294901760, %v19683_v0  ;;  %v22723_v5 = vand.u32 4294901760, %v19741_v21  ;;  %15404 = vmatprep.subr.bf16.mxu1 %v19940_v59 }
  0xb7   :  { %v1223_v62 = vsub.f32 %v19678_v30, %v22721_v55  ;;  %v22724_v60 = vand.u32 4294901760, %v19746_v43  ;;  %v19966_v41 = vpack.c.bf16 %v1206_v11, %v1194_v26  ;;  %v19968_v50 = vpack.c.bf16 %v1212_v44, %v1200_v20 }
  0xb8   :  { %v1235_v9 = vsub.f32 %v19683_v0, %v22722_v1  ;;  %v1241_v61 = vsub.f32 %v19741_v21, %v22723_v5  ;;  %v1218_v13 = vand.u32 4294901760, %v1217_v2  ;;  %v1230_v52 = vand.u32 4294901760, %v1229_v47 }
  0xb9   :  { %v1253_v16 = vsub.f32 %v19746_v43, %v22724_v60  ;;  %22725 = vst [vmem:[#allocation103_spill] sm:$0xff] %v19966_v41  ;;  %22726 = vst [vmem:[#allocation104_spill] sm:$0xff] %v19968_v50  ;;  %v22727_v55 = vand.u32 4294901760, %v19754_v28  ;;  %v1259_v5 = vsub.f32 %v19759_v12, %v22728_v17  ;;  %15406 = vmatpush1.bf16.msra.mxu1 %v19950_v23  ;;  %v1224_v48 = vand.u32 4294901760, %v1223_v62 }
  0xba   :  { %v1236_v60 = vand.u32 4294901760, %v1235_v9  ;;  %v1242_v18 = vand.u32 4294901760, %v1241_v61  ;;  %15408 = vmatprep.subr.bf16.mxu1 %v19966_v41  ;;  %v19978_v2 = vpack.c.bf16 %v1230_v52, %v1218_v13  ;;  %v22730_v47 = vand.u32 4294901760, %v19793_v58 }
  0xbb   :  { %v1247_v1 = vsub.f32 %v19754_v28, %v22727_v55  ;;  %v1254_v59 = vand.u32 4294901760, %v1253_v16  ;;  %v22731_v11 = vand.u32 4294901760, %v19798_v31  ;;  %v1260_v17 = vand.u32 4294901760, %v1259_v5 }
  0xbc   :  { %22729 = vst [vmem:[#allocation105_spill] sm:$0xff] %v19978_v2  ;;  %v1265_v26 = vsub.f32 %v19793_v58, %v22730_v47  ;;  %v19987_v62 = vpack.c.bf16 %v1236_v60, %v1224_v48  ;;  %v22734_v9 = vand.u32 4294901760, %v19803_v37  ;;  %v22735_v13 = vand.u32 4294901760, %v19805_v6 }
  0xbd   :  { %v1277_v20 = vsub.f32 %v19798_v31, %v22731_v11  ;;  %v1248_v44 = vand.u32 4294901760, %v1247_v1  ;;  %15410 = vmatpush1.bf16.msra.mxu1 %v19968_v50  ;;  %v19989_v61 = vpack.c.bf16 %v1254_v59, %v1242_v18  ;;  %v22736_v1 = vand.u32 4294901760, %v19836_v56 }
  0xbe   :  { %22732 = vst [vmem:[#allocation106_spill] sm:$0xff] %v19987_v62  ;;  %v1271_v16 = vsub.f32 %v19803_v37, %v22734_v9  ;;  %v1283_v52 = vsub.f32 %v19805_v6, %v22735_v13  ;;  %15412 = vmatprep.subr.bf16.mxu1 %v19978_v2  ;;  %v1266_v55 = vand.u32 4294901760, %v1265_v26  ;;  %v22737_v48 = vand.u32 4294901760, %v19838_v54 }
  0xbf   :  { %22733 = vst [vmem:[#allocation107_spill] sm:$0xff] %v19989_v61  ;;  %v1278_v47 = vand.u32 4294901760, %v1277_v20  ;;  %v1289_v5 = vsub.f32 %v19836_v56, %v22736_v1  ;;  %v20004_v59 = vpack.c.bf16 %v1260_v17, %v1248_v44  ;;  %v22739_v9 = vand.u32 4294901760, %v19843_v35 }
  0xc0   :  { %v1301_v18 = vsub.f32 %v19838_v54, %v22737_v48  ;;  %v1272_v60 = vand.u32 4294901760, %v1271_v16  ;;  %v1284_v11 = vand.u32 4294901760, %v1283_v52  ;;  %v22740_v26 = vand.u32 4294901760, %v19845_v7 }
  0xc1   :  { %22738 = vst [vmem:[#allocation108_spill] sm:$0xff] %v20004_v59  ;;  %15414 = vmatpush1.bf16.msra.mxu1 %v19987_v62  ;;  %v1295_v13 = vsub.f32 %v19843_v35, %v22739_v9  ;;  %v20014_v1 = vpack.c.bf16 %v1278_v47, %v1266_v55  ;;  %v1290_v2 = vand.u32 4294901760, %v1289_v5  ;;  %v20028_v55 = vpack.c.bf16 %v19591_v42, %v19586_v38  ;;  %v22777_v5 = vld [vmem:[#allocation85_spill] sm:$0xff] }
  0xc2   :  { %v1307_v20 = vsub.f32 %v19845_v7, %v22740_v26  ;;  %15416 = vmatprep.subr.bf16.mxu1 %v19989_v61  ;;  %v1302_v48 = vand.u32 4294901760, %v1301_v18  ;;  %v20017_v44 = vpack.c.bf16 %v1284_v11, %v1272_v60  ;;  %v20033_v47 = vpack.c.bf16 %v19600_v36, %v19594_v46  ;;  %v22778_v18 = vld [vmem:[#allocation87_spill] sm:$0xff]  ;;  %v22779_v60 = vld [vmem:[#allocation88_spill] sm:$0xff]  ;;  %v22780_v11 = vld [vmem:[#allocation89_spill] sm:$0xff] }
  0xc3   :  { %22741 = vst [vmem:[#allocation109_spill] sm:$0xff] %v20014_v1  ;;  %v1296_v17 = vand.u32 4294901760, %v1295_v13  ;;  %22745 = vst [vmem:[#allocation113_spill] sm:$0xff] %v20028_v55  ;;  %v20044_v38 = vpack.c.bf16 %v19615_v63, %v19612_v39  ;;  %v20050_v46 = vpack.c.bf16 %v19623_v34, %v19618_v3  ;;  %v20055_v42 = vpack.c.bf16 %v19629_v25, %v19626_v24  ;;  %v22781_v13 = vld [vmem:[#allocation92_spill] sm:$0xff]  ;;  %v22782_v26 = vld [vmem:[#allocation93_spill] sm:$0xff] }
  0xc4   :  { %22742 = vst [vmem:[#allocation110_spill] sm:$0xff] %v20017_v44  ;;  %v1308_v16 = vand.u32 4294901760, %v1307_v20  ;;  %v20020_v52 = vpack.c.bf16 %v1302_v48, %v1290_v2  ;;  %22746 = vst [vmem:[#allocation114_spill] sm:$0xff] %v20033_v47  ;;  %v20038_v2 = vpack.c.bf16 %v19606_v45, %v19603_v51  ;;  %v20060_v36 = vpack.c.bf16 %v19638_v49, %v19635_v27  ;;  %v22761_v27 = vld [vmem:[#allocation72_spill] sm:$0xff]  ;;  %v22763_v49 = vld [vmem:[#allocation74_spill] sm:$0xff] }
  0xc5   :  { %15418 = vmatpush1.bf16.msra.mxu1 %v20004_v59  ;;  %22748 = vst [vmem:[#allocation116_spill] sm:$0xff] %v20044_v38  ;;  %22749 = vst [vmem:[#allocation117_spill] sm:$0xff] %v20050_v46  ;;  %v20065_v51 = vpack.c.bf16 %v19648_v10, %v19645_v4  ;;  %v20070_v45 = vpack.c.bf16 %v19670_v14, %v19665_v22  ;;  %v20075_v39 = vpack.c.bf16 %v19683_v0, %v19678_v30  ;;  %v22764_v4 = vld [vmem:[#allocation75_spill] sm:$0xff]  ;;  %v14830_v10 = vld [vmem:[%s22153_s0 + $0x8] sm:$0xff] }
  0xc6   :  { %15420 = vmatprep.subr.bf16.mxu1 %v20014_v1  ;;  %22743 = vst [vmem:[#allocation111_spill] sm:$0xff] %v20020_v52  ;;  %v20023_v9 = vpack.c.bf16 %v1308_v16, %v1296_v17  ;;  %22747 = vst [vmem:[#allocation115_spill] sm:$0xff] %v20038_v2  ;;  %v20080_v63 = vpack.c.bf16 %v19746_v43, %v19741_v21  ;;  %v20085_v3 = vpack.c.bf16 %v19759_v12, %v19754_v28  ;;  %v14842_v21 = vld [vmem:[%s22153_s0 + $0x20] sm:$0xff]  ;;  %v22766_v30 = vld [vmem:[#allocation86_spill] sm:$0xff] }
  0xc7   :  { %22750 = vst [vmem:[#allocation118_spill] sm:$0xff] %v20055_v42  ;;  %22751 = vst [vmem:[#allocation119_spill] sm:$0xff] %v20060_v36  ;;  %v20090_v34 = vpack.c.bf16 %v19798_v31, %v19793_v58  ;;  %v20095_v24 = vpack.c.bf16 %v19805_v6, %v19803_v37  ;;  %v20100_v25 = vpack.c.bf16 %v19838_v54, %v19836_v56  ;;  %1889 = vperm.xlu0 %18568, %v14830_v10   ;;  %v22765_v58 = vld [vmem:[#allocation84_spill] sm:$0xff]  ;;  %v22767_v22 = vld [vmem:[#allocation90_spill] sm:$0xff] }
  0xc8   :  { %22744 = vst [vmem:[#allocation112_spill] sm:$0xff] %v20023_v9  ;;  %22752 = vst [vmem:[#allocation120_spill] sm:$0xff] %v20065_v51  ;;  %v20105_v28 = vpack.c.bf16 %v19845_v7, %v19843_v35  ;;  %v22762_v35 = vld [vmem:[#allocation73_spill] sm:$0xff]  ;;  %v14850_v14 = vld [vmem:[%s22153_s0 + $0x30] sm:$0xff] }
  0xc9   :  { %15422 = vmatpush1.bf16.msra.mxu1 %v20017_v44  ;;  %22753 = vst [vmem:[#allocation121_spill] sm:$0xff] %v20070_v45  ;;  %22754 = vst [vmem:[#allocation122_spill] sm:$0xff] %v20075_v39  ;;  %v22768_v0 = vld [vmem:[#allocation94_spill] sm:$0xff]  ;;  %v22769_v56 = vld [vmem:[#allocation76_spill] sm:$0xff] }
  0xca   :  { %15424 = vmatprep.subr.bf16.mxu1 %v20020_v52  ;;  %22755 = vst [vmem:[#allocation123_spill] sm:$0xff] %v20080_v63  ;;  %22756 = vst [vmem:[#allocation124_spill] sm:$0xff] %v20085_v3  ;;  %v22770_v43 = vld [vmem:[#allocation77_spill] sm:$0xff]  ;;  %v22771_v12 = vld [vmem:[#allocation78_spill] sm:$0xff] }
  0xcb   :  { %22757 = vst [vmem:[#allocation125_spill] sm:$0xff] %v20090_v34  ;;  %22758 = vst [vmem:[#allocation126_spill] sm:$0xff] %v20095_v24  ;;  %7148 = vperm.xlu0 %18568, %v14842_v21   ;;  %v22772_v7 = vld [vmem:[#allocation79_spill] sm:$0xff]  ;;  %v22773_v6 = vld [vmem:[#allocation80_spill] sm:$0xff] }
  0xcc   :  { %22759 = vst [vmem:[#allocation127_spill] sm:$0xff] %v20100_v25  ;;  %22760 = vst [vmem:[#allocation128_spill] sm:$0xff] %v20105_v28  ;;  %v22774_v31 = vld [vmem:[#allocation81_spill] sm:$0xff]  ;;  %v22775_v37 = vld [vmem:[#allocation82_spill] sm:$0xff] }
  0xcd   :  { %15426 = vmatpush1.bf16.msra.mxu1 %v20023_v9  ;;  %v22776_v54 = vld [vmem:[#allocation83_spill] sm:$0xff]  ;;  %v22784_v48 = vld [vmem:[#allocation97_spill] sm:$0xff] }
  0xce   :  { %15428 = vmatprep.subr.bf16.mxu1 %v20028_v55  ;;  %v22783_v20 = vld [vmem:[#allocation95_spill] sm:$0xff] }
  0xcf   :  { %10654 = vperm.xlu0 %18568, %v14850_v14  }
  0xd0   :  { %1343 = vmatmul.mubr.f32.vlgmr.msra.gmra.mrb[2].mxu1 %v22559_v29 }
  0xd1   :  { %15430 = vmatpush1.bf16.msra.mxu1 %v20033_v47  ;;  %1477 = vmatprep.mubr.f32.mxu1 %v22559_v29 }
  0xd2   :  { %15432 = vmatprep.subr.bf16.mxu1 %v20038_v2 }
  0xd5   :  { %15434 = vmatpush1.bf16.msra.mxu1 %v20044_v38 }
  0xd6   :  { %15436 = vmatprep.subr.bf16.mxu1 %v20050_v46 }
  0xd9   :  { %15438 = vmatpush1.bf16.msra.mxu1 %v20055_v42 }
  0xda   :  { %15440 = vmatprep.subr.bf16.mxu1 %v20060_v36 }
  0xdd   :  { %15442 = vmatpush1.bf16.msra.mxu1 %v20065_v51 }
  0xde   :  { %15444 = vmatprep.subr.bf16.mxu1 %v20070_v45 }
  0xe1   :  { %15446 = vmatpush1.bf16.msra.mxu1 %v20075_v39 }
  0xe2   :  { %15448 = vmatprep.subr.bf16.mxu1 %v20080_v63 }
  0xe5   :  { %15450 = vmatpush1.bf16.msra.mxu1 %v20085_v3 }
  0xe6   :  { %15452 = vmatprep.subr.bf16.mxu1 %v20090_v34 }
  0xe9   :  { %15454 = vmatpush1.bf16.msra.mxu1 %v20095_v24 }
  0xea   :  { %15456 = vmatprep.subr.bf16.mxu1 %v20100_v25 }
  0xed   :  { %15458 = vmatpush1.bf16.msra.mxu1 %v20105_v28 }
  0xee   :  { %15460 = vmatprep.subr.bf16.mxu1 %v22761_v27 }
  0xf0   :  { %1478 = vmatmul.mubr.f32.vlgmr.msra.gmra.mrb[2].mxu1 %v22559_v29 }
  0xf1   :  { %15462 = vmatpush1.bf16.msra.mxu1 %v19540_v57  ;;  %1580 = vmatprep.mubr.f32.mxu1 %v22559_v29 }
  0xf2   :  { %15464 = vmatprep.subr.bf16.mxu1 %v19542_v40 }
  0xf5   :  { %15466 = vmatpush1.bf16.msra.mxu1 %v19544_v19 }
  0xf6   :  { %15468 = vmatprep.subr.bf16.mxu1 %v19548_v32 }
  0xf9   :  { %15470 = vmatpush1.bf16.msra.mxu1 %v19550_v15 }
  0xfa   :  { %15472 = vmatprep.subr.bf16.mxu1 %v19552_v8 }
  0xfd   :  { %15474 = vmatpush1.bf16.msra.mxu1 %v19557_v33 }
  0xfe   :  { %15476 = vmatprep.subr.bf16.mxu1 %v22762_v35 }
 0x101   :  { %15478 = vmatpush1.bf16.msra.mxu1 %v22763_v49 }
 0x102   :  { %15480 = vmatprep.subr.bf16.mxu1 %v22764_v4 }
 0x105   :  { %15482 = vmatpush1.bf16.msra.mxu1 %v22765_v58 }
 0x106   :  { %15484 = vmatprep.subr.bf16.mxu1 %v22766_v30 }
 0x109   :  { %15486 = vmatpush1.bf16.msra.mxu1 %v22767_v22 }
 0x10a   :  { %15488 = vmatprep.subr.bf16.mxu1 %v19851_v53 }
 0x10d   :  { %15490 = vmatpush1.bf16.msra.mxu1 %v22768_v0 }
 0x10e   :  { %15492 = vmatprep.subr.bf16.mxu1 %v22769_v56 }
 0x110   :  { %1581 = vmatmul.mubr.f32.vlgmr.msra.gmra.mrb[2].mxu1 %v22559_v29 }
 0x111   :  { %15494 = vmatpush1.bf16.msra.mxu1 %v22770_v43  ;;  %1747 = vmatprep.mubr.f32.mxu1 %v22559_v29 }
 0x112   :  { %15496 = vmatprep.subr.bf16.mxu1 %v22771_v12 }
 0x115   :  { %15498 = vmatpush1.bf16.msra.mxu1 %v22772_v7 }
 0x116   :  { %15500 = vmatprep.subr.bf16.mxu1 %v22773_v6 }
 0x119   :  { %15502 = vmatpush1.bf16.msra.mxu1 %v22774_v31 }
 0x11a   :  { %15504 = vmatprep.subr.bf16.mxu1 %v22775_v37 }
 0x11d   :  { %15506 = vmatpush1.bf16.msra.mxu1 %v22776_v54 }
 0x11e   :  { %15508 = vmatprep.subr.bf16.mxu1 %v22777_v5 }
 0x121   :  { %15510 = vmatpush1.bf16.msra.mxu1 %v22778_v18  ;;  %v83_v18 = vld [vmem:[%s22155_s2] sm:$0xf] }
 0x122   :  { %15512 = vmatprep.subr.bf16.mxu1 %v22779_v60  ;;  %v56_v60 = vpop.permute.xlu0 %55 }
 0x125   :  { %15514 = vmatpush1.bf16.msra.mxu1 %v22780_v11 }
 0x126   :  { %15516 = vmatprep.subr.bf16.mxu1 %v22781_v13 }
 0x129   :  { %15518 = vmatpush1.bf16.msra.mxu1 %v22782_v26  ;;  %v59_v26 = vlaneseq }
 0x12a   :  { %15520 = vmatprep.subr.bf16.mxu1 %v22783_v20  ;;  %v22785_v20 = vld [vmem:[#allocation96_spill] sm:$0xff] }
 0x12b   :  { %v60_v13 = vshrl.u32 %v59_v26, 7 }
 0x12d   :  { %15522 = vmatpush1.bf16.msra.mxu1 %v22784_v48  ;;  %v65_v11 = vsub.s32 1, %v60_v13  ;;  %v69_v56 = vsub.s32 2, %v60_v13 }
 0x12e   :  { %15524 = vmatprep.subr.bf16.mxu1 %v22761_v27 }
 0x130   :  { %1748 = vmatmul.mubr.f32.vlgmr.msra.gmra.mrb[2].mxu1 %v22559_v29 }
 0x131   :  { %15526 = vmatpush1.bf16.msra.mxu1 %v19540_v57  ;;  %1850 = vmatprep.mubr.f32.mxu1 %v22559_v29 }
 0x132   :  { %15528 = vmatprep.subr.bf16.mxu1 %v19542_v40 }
 0x135   :  { %15530 = vmatpush1.bf16.msra.mxu1 %v19544_v19 }
 0x136   :  { %15532 = vmatprep.subr.bf16.mxu1 %v19548_v32 }
 0x139   :  { %15534 = vmatpush1.bf16.msra.mxu1 %v19550_v15 }
 0x13a   :  { %15536 = vmatprep.subr.bf16.mxu1 %v19552_v8 }
 0x13d   :  { %15538 = vmatpush1.bf16.msra.mxu1 %v19557_v33 }
 0x13e   :  { %15540 = vmatprep.subr.bf16.mxu1 %v22762_v35 }
 0x141   :  { %15542 = vmatpush1.bf16.msra.mxu1 %v22763_v49 }
 0x142   :  { %15544 = vmatprep.subr.bf16.mxu1 %v22764_v4 }
 0x145   :  { %15546 = vmatpush1.bf16.msra.mxu1 %v22765_v58 }
 0x146   :  { %15548 = vmatprep.subr.bf16.mxu1 %v22766_v30 }
 0x149   :  { %15550 = vmatpush1.bf16.msra.mxu1 %v22767_v22 }
 0x14a   :  { %15552 = vmatprep.subr.bf16.mxu1 %v19851_v53 }
 0x14d   :  { %15554 = vmatpush1.bf16.msra.mxu1 %v22768_v0 }
 0x14e   :  { %15748 = vmatprep.subr.bf16.mxu1 %v22761_v27 }
 0x150   :  { %1851 = vmatmul.mubr.f32.vlgmr.msra.gmra.mrb[2].mxu1 %v22559_v29 }
 0x151   :  { %15750 = vmatpush1.bf16.msra.mxu1 %v19540_v57  ;;  %2851 = vmatprep.mubr.f32.mxu1 %v22559_v29 }
 0x152   :  { %15752 = vmatprep.subr.bf16.mxu1 %v19542_v40 }
 0x155   :  { %15754 = vmatpush1.bf16.msra.mxu1 %v19544_v19 }
 0x156   :  { %15756 = vmatprep.subr.bf16.mxu1 %v19548_v32 }
 0x159   :  { %15758 = vmatpush1.bf16.msra.mxu1 %v19550_v15 }
 0x15a   :  { %15760 = vmatprep.subr.bf16.mxu1 %v19552_v8 }
 0x15d   :  { %15762 = vmatpush1.bf16.msra.mxu1 %v19557_v33 }
 0x15e   :  { %15764 = vmatprep.subr.bf16.mxu1 %v22762_v35 }
 0x161   :  { %15766 = vmatpush1.bf16.msra.mxu1 %v22763_v49 }
 0x162   :  { %15768 = vmatprep.subr.bf16.mxu1 %v22764_v4 }
 0x163   :  { %v637_v17 = vpop.f32.mrb[0].mxu1  ;;  %v1010_v16 = vpop.f32.mrb[0].mxu0 }
 0x164   :  { %v18387_v10 = vadd.f32 %v1010_v16, %v637_v17  ;;  %v639_v21 = vpop.f32.mrb[1].mxu1  ;;  %v1012_v14 = vpop.f32.mrb[1].mxu0  ;;  %v52_v17 = vld [vmem:[%s22154_s1] sm:$0xf]  ;;  %v61_v16 = vsub.s32 0, %v60_v13 }
 0x165   :  { %v18388_v48 = vadd.f32 %v1012_v14, %v639_v21  ;;  %15770 = vmatpush1.bf16.msra.mxu1 %v22765_v58  ;;  %v20194_v21 = vrot.slane %v52_v17, %v65_v11 }
 0x166   :  { %15772 = vmatprep.subr.bf16.mxu1 %v22766_v30  ;;  %v20196_v14 = vrot.slane %v52_v17, %v61_v16  ;;  %v20205_v54 = vrot.slane %v83_v18, %v61_v16 }
 0x167   :  { %22786 = vst [vmem:[#allocation72_spill] sm:$0xff] %v20194_v21  ;;  %v80_v5 = vmul.f32 %v20194_v21, %v56_v60 }
 0x168   :  { %22787 = vst [vmem:[#allocation73_spill] sm:$0xff] %v20196_v14  ;;  %v79_v26 = vmul.f32 %v20196_v14, %v56_v60  ;;  %22789 = vst [vmem:[#allocation75_spill] sm:$0xff] %v20205_v54  ;;  %v20214_v14 = vrot.slane %v83_v18, %v69_v56 }
 0x169   :  { %15774 = vmatpush1.bf16.msra.mxu1 %v22767_v22 }
 0x16a   :  { %15776 = vmatprep.subr.bf16.mxu1 %v19851_v53  ;;  %v105_v31 = vadd.f32 %v20205_v54, %v79_v26  ;;  %v20209_v53 = vrot.slane %v52_v17, %v69_v56 }
 0x16c   :  { %v1857_v7 = vadd.f32 %v18387_v10, %v105_v31  ;;  %22790 = vst [vmem:[#allocation84_spill] sm:$0xff] %v20209_v53  ;;  %v81_v16 = vmul.f32 %v20209_v53, %v56_v60 }
 0x16d   :  { %15778 = vmatpush1.bf16.msra.mxu1 %v22768_v0  ;;  %v73_v0 = vsub.s32 3, %v60_v13 }
 0x16e   :  { %15780 = vmatprep.subr.bf16.mxu1 %v22785_v20  ;;  %v20202_v20 = vrot.slane %v83_v18, %v65_v11  ;;  %v14827_v43 = vmul.f32 -1.442695, %v1857_v7 }
 0x16f   :  { %v20211_v11 = vrot.slane %v52_v17, %v73_v0 }
 0x170   :  { %22788 = vst [vmem:[#allocation74_spill] sm:$0xff] %v20202_v20  ;;  %v106_v37 = vadd.f32 %v20202_v20, %v80_v5 }
 0x171   :  { %22791 = vst [vmem:[#allocation129_spill] sm:$0xff] %v20211_v11  ;;  %v82_v26 = vmul.f32 %v20211_v11, %v56_v60 }
 0x172   :  { %v1858_v6 = vadd.f32 %v18388_v48, %v106_v37  ;;  %v20217_v37 = vrot.slane %v83_v18, %v73_v0 }
 0x174   :  { %v14828_v12 = vmul.f32 -1.442695, %v1858_v6  ;;  %v108_v31 = vadd.f32 %v20217_v37, %v82_v26 }
 0x176   :  { %18570 = vpow2.f32 %v14828_v12 }
 0x177   :  { %18572 = vpow2.f32 %v14827_v43  ;;  %v107_v43 = vadd.f32 %v20214_v14, %v81_v16 }
 0x180   :  { %v18571_v21 = vpop.eup %18570 }
 0x181   :  { %v18573_v5 = vpop.eup %18572  ;;  %v1871_v6 = vadd.f32 1.0, %v18571_v21 }
 0x182   :  { %v1870_v7 = vadd.f32 1.0, %v18573_v5 }
 0x183   :  { %18574 = vrcp.f32 %v1871_v6 }
 0x184   :  { %18576 = vrcp.f32 %v1870_v7 }
 0x18d   :  { %v18575_v56 = vpop.eup %18574 }
 0x18e   :  { %v18577_v53 = vpop.eup %18576  ;;  %v1880_v18 = vmul.f32 0.0, %v18575_v56  ;;  %v22796_v56 = vld [vmem:[#allocation34_spill] sm:$0xff] }
 0x223   :  { %v1852_v12 = vpop.f32.mrb[2].mxu1 }
 0x224   :  { %v1859_v13 = vadd.f32 %v1852_v12, %v107_v43  ;;  %v1854_v48 = vpop.f32.mrb[3].mxu1 }
 0x225   :  { %v1860_v10 = vadd.f32 %v1854_v48, %v108_v31  ;;  %v22793_v48 = vld [vmem:[#allocation98_spill] sm:$0xff] }
 0x226   :  { %v14829_v17 = vmul.f32 -1.442695, %v1859_v13  ;;  %v22792_v13 = vld [vmem:[#allocation29_spill] sm:$0xff] }
 0x227   :  { %18578 = vtanh.f32 %v1860_v10  ;;  %v22794_v10 = vld [vmem:[#allocation31_spill] sm:$0xff] }
 0x228   :  { %18580 = vpow2.f32 %v14829_v17  ;;  %v22795_v17 = vld [vmem:[#allocation99_spill] sm:$0xff] }
 0x231   :  { %v18579_v60 = vpop.eup %18578 }
 0x232   :  { %v18581_v0 = vpop.eup %18580  ;;  %v1881_v21 = vmul.f32 %v18579_v60, %v18577_v53  ;;  %v22797_v60 = vld [vmem:[#allocation100_spill] sm:$0xff] }
 0x233   :  { %v1872_v5 = vadd.f32 1.0, %v18581_v0  ;;  %v22798_v0 = vld [vmem:[#allocation36_spill] sm:$0xff] }
 0x234   :  { %v20221_v11 = vadd.f32 %v1881_v21, %v1880_v18  ;;  %v22799_v18 = vld [vmem:[#allocation101_spill] sm:$0xff]  ;;  %v22800_v21 = vld [vmem:[#allocation38_spill] sm:$0xff] }
 0x235   :  { %18582 = vrcp.f32 %v1872_v5  ;;  %v22801_v5 = vld [vmem:[#allocation41_spill] sm:$0xff] }
 0x236   :  { %18584 = vtanh.f32 %v20221_v11 }
 0x23f   :  { %v18583_v16 = vpop.eup %18582 }
 0x240   :  { %v18585_v26 = vpop.eup %18584 }
 0x241   :  { %v1884_v6 = vmul.f32 %v18585_v26, %v18583_v16  ;;  %v22802_v16 = vld [vmem:[#allocation43_spill] sm:$0xff]  ;;  %v22803_v26 = vld [vmem:[#allocation45_spill] sm:$0xff] }
 0x243   :  { %v20224_v43 = vand.u32 4294901760, %v1884_v6 }
 0x245   :  { %v20227_v7 = vsub.f32 %v1884_v6, %v20224_v43  ;;  %v22804_v6 = vld [vmem:[#allocation105_spill] sm:$0xff] }
 0x247   :  { %v20230_v12 = vand.u32 4294901760, %v20227_v7 }
 0x249   :  { %v2000_v53 = vsub.f32 %v20227_v7, %v20230_v12 }
 0x24b   :  { %v2001_v31 = vand.u32 4294901760, %v2000_v53  ;;  %v22805_v53 = vld [vmem:[#allocation47_spill] sm:$0xff] }
 0x24d   :  { %2002 = vmatmul.mubr.f32.vlgmr.msra.gmra.mrb[2].mxu0 %v2001_v31  ;;  %2857 = vmatmul.mubr.f32.vlgmr.msra.gmra.mrb[4].mxu1 %v2001_v31  ;;  %v22806_v31 = vld [vmem:[#allocation48_spill] sm:$0xff] }
 0x24e   :  { %15590 = vmatpush1.bf16.msra.mxu0 %v22792_v13  ;;  %15782 = vmatpush1.bf16.msra.mxu1 %v22793_v48 }
 0x24f   :  { %15592 = vmatprep.subr.bf16.mxu0 %v22794_v10  ;;  %15784 = vmatprep.subr.bf16.mxu1 %v22795_v17 }
 0x250   :  { %2232 = vmatprep.mubr.f32.mxu0 %v22559_v29  ;;  %3087 = vmatprep.mubr.f32.mxu1 %v22559_v29 }
 0x252   :  { %15594 = vmatpush1.bf16.msra.mxu0 %v22796_v56  ;;  %15786 = vmatpush1.bf16.msra.mxu1 %v22797_v60 }
 0x253   :  { %15596 = vmatprep.subr.bf16.mxu0 %v22798_v0  ;;  %15788 = vmatprep.subr.bf16.mxu1 %v22799_v18 }
 0x256   :  { %15598 = vmatpush1.bf16.msra.mxu0 %v22800_v21  ;;  %15790 = vmatpush1.bf16.msra.mxu1 %v19950_v23  ;;  %v22807_v23 = vld [vmem:[#allocation49_spill] sm:$0xff] }
 0x257   :  { %15600 = vmatprep.subr.bf16.mxu0 %v22801_v5  ;;  %15792 = vmatprep.subr.bf16.mxu1 %v19966_v41  ;;  %v22808_v41 = vld [vmem:[#allocation51_spill] sm:$0xff] }
 0x25a   :  { %15602 = vmatpush1.bf16.msra.mxu0 %v22802_v16  ;;  %15794 = vmatpush1.bf16.msra.mxu1 %v19968_v50  ;;  %v22809_v50 = vld [vmem:[#allocation53_spill] sm:$0xff] }
 0x25b   :  { %15604 = vmatprep.subr.bf16.mxu0 %v22803_v26  ;;  %15796 = vmatprep.subr.bf16.mxu1 %v22804_v6  ;;  %v22810_v6 = vld [vmem:[#allocation55_spill] sm:$0xff] }
 0x25e   :  { %15606 = vmatpush1.bf16.msra.mxu0 %v22805_v53  ;;  %15798 = vmatpush1.bf16.msra.mxu1 %v19987_v62  ;;  %v22811_v62 = vld [vmem:[#allocation57_spill] sm:$0xff] }
 0x25f   :  { %15608 = vmatprep.subr.bf16.mxu0 %v22806_v31  ;;  %15800 = vmatprep.subr.bf16.mxu1 %v19989_v61  ;;  %v22812_v61 = vld [vmem:[#allocation59_spill] sm:$0xff] }
 0x262   :  { %15610 = vmatpush1.bf16.msra.mxu0 %v22807_v23  ;;  %15802 = vmatpush1.bf16.msra.mxu1 %v20004_v59  ;;  %v22861_v59 = vld [vmem:[#allocation83_spill] sm:$0xff]  ;;  %v22862_v23 = vld [vmem:[#allocation42_spill] sm:$0xff] }
 0x263   :  { %15612 = vmatprep.subr.bf16.mxu0 %v22808_v41  ;;  %15804 = vmatprep.subr.bf16.mxu1 %v20014_v1  ;;  %v22813_v1 = vld [vmem:[#allocation60_spill] sm:$0xff] }
 0x264   :  { %v22855_v41 = vld [vmem:[#allocation80_spill] sm:$0xff] }
 0x266   :  { %15614 = vmatpush1.bf16.msra.mxu0 %v22809_v50  ;;  %15806 = vmatpush1.bf16.msra.mxu1 %v20017_v44  ;;  %v22814_v44 = vld [vmem:[#allocation61_spill] sm:$0xff]  ;;  %v22852_v50 = vld [vmem:[#allocation32_spill] sm:$0xff] }
 0x267   :  { %15616 = vmatprep.subr.bf16.mxu0 %v22810_v6  ;;  %15808 = vmatprep.subr.bf16.mxu1 %v20020_v52  ;;  %v22850_v52 = vld [vmem:[#allocation27_spill] sm:$0xff]  ;;  %v22851_v6 = vld [vmem:[#allocation78_spill] sm:$0xff] }
 0x26a   :  { %15618 = vmatpush1.bf16.msra.mxu0 %v22811_v62  ;;  %15810 = vmatpush1.bf16.msra.mxu1 %v20023_v9  ;;  %v22815_v9 = vld [vmem:[#allocation62_spill] sm:$0xff]  ;;  %v22849_v62 = vld [vmem:[#allocation77_spill] sm:$0xff] }
 0x26b   :  { %15620 = vmatprep.subr.bf16.mxu0 %v22812_v61  ;;  %15812 = vmatprep.subr.bf16.mxu1 %v20028_v55  ;;  %v22816_v55 = vld [vmem:[#allocation23_spill] sm:$0xff] }
 0x26c   :  { %v22817_v61 = vld [vmem:[#allocation63_spill] sm:$0xff] }
 0x26d   :  { %2234 = vmatmul.mubr.f32.vlgmr.msra.gmra.mrb[2].mxu0 %v20224_v43  ;;  %3089 = vmatmul.mubr.f32.vlgmr.msra.gmra.mrb[4].mxu1 %v20224_v43 }
 0x26e   :  { %15622 = vmatpush1.bf16.msra.mxu0 %v22813_v1  ;;  %15814 = vmatpush1.bf16.msra.mxu1 %v20033_v47  ;;  %v22818_v47 = vld [vmem:[#allocation30_spill] sm:$0xff] }
 0x26f   :  { %15624 = vmatprep.subr.bf16.mxu0 %v22814_v44  ;;  %15816 = vmatprep.subr.bf16.mxu1 %v20038_v2  ;;  %v22819_v2 = vld [vmem:[#allocation64_spill] sm:$0xff]  ;;  %v22820_v44 = vld [vmem:[#allocation65_spill] sm:$0xff]  ;;  %v22848_v1 = vld [vmem:[#allocation26_spill] sm:$0xff] }
 0x270   :  { %2368 = vmatprep.mubr.f32.mxu0 %v22559_v29  ;;  %3223 = vmatprep.mubr.f32.mxu1 %v22559_v29 }
 0x272   :  { %15626 = vmatpush1.bf16.msra.mxu0 %v22815_v9  ;;  %15818 = vmatpush1.bf16.msra.mxu1 %v20044_v38  ;;  %v22821_v38 = vld [vmem:[#allocation66_spill] sm:$0xff]  ;;  %v22847_v9 = vld [vmem:[#allocation76_spill] sm:$0xff] }
 0x273   :  { %15628 = vmatprep.subr.bf16.mxu0 %v22816_v55  ;;  %15820 = vmatprep.subr.bf16.mxu1 %v20050_v46  ;;  %v22822_v46 = vld [vmem:[#allocation37_spill] sm:$0xff] }
 0x274   :  { %v22846_v55 = vld [vmem:[#allocation25_spill] sm:$0xff] }
 0x276   :  { %15630 = vmatpush1.bf16.msra.mxu0 %v22817_v61  ;;  %15822 = vmatpush1.bf16.msra.mxu1 %v20055_v42  ;;  %v22823_v42 = vld [vmem:[#allocation67_spill] sm:$0xff]  ;;  %v22845_v61 = vld [vmem:[#allocation94_spill] sm:$0xff] }
 0x277   :  { %15632 = vmatprep.subr.bf16.mxu0 %v22818_v47  ;;  %15824 = vmatprep.subr.bf16.mxu1 %v20060_v36  ;;  %v22824_v36 = vld [vmem:[#allocation68_spill] sm:$0xff] }
 0x278   :  { %v22844_v47 = vld [vmem:[#allocation24_spill] sm:$0xff] }
 0x27a   :  { %15634 = vmatpush1.bf16.msra.mxu0 %v22819_v2  ;;  %15826 = vmatpush1.bf16.msra.mxu1 %v20065_v51  ;;  %v22825_v51 = vld [vmem:[#allocation69_spill] sm:$0xff]  ;;  %v22843_v2 = vld [vmem:[#allocation91_spill] sm:$0xff] }
 0x27b   :  { %15636 = vmatprep.subr.bf16.mxu0 %v22820_v44  ;;  %15828 = vmatprep.subr.bf16.mxu1 %v20070_v45  ;;  %v22826_v45 = vld [vmem:[#allocation70_spill] sm:$0xff] }
 0x27c   :  { %v22842_v44 = vld [vmem:[#allocation22_spill] sm:$0xff] }
 0x27e   :  { %15638 = vmatpush1.bf16.msra.mxu0 %v22821_v38  ;;  %15830 = vmatpush1.bf16.msra.mxu1 %v20075_v39  ;;  %v22827_v39 = vld [vmem:[#allocation71_spill] sm:$0xff]  ;;  %v22841_v38 = vld [vmem:[#allocation21_spill] sm:$0xff] }
 0x27f   :  { %15640 = vmatprep.subr.bf16.mxu0 %v22822_v46  ;;  %15832 = vmatprep.subr.bf16.mxu1 %v20080_v63  ;;  %v22828_v63 = vld [vmem:[#allocation8_spill] sm:$0xff] }
 0x280   :  { %v22840_v46 = vld [vmem:[#allocation20_spill] sm:$0xff] }
 0x282   :  { %15642 = vmatpush1.bf16.msra.mxu0 %v22823_v42  ;;  %15834 = vmatpush1.bf16.msra.mxu1 %v20085_v3  ;;  %v22838_v3 = vld [vmem:[#allocation18_spill] sm:$0xff]  ;;  %v22839_v42 = vld [vmem:[#allocation19_spill] sm:$0xff] }
 0x283   :  { %15644 = vmatprep.subr.bf16.mxu0 %v22824_v36  ;;  %15836 = vmatprep.subr.bf16.mxu1 %v20090_v34  ;;  %v22829_v34 = vld [vmem:[#allocation9_spill] sm:$0xff] }
 0x284   :  { %v22837_v36 = vld [vmem:[#allocation17_spill] sm:$0xff] }
 0x286   :  { %15646 = vmatpush1.bf16.msra.mxu0 %v22825_v51  ;;  %15838 = vmatpush1.bf16.msra.mxu1 %v20095_v24  ;;  %v22830_v24 = vld [vmem:[#allocation10_spill] sm:$0xff]  ;;  %v22836_v51 = vld [vmem:[#allocation16_spill] sm:$0xff] }
 0x287   :  { %15648 = vmatprep.subr.bf16.mxu0 %v22826_v45  ;;  %15840 = vmatprep.subr.bf16.mxu1 %v20100_v25  ;;  %v22834_v25 = vld [vmem:[#allocation14_spill] sm:$0xff]  ;;  %v22835_v45 = vld [vmem:[#allocation15_spill] sm:$0xff] }
 0x28a   :  { %15650 = vmatpush1.bf16.msra.mxu0 %v22827_v39  ;;  %15842 = vmatpush1.bf16.msra.mxu1 %v20105_v28  ;;  %v22831_v28 = vld [vmem:[#allocation11_spill] sm:$0xff]  ;;  %v22832_v39 = vld [vmem:[#allocation12_spill] sm:$0xff] }
 0x28b   :  { %15652 = vmatprep.subr.bf16.mxu0 %v22828_v63  ;;  %15844 = vmatprep.subr.bf16.mxu1 %v22761_v27 }
 0x28d   :  { %2371 = vmatmul.mubr.f32.vlgmr.msra.gmra.mrb[2].mxu0 %v20227_v7  ;;  %3226 = vmatmul.mubr.f32.vlgmr.msra.gmra.mrb[4].mxu1 %v20227_v7  ;;  %v22833_v7 = vld [vmem:[#allocation13_spill] sm:$0xff] }
 0x28e   :  { %15654 = vmatpush1.bf16.msra.mxu0 %v22829_v34  ;;  %15846 = vmatpush1.bf16.msra.mxu1 %v19540_v57 }
 0x28f   :  { %15656 = vmatprep.subr.bf16.mxu0 %v22830_v24  ;;  %15848 = vmatprep.subr.bf16.mxu1 %v19542_v40 }
 0x290   :  { %2473 = vmatprep.mubr.f32.mxu0 %v22559_v29  ;;  %3328 = vmatprep.mubr.f32.mxu1 %v22559_v29 }
 0x292   :  { %15658 = vmatpush1.bf16.msra.mxu0 %v22831_v28  ;;  %15850 = vmatpush1.bf16.msra.mxu1 %v19544_v19 }
 0x293   :  { %15660 = vmatprep.subr.bf16.mxu0 %v22832_v39  ;;  %15852 = vmatprep.subr.bf16.mxu1 %v19548_v32 }
 0x296   :  { %15662 = vmatpush1.bf16.msra.mxu0 %v22833_v7  ;;  %15854 = vmatpush1.bf16.msra.mxu1 %v19550_v15 }
 0x297   :  { %15664 = vmatprep.subr.bf16.mxu0 %v22834_v25  ;;  %15856 = vmatprep.subr.bf16.mxu1 %v19552_v8 }
 0x29a   :  { %15666 = vmatpush1.bf16.msra.mxu0 %v22835_v45  ;;  %15858 = vmatpush1.bf16.msra.mxu1 %v19557_v33 }
 0x29b   :  { %15668 = vmatprep.subr.bf16.mxu0 %v22836_v51  ;;  %15860 = vmatprep.subr.bf16.mxu1 %v22762_v35 }
 0x29e   :  { %15670 = vmatpush1.bf16.msra.mxu0 %v22837_v36  ;;  %15862 = vmatpush1.bf16.msra.mxu1 %v22763_v49 }
 0x29f   :  { %15672 = vmatprep.subr.bf16.mxu0 %v22838_v3  ;;  %15864 = vmatprep.subr.bf16.mxu1 %v22764_v4 }
 0x2a2   :  { %15674 = vmatpush1.bf16.msra.mxu0 %v22839_v42  ;;  %15866 = vmatpush1.bf16.msra.mxu1 %v22765_v58 }
 0x2a3   :  { %15676 = vmatprep.subr.bf16.mxu0 %v22840_v46  ;;  %15868 = vmatprep.subr.bf16.mxu1 %v22766_v30 }
 0x2a6   :  { %15678 = vmatpush1.bf16.msra.mxu0 %v22841_v38  ;;  %15870 = vmatpush1.bf16.msra.mxu1 %v22767_v22 }
 0x2a7   :  { %15680 = vmatprep.subr.bf16.mxu0 %v22842_v44  ;;  %15872 = vmatprep.subr.bf16.mxu1 %v22843_v2 }
 0x2aa   :  { %15682 = vmatpush1.bf16.msra.mxu0 %v22844_v47  ;;  %15874 = vmatpush1.bf16.msra.mxu1 %v22845_v61 }
 0x2ab   :  { %15684 = vmatprep.subr.bf16.mxu0 %v22846_v55  ;;  %15876 = vmatprep.subr.bf16.mxu1 %v22847_v9  ;;  %v22853_v55 = vld [vmem:[#allocation79_spill] sm:$0xff]  ;;  %v22854_v9 = vld [vmem:[#allocation33_spill] sm:$0xff] }
 0x2ad   :  { %2477 = vmatmul.mubr.f32.vlgmr.msra.gmra.mrb[2].mxu0 %v20230_v12  ;;  %3332 = vmatmul.mubr.f32.vlgmr.msra.gmra.mrb[4].mxu1 %v20230_v12  ;;  %v22856_v12 = vld [vmem:[#allocation35_spill] sm:$0xff] }
 0x2ae   :  { %15686 = vmatpush1.bf16.msra.mxu0 %v22848_v1  ;;  %15878 = vmatpush1.bf16.msra.mxu1 %v22849_v62  ;;  %v22857_v1 = vld [vmem:[#allocation81_spill] sm:$0xff]  ;;  %v22858_v62 = vld [vmem:[#allocation39_spill] sm:$0xff] }
 0x2af   :  { %15688 = vmatprep.subr.bf16.mxu0 %v22850_v52  ;;  %15880 = vmatprep.subr.bf16.mxu1 %v22851_v6  ;;  %v22859_v52 = vld [vmem:[#allocation82_spill] sm:$0xff]  ;;  %v22860_v6 = vld [vmem:[#allocation40_spill] sm:$0xff] }
 0x2b0   :  { %2643 = vmatprep.mubr.f32.mxu0 %v22559_v29  ;;  %3498 = vmatprep.mubr.f32.mxu1 %v22559_v29 }
 0x2b2   :  { %15690 = vmatpush1.bf16.msra.mxu0 %v22852_v50  ;;  %15882 = vmatpush1.bf16.msra.mxu1 %v22853_v55  ;;  %v22863_v50 = vld [vmem:[#allocation85_spill] sm:$0xff]  ;;  %v22864_v55 = vld [vmem:[#allocation44_spill] sm:$0xff] }
 0x2b3   :  { %15692 = vmatprep.subr.bf16.mxu0 %v22854_v9  ;;  %15884 = vmatprep.subr.bf16.mxu1 %v22855_v41  ;;  %v22865_v9 = vld [vmem:[#allocation87_spill] sm:$0xff]  ;;  %v22866_v41 = vld [vmem:[#allocation46_spill] sm:$0xff] }
 0x2b6   :  { %15694 = vmatpush1.bf16.msra.mxu0 %v22856_v12  ;;  %15886 = vmatpush1.bf16.msra.mxu1 %v22857_v1  ;;  %v22867_v12 = vld [vmem:[#allocation88_spill] sm:$0xff]  ;;  %v22868_v1 = vld [vmem:[#allocation50_spill] sm:$0xff] }
 0x2b7   :  { %15696 = vmatprep.subr.bf16.mxu0 %v22858_v62  ;;  %15888 = vmatprep.subr.bf16.mxu1 %v22859_v52  ;;  %v22869_v62 = vld [vmem:[#allocation89_spill] sm:$0xff]  ;;  %v22870_v52 = vld [vmem:[#allocation52_spill] sm:$0xff] }
 0x2ba   :  { %15698 = vmatpush1.bf16.msra.mxu0 %v22860_v6  ;;  %15890 = vmatpush1.bf16.msra.mxu1 %v22861_v59  ;;  %v22871_v6 = vld [vmem:[#allocation92_spill] sm:$0xff]  ;;  %v22872_v59 = vld [vmem:[#allocation54_spill] sm:$0xff] }
 0x2bb   :  { %15700 = vmatprep.subr.bf16.mxu0 %v22862_v23  ;;  %15892 = vmatprep.subr.bf16.mxu1 %v22863_v50  ;;  %v22873_v23 = vld [vmem:[#allocation93_spill] sm:$0xff]  ;;  %v22874_v50 = vld [vmem:[#allocation56_spill] sm:$0xff] }
 0x2be   :  { %15702 = vmatpush1.bf16.msra.mxu0 %v22864_v55  ;;  %15894 = vmatpush1.bf16.msra.mxu1 %v22865_v9  ;;  %v22875_v55 = vld [vmem:[#allocation95_spill] sm:$0xff]  ;;  %v22876_v9 = vld [vmem:[#allocation58_spill] sm:$0xff] }
 0x2bf   :  { %15704 = vmatprep.subr.bf16.mxu0 %v22866_v41  ;;  %15896 = vmatprep.subr.bf16.mxu1 %v22867_v12  ;;  %v22877_v41 = vld [vmem:[#allocation97_spill] sm:$0xff] }
 0x2c2   :  { %15706 = vmatpush1.bf16.msra.mxu0 %v22868_v1  ;;  %15898 = vmatpush1.bf16.msra.mxu1 %v22869_v62 }
 0x2c3   :  { %15708 = vmatprep.subr.bf16.mxu0 %v22870_v52  ;;  %15900 = vmatprep.subr.bf16.mxu1 %v22871_v6 }
 0x2c6   :  { %15710 = vmatpush1.bf16.msra.mxu0 %v22872_v59  ;;  %15902 = vmatpush1.bf16.msra.mxu1 %v22873_v23  ;;  %v22881_v23 = vld [vmem:[#allocation72_spill] sm:$0xff] }
 0x2c7   :  { %15712 = vmatprep.subr.bf16.mxu0 %v22874_v50  ;;  %15904 = vmatprep.subr.bf16.mxu1 %v22875_v55  ;;  %v22880_v55 = vld [vmem:[#allocation73_spill] sm:$0xff] }
 0x2ca   :  { %15714 = vmatpush1.bf16.msra.mxu0 %v22876_v9  ;;  %15906 = vmatpush1.bf16.msra.mxu1 %v22877_v41  ;;  %v22879_v41 = vld [vmem:[#allocation96_spill] sm:$0xff]  ;;  %v1890_v9 = vpop.permute.xlu0 %1889 }
 0x2cb   :  { %15716 = vmatprep.subr.bf16.mxu0 %v22828_v63  ;;  %15908 = vmatprep.subr.bf16.mxu1 %v22761_v27  ;;  %v1892_v50 = vmul.f32 %v1890_v9, %v22880_v55  ;;  %v1893_v59 = vmul.f32 %v1890_v9, %v22881_v23 }
 0x2cd   :  { %2645 = vmatmul.mubr.f32.vlgmr.msra.gmra.mrb[2].mxu0 %v20224_v43  ;;  %3500 = vmatmul.mubr.f32.vlgmr.msra.gmra.mrb[4].mxu1 %v20224_v43  ;;  %v1896_v6 = vadd.f32 %v1892_v50, %v20205_v54  ;;  %v1897_v1 = vadd.f32 %v1893_v59, %v20202_v20 }
 0x2ce   :  { %15718 = vmatpush1.bf16.msra.mxu0 %v22829_v34  ;;  %15910 = vmatpush1.bf16.msra.mxu1 %v19540_v57 }
 0x2cf   :  { %15720 = vmatprep.subr.bf16.mxu0 %v22830_v24  ;;  %15912 = vmatprep.subr.bf16.mxu1 %v19542_v40 }
 0x2d0   :  { %2747 = vmatprep.mubr.f32.mxu0 %v22559_v29  ;;  %3602 = vmatprep.mubr.f32.mxu1 %v22559_v29 }
 0x2d2   :  { %15722 = vmatpush1.bf16.msra.mxu0 %v22831_v28  ;;  %15914 = vmatpush1.bf16.msra.mxu1 %v19544_v19 }
 0x2d3   :  { %15724 = vmatprep.subr.bf16.mxu0 %v22832_v39  ;;  %15916 = vmatprep.subr.bf16.mxu1 %v19548_v32 }
 0x2d6   :  { %15726 = vmatpush1.bf16.msra.mxu0 %v22833_v7  ;;  %15918 = vmatpush1.bf16.msra.mxu1 %v19550_v15 }
 0x2d7   :  { %15728 = vmatprep.subr.bf16.mxu0 %v22834_v25  ;;  %15920 = vmatprep.subr.bf16.mxu1 %v19552_v8 }
 0x2da   :  { %15730 = vmatpush1.bf16.msra.mxu0 %v22835_v45  ;;  %15922 = vmatpush1.bf16.msra.mxu1 %v19557_v33 }
 0x2db   :  { %15732 = vmatprep.subr.bf16.mxu0 %v22836_v51  ;;  %15924 = vmatprep.subr.bf16.mxu1 %v22762_v35 }
 0x2de   :  { %15734 = vmatpush1.bf16.msra.mxu0 %v22837_v36  ;;  %15926 = vmatpush1.bf16.msra.mxu1 %v22763_v49 }
 0x2df   :  { %15736 = vmatprep.subr.bf16.mxu0 %v22838_v3  ;;  %15928 = vmatprep.subr.bf16.mxu1 %v22764_v4 }
 0x2e2   :  { %15738 = vmatpush1.bf16.msra.mxu0 %v22839_v42  ;;  %15930 = vmatpush1.bf16.msra.mxu1 %v22765_v58 }
 0x2e3   :  { %15740 = vmatprep.subr.bf16.mxu0 %v22840_v46  ;;  %15932 = vmatprep.subr.bf16.mxu1 %v22766_v30 }
 0x2e6   :  { %15742 = vmatpush1.bf16.msra.mxu0 %v22841_v38  ;;  %15934 = vmatpush1.bf16.msra.mxu1 %v22767_v22 }
 0x2e7   :  { %15744 = vmatprep.subr.bf16.mxu0 %v22842_v44  ;;  %15936 = vmatprep.subr.bf16.mxu1 %v22843_v2 }
 0x2ea   :  { %15746 = vmatpush1.bf16.msra.mxu0 %v22844_v47  ;;  %15938 = vmatpush1.bf16.msra.mxu1 %v22845_v61 }
 0x2eb   :  { %15940 = vmatprep.subr.bf16.mxu0 %v22828_v63  ;;  %16132 = vmatprep.subr.bf16.mxu1 %v22761_v27 }
 0x2ed   :  { %2749 = vmatmul.mubr.f32.vlgmr.msra.gmra.mrb[2].mxu0 %v20224_v43  ;;  %3604 = vmatmul.mubr.f32.vlgmr.msra.gmra.mrb[4].mxu1 %v20224_v43  ;;  %v22878_v43 = vld [vmem:[#allocation28_spill] sm:$0xff] }
 0x2ee   :  { %15942 = vmatpush1.bf16.msra.mxu0 %v22829_v34  ;;  %16134 = vmatpush1.bf16.msra.mxu1 %v19540_v57 }
 0x2ef   :  { %15944 = vmatprep.subr.bf16.mxu0 %v22830_v24  ;;  %16136 = vmatprep.subr.bf16.mxu1 %v19542_v40 }
 0x2f0   :  { %3749 = vmatprep.mubr.f32.mxu0 %v22559_v29  ;;  %4604 = vmatprep.mubr.f32.mxu1 %v22559_v29 }
 0x2f2   :  { %15946 = vmatpush1.bf16.msra.mxu0 %v22831_v28  ;;  %16138 = vmatpush1.bf16.msra.mxu1 %v19544_v19 }
 0x2f3   :  { %15948 = vmatprep.subr.bf16.mxu0 %v22832_v39  ;;  %16140 = vmatprep.subr.bf16.mxu1 %v19548_v32 }
 0x2f6   :  { %15950 = vmatpush1.bf16.msra.mxu0 %v22833_v7  ;;  %16142 = vmatpush1.bf16.msra.mxu1 %v19550_v15 }
 0x2f7   :  { %15952 = vmatprep.subr.bf16.mxu0 %v22834_v25  ;;  %16144 = vmatprep.subr.bf16.mxu1 %v19552_v8 }
 0x2fa   :  { %15954 = vmatpush1.bf16.msra.mxu0 %v22835_v45  ;;  %16146 = vmatpush1.bf16.msra.mxu1 %v19557_v33 }
 0x2fb   :  { %15956 = vmatprep.subr.bf16.mxu0 %v22836_v51  ;;  %16148 = vmatprep.subr.bf16.mxu1 %v22762_v35 }
 0x2fe   :  { %15958 = vmatpush1.bf16.msra.mxu0 %v22837_v36  ;;  %16150 = vmatpush1.bf16.msra.mxu1 %v22763_v49 }
 0x2ff   :  { %15960 = vmatprep.subr.bf16.mxu0 %v22838_v3  ;;  %16152 = vmatprep.subr.bf16.mxu1 %v22764_v4 }
 0x302   :  { %15962 = vmatpush1.bf16.msra.mxu0 %v22839_v42  ;;  %16154 = vmatpush1.bf16.msra.mxu1 %v22765_v58 }
 0x303   :  { %15964 = vmatprep.subr.bf16.mxu0 %v22840_v46  ;;  %16156 = vmatprep.subr.bf16.mxu1 %v22766_v30 }
 0x306   :  { %15966 = vmatpush1.bf16.msra.mxu0 %v22841_v38  ;;  %16158 = vmatpush1.bf16.msra.mxu1 %v22767_v22  ;;  %v22882_v22 = vld [vmem:[#allocation84_spill] sm:$0xff] }
 0x307   :  { %15968 = vmatprep.subr.bf16.mxu0 %v22842_v44  ;;  %16160 = vmatprep.subr.bf16.mxu1 %v22843_v2 }
 0x30a   :  { %15970 = vmatpush1.bf16.msra.mxu0 %v22844_v47  ;;  %16162 = vmatpush1.bf16.msra.mxu1 %v22845_v61 }
 0x30b   :  { %15972 = vmatprep.subr.bf16.mxu0 %v22878_v43  ;;  %16164 = vmatprep.subr.bf16.mxu1 %v22879_v41  ;;  %v1894_v43 = vmul.f32 %v1890_v9, %v22882_v22  ;;  %v22883_v41 = vld [vmem:[#allocation129_spill] sm:$0xff] }
 0x30c   :  { %v1895_v30 = vmul.f32 %v1890_v9, %v22883_v41 }
 0x30d   :  { %v1898_v55 = vadd.f32 %v1894_v43, %v20214_v14 }
 0x30e   :  { %v1899_v50 = vadd.f32 %v1895_v30, %v20217_v37 }
 0x3c0   :  { %v2750_v52 = vpop.f32.mrb[2].mxu0  ;;  %v3605_v62 = vpop.f32.mrb[4].mxu1 }
 0x3c1   :  { %v3610_v12 = vadd.f32 %v2750_v52, %v1896_v6  ;;  %v2752_v2 = vpop.f32.mrb[3].mxu0  ;;  %v3607_v47 = vpop.f32.mrb[5].mxu1  ;;  %v3612_v23 = vadd.f32 %v3605_v62, %v1898_v55 }
 0x3c2   :  { %v3611_v44 = vadd.f32 %v2752_v2, %v1897_v1  ;;  %v3613_v54 = vadd.f32 %v3607_v47, %v1899_v50 }
 0x3c3   :  { %v14831_v61 = vmul.f32 -1.442695, %v3610_v12  ;;  %v14833_v46 = vmul.f32 -1.442695, %v3612_v23 }
 0x3c4   :  { %v14832_v38 = vmul.f32 -1.442695, %v3611_v44 }
 0x3c5   :  { %18586 = vpow2.f32 %v14831_v61 }
 0x3c6   :  { %18588 = vpow2.f32 %v14832_v38 }
 0x3c7   :  { %18590 = vtanh.f32 %v3613_v54 }
 0x3c8   :  { %18592 = vpow2.f32 %v14833_v46 }
 0x3cf   :  { %v18587_v59 = vpop.eup %18586 }
 0x3d0   :  { %v3623_v52 = vadd.f32 1.0, %v18587_v59  ;;  %v18589_v6 = vpop.eup %18588  ;;  %v22884_v59 = vld [vmem:[#allocation102_spill] sm:$0xff] }
 0x3d1   :  { %v3624_v1 = vadd.f32 1.0, %v18589_v6  ;;  %v18591_v44 = vpop.eup %18590  ;;  %v22886_v6 = vld [vmem:[#allocation104_spill] sm:$0xff] }
 0x3d2   :  { %18594 = vrcp.f32 %v3623_v52  ;;  %v18593_v61 = vpop.eup %18592  ;;  %v22885_v52 = vld [vmem:[#allocation103_spill] sm:$0xff] }
 0x3d3   :  { %18596 = vrcp.f32 %v3624_v1  ;;  %v3625_v43 = vadd.f32 1.0, %v18593_v61  ;;  %v22887_v1 = vld [vmem:[#allocation105_spill] sm:$0xff]  ;;  %v22889_v61 = vld [vmem:[#allocation107_spill] sm:$0xff] }
 0x3d5   :  { %18598 = vrcp.f32 %v3625_v43  ;;  %v22893_v43 = vld [vmem:[#allocation109_spill] sm:$0xff] }
 0x3dc   :  { %v18595_v2 = vpop.eup %18594 }
 0x3dd   :  { %v3634_v9 = vmul.f32 %v18595_v2, %v18591_v44  ;;  %v18597_v12 = vpop.eup %18596  ;;  %v22888_v44 = vld [vmem:[#allocation106_spill] sm:$0xff]  ;;  %v22890_v2 = vld [vmem:[#allocation49_spill] sm:$0xff] }
 0x3de   :  { %v3633_v62 = vmul.f32 %v18597_v12, %v20221_v11  ;;  %v22892_v12 = vld [vmem:[#allocation51_spill] sm:$0xff] }
 0x3df   :  { %v18599_v23 = vpop.eup %18598 }
 0x3e0   :  { %v20457_v55 = vadd.f32 %v3634_v9, %v3633_v62  ;;  %v22891_v9 = vld [vmem:[#allocation108_spill] sm:$0xff]  ;;  %v22894_v62 = vld [vmem:[#allocation53_spill] sm:$0xff] }
 0x3e2   :  { %18600 = vtanh.f32 %v20457_v55 }
 0x3ec   :  { %v18601_v47 = vpop.eup %18600 }
 0x3ed   :  { %v3637_v38 = vmul.f32 %v18601_v47, %v18599_v23  ;;  %v22895_v23 = vld [vmem:[#allocation110_spill] sm:$0xff]  ;;  %v22896_v47 = vld [vmem:[#allocation55_spill] sm:$0xff] }
 0x3ef   :  { %v20460_v46 = vand.u32 4294901760, %v3637_v38 }
 0x3f1   :  { %v20463_v30 = vsub.f32 %v3637_v38, %v20460_v46  ;;  %v22897_v38 = vld [vmem:[#allocation111_spill] sm:$0xff] }
 0x3f3   :  { %v20466_v54 = vand.u32 4294901760, %v20463_v30 }
 0x3f5   :  { %v3753_v50 = vsub.f32 %v20463_v30, %v20466_v54 }
 0x3f7   :  { %v3754_v11 = vand.u32 4294901760, %v3753_v50  ;;  %v22898_v50 = vld [vmem:[#allocation57_spill] sm:$0xff] }
 0x3f9   :  { %3755 = vmatmul.mubr.f32.vlgmr.msra.gmra.mrb[4].mxu0 %v3754_v11  ;;  %4610 = vmatmul.mubr.f32.vlgmr.msra.gmra.mrb[6].mxu1 %v3754_v11  ;;  %v22899_v11 = vld [vmem:[#allocation112_spill] sm:$0xff] }
 0x3fa   :  { %15974 = vmatpush1.bf16.msra.mxu0 %v22792_v13  ;;  %16166 = vmatpush1.bf16.msra.mxu1 %v22793_v48 }
 0x3fb   :  { %15976 = vmatprep.subr.bf16.mxu0 %v22794_v10  ;;  %16168 = vmatprep.subr.bf16.mxu1 %v22795_v17 }
 0x3fc   :  { %3985 = vmatprep.mubr.f32.mxu0 %v22559_v29  ;;  %4840 = vmatprep.mubr.f32.mxu1 %v22559_v29 }
 0x3fe   :  { %15978 = vmatpush1.bf16.msra.mxu0 %v22796_v56  ;;  %16170 = vmatpush1.bf16.msra.mxu1 %v22797_v60 }
 0x3ff   :  { %15980 = vmatprep.subr.bf16.mxu0 %v22798_v0  ;;  %16172 = vmatprep.subr.bf16.mxu1 %v22799_v18 }
 0x402   :  { %15982 = vmatpush1.bf16.msra.mxu0 %v22800_v21  ;;  %16174 = vmatpush1.bf16.msra.mxu1 %v22884_v59 }
 0x403   :  { %15984 = vmatprep.subr.bf16.mxu0 %v22801_v5  ;;  %16176 = vmatprep.subr.bf16.mxu1 %v22885_v52 }
 0x406   :  { %15986 = vmatpush1.bf16.msra.mxu0 %v22802_v16  ;;  %16178 = vmatpush1.bf16.msra.mxu1 %v22886_v6  ;;  %v22956_v6 = vld [vmem:[#allocation42_spill] sm:$0xff] }
 0x407   :  { %15988 = vmatprep.subr.bf16.mxu0 %v22803_v26  ;;  %16180 = vmatprep.subr.bf16.mxu1 %v22887_v1  ;;  %v22949_v1 = vld [vmem:[#allocation80_spill] sm:$0xff]  ;;  %v22955_v26 = vld [vmem:[#allocation83_spill] sm:$0xff] }
 0x40a   :  { %15990 = vmatpush1.bf16.msra.mxu0 %v22805_v53  ;;  %16182 = vmatpush1.bf16.msra.mxu1 %v22888_v44  ;;  %v22945_v44 = vld [vmem:[#allocation78_spill] sm:$0xff]  ;;  %v22946_v53 = vld [vmem:[#allocation32_spill] sm:$0xff] }
 0x40b   :  { %15992 = vmatprep.subr.bf16.mxu0 %v22806_v31  ;;  %16184 = vmatprep.subr.bf16.mxu1 %v22889_v61  ;;  %v22900_v61 = vld [vmem:[#allocation59_spill] sm:$0xff] }
 0x40c   :  { %v22944_v31 = vld [vmem:[#allocation27_spill] sm:$0xff] }
 0x40e   :  { %15994 = vmatpush1.bf16.msra.mxu0 %v22890_v2  ;;  %16186 = vmatpush1.bf16.msra.mxu1 %v22891_v9  ;;  %v22901_v2 = vld [vmem:[#allocation113_spill] sm:$0xff] }
 0x40f   :  { %15996 = vmatprep.subr.bf16.mxu0 %v22892_v12  ;;  %16188 = vmatprep.subr.bf16.mxu1 %v22893_v43  ;;  %v22902_v43 = vld [vmem:[#allocation60_spill] sm:$0xff]  ;;  %v22925_v9 = vld [vmem:[#allocation125_spill] sm:$0xff] }
 0x410   :  { %v22915_v12 = vld [vmem:[#allocation120_spill] sm:$0xff] }
 0x412   :  { %15998 = vmatpush1.bf16.msra.mxu0 %v22894_v62  ;;  %16190 = vmatpush1.bf16.msra.mxu1 %v22895_v23  ;;  %v22903_v62 = vld [vmem:[#allocation114_spill] sm:$0xff]  ;;  %v22914_v23 = vld [vmem:[#allocation64_spill] sm:$0xff] }
 0x413   :  { %16000 = vmatprep.subr.bf16.mxu0 %v22896_v47  ;;  %16192 = vmatprep.subr.bf16.mxu1 %v22897_v38  ;;  %v14834_v38 = vld [vmem:[%s22153_s0 + $0x10] sm:$0xff]  ;;  %v22904_v47 = vld [vmem:[#allocation61_spill] sm:$0xff] }
 0x414   :  { %3642 = vperm.xlu1 %18569, %v14834_v38   ;;  %v14846_v38 = vld [vmem:[%s22153_s0 + $0x28] sm:$0xff] }
 0x416   :  { %16002 = vmatpush1.bf16.msra.mxu0 %v22898_v50  ;;  %16194 = vmatpush1.bf16.msra.mxu1 %v22899_v11  ;;  %v22905_v50 = vld [vmem:[#allocation115_spill] sm:$0xff]  ;;  %v22909_v11 = vld [vmem:[#allocation117_spill] sm:$0xff] }
 0x417   :  { %16004 = vmatprep.subr.bf16.mxu0 %v22900_v61  ;;  %16196 = vmatprep.subr.bf16.mxu1 %v22901_v2  ;;  %v22906_v2 = vld [vmem:[#allocation62_spill] sm:$0xff]  ;;  %v22907_v61 = vld [vmem:[#allocation116_spill] sm:$0xff] }
 0x419   :  { %3987 = vmatmul.mubr.f32.vlgmr.msra.gmra.mrb[4].mxu0 %v20460_v46  ;;  %4842 = vmatmul.mubr.f32.vlgmr.msra.gmra.mrb[6].mxu1 %v20460_v46 }
 0x41a   :  { %16006 = vmatpush1.bf16.msra.mxu0 %v22902_v43  ;;  %16198 = vmatpush1.bf16.msra.mxu1 %v22903_v62  ;;  %v14838_v62 = vld [vmem:[%s22153_s0 + $0x18] sm:$0xff] }
 0x41b   :  { %16008 = vmatprep.subr.bf16.mxu0 %v22904_v47  ;;  %16200 = vmatprep.subr.bf16.mxu1 %v22905_v50  ;;  %v22908_v43 = vld [vmem:[#allocation23_spill] sm:$0xff]  ;;  %v22911_v50 = vld [vmem:[#allocation118_spill] sm:$0xff] }
 0x41c   :  { %4121 = vmatprep.mubr.f32.mxu0 %v22559_v29  ;;  %4976 = vmatprep.mubr.f32.mxu1 %v22559_v29  ;;  %v22910_v47 = vld [vmem:[#allocation63_spill] sm:$0xff] }
 0x41d   :  { %5395 = vperm.xlu1 %18569, %v14838_v62   ;;  %v14854_v62 = vld [vmem:[%s22153_s0 + $0x38] sm:$0xff] }
 0x41e   :  { %16010 = vmatpush1.bf16.msra.mxu0 %v22906_v2  ;;  %16202 = vmatpush1.bf16.msra.mxu1 %v22907_v61  ;;  %v22912_v2 = vld [vmem:[#allocation30_spill] sm:$0xff]  ;;  %v22913_v61 = vld [vmem:[#allocation119_spill] sm:$0xff] }
 0x41f   :  { %16012 = vmatprep.subr.bf16.mxu0 %v22908_v43  ;;  %16204 = vmatprep.subr.bf16.mxu1 %v22909_v11  ;;  %v22918_v11 = vld [vmem:[#allocation66_spill] sm:$0xff] }
 0x420   :  { %v22919_v43 = vld [vmem:[#allocation122_spill] sm:$0xff] }
 0x421   :  { %8901 = vperm.xlu1 %18569, %v14846_v38   ;;  %v22921_v38 = vld [vmem:[#allocation123_spill] sm:$0xff] }
 0x422   :  { %16014 = vmatpush1.bf16.msra.mxu0 %v22910_v47  ;;  %16206 = vmatpush1.bf16.msra.mxu1 %v22911_v50  ;;  %v22916_v47 = vld [vmem:[#allocation65_spill] sm:$0xff] }
 0x423   :  { %16016 = vmatprep.subr.bf16.mxu0 %v22912_v2  ;;  %16208 = vmatprep.subr.bf16.mxu1 %v22913_v61  ;;  %v22917_v50 = vld [vmem:[#allocation121_spill] sm:$0xff]  ;;  %v22924_v61 = vld [vmem:[#allocation68_spill] sm:$0xff] }
 0x424   :  { %v22920_v2 = vld [vmem:[#allocation37_spill] sm:$0xff] }
 0x425   :  { %12407 = vperm.xlu1 %18569, %v14854_v62   ;;  %v22928_v62 = vld [vmem:[#allocation70_spill] sm:$0xff] }
 0x426   :  { %16018 = vmatpush1.bf16.msra.mxu0 %v22914_v23  ;;  %16210 = vmatpush1.bf16.msra.mxu1 %v22915_v12  ;;  %v22922_v23 = vld [vmem:[#allocation67_spill] sm:$0xff]  ;;  %v22923_v12 = vld [vmem:[#allocation124_spill] sm:$0xff] }
 0x427   :  { %16020 = vmatprep.subr.bf16.mxu0 %v22916_v47  ;;  %16212 = vmatprep.subr.bf16.mxu1 %v22917_v50  ;;  %v22926_v47 = vld [vmem:[#allocation69_spill] sm:$0xff]  ;;  %v22927_v50 = vld [vmem:[#allocation126_spill] sm:$0xff] }
 0x42a   :  { %16022 = vmatpush1.bf16.msra.mxu0 %v22918_v11  ;;  %16214 = vmatpush1.bf16.msra.mxu1 %v22919_v43  ;;  %v22929_v11 = vld [vmem:[#allocation127_spill] sm:$0xff] }
 0x42b   :  { %16024 = vmatprep.subr.bf16.mxu0 %v22920_v2  ;;  %16216 = vmatprep.subr.bf16.mxu1 %v22921_v38  ;;  %v22930_v43 = vld [vmem:[#allocation71_spill] sm:$0xff]  ;;  %v22931_v2 = vld [vmem:[#allocation128_spill] sm:$0xff]  ;;  %v22943_v38 = vld [vmem:[#allocation77_spill] sm:$0xff] }
 0x42e   :  { %16026 = vmatpush1.bf16.msra.mxu0 %v22922_v23  ;;  %16218 = vmatpush1.bf16.msra.mxu1 %v22923_v12  ;;  %v22941_v12 = vld [vmem:[#allocation76_spill] sm:$0xff]  ;;  %v22942_v23 = vld [vmem:[#allocation26_spill] sm:$0xff] }
 0x42f   :  { %16028 = vmatprep.subr.bf16.mxu0 %v22924_v61  ;;  %16220 = vmatprep.subr.bf16.mxu1 %v22925_v9  ;;  %v22939_v9 = vld [vmem:[#allocation94_spill] sm:$0xff]  ;;  %v22940_v61 = vld [vmem:[#allocation25_spill] sm:$0xff] }
 0x432   :  { %16030 = vmatpush1.bf16.msra.mxu0 %v22926_v47  ;;  %16222 = vmatpush1.bf16.msra.mxu1 %v22927_v50  ;;  %v22937_v50 = vld [vmem:[#allocation91_spill] sm:$0xff]  ;;  %v22938_v47 = vld [vmem:[#allocation24_spill] sm:$0xff] }
 0x433   :  { %16032 = vmatprep.subr.bf16.mxu0 %v22928_v62  ;;  %16224 = vmatprep.subr.bf16.mxu1 %v22929_v11  ;;  %v22935_v11 = vld [vmem:[#allocation90_spill] sm:$0xff] }
 0x434   :  { %v22936_v62 = vld [vmem:[#allocation22_spill] sm:$0xff] }
 0x436   :  { %16034 = vmatpush1.bf16.msra.mxu0 %v22930_v43  ;;  %16226 = vmatpush1.bf16.msra.mxu1 %v22931_v2  ;;  %v22933_v2 = vld [vmem:[#allocation86_spill] sm:$0xff]  ;;  %v22934_v43 = vld [vmem:[#allocation21_spill] sm:$0xff] }
 0x437   :  { %16036 = vmatprep.subr.bf16.mxu0 %v22828_v63  ;;  %16228 = vmatprep.subr.bf16.mxu1 %v22761_v27 }
 0x439   :  { %4124 = vmatmul.mubr.f32.vlgmr.msra.gmra.mrb[4].mxu0 %v20463_v30  ;;  %4979 = vmatmul.mubr.f32.vlgmr.msra.gmra.mrb[6].mxu1 %v20463_v30  ;;  %v22932_v30 = vld [vmem:[#allocation20_spill] sm:$0xff] }
 0x43a   :  { %16038 = vmatpush1.bf16.msra.mxu0 %v22829_v34  ;;  %16230 = vmatpush1.bf16.msra.mxu1 %v19540_v57 }
 0x43b   :  { %16040 = vmatprep.subr.bf16.mxu0 %v22830_v24  ;;  %16232 = vmatprep.subr.bf16.mxu1 %v19542_v40 }
 0x43c   :  { %4226 = vmatprep.mubr.f32.mxu0 %v22559_v29  ;;  %5081 = vmatprep.mubr.f32.mxu1 %v22559_v29 }
 0x43e   :  { %16042 = vmatpush1.bf16.msra.mxu0 %v22831_v28  ;;  %16234 = vmatpush1.bf16.msra.mxu1 %v19544_v19 }
 0x43f   :  { %16044 = vmatprep.subr.bf16.mxu0 %v22832_v39  ;;  %16236 = vmatprep.subr.bf16.mxu1 %v19548_v32 }
 0x442   :  { %16046 = vmatpush1.bf16.msra.mxu0 %v22833_v7  ;;  %16238 = vmatpush1.bf16.msra.mxu1 %v19550_v15 }
 0x443   :  { %16048 = vmatprep.subr.bf16.mxu0 %v22834_v25  ;;  %16240 = vmatprep.subr.bf16.mxu1 %v19552_v8 }
 0x446   :  { %16050 = vmatpush1.bf16.msra.mxu0 %v22835_v45  ;;  %16242 = vmatpush1.bf16.msra.mxu1 %v19557_v33 }
 0x447   :  { %16052 = vmatprep.subr.bf16.mxu0 %v22836_v51  ;;  %16244 = vmatprep.subr.bf16.mxu1 %v22762_v35 }
 0x44a   :  { %16054 = vmatpush1.bf16.msra.mxu0 %v22837_v36  ;;  %16246 = vmatpush1.bf16.msra.mxu1 %v22763_v49 }
 0x44b   :  { %16056 = vmatprep.subr.bf16.mxu0 %v22838_v3  ;;  %16248 = vmatprep.subr.bf16.mxu1 %v22764_v4 }
 0x44e   :  { %16058 = vmatpush1.bf16.msra.mxu0 %v22839_v42  ;;  %16250 = vmatpush1.bf16.msra.mxu1 %v22765_v58 }
 0x44f   :  { %16060 = vmatprep.subr.bf16.mxu0 %v22932_v30  ;;  %16252 = vmatprep.subr.bf16.mxu1 %v22933_v2 }
 0x452   :  { %16062 = vmatpush1.bf16.msra.mxu0 %v22934_v43  ;;  %16254 = vmatpush1.bf16.msra.mxu1 %v22935_v11 }
 0x453   :  { %16064 = vmatprep.subr.bf16.mxu0 %v22936_v62  ;;  %16256 = vmatprep.subr.bf16.mxu1 %v22937_v50 }
 0x456   :  { %16066 = vmatpush1.bf16.msra.mxu0 %v22938_v47  ;;  %16258 = vmatpush1.bf16.msra.mxu1 %v22939_v9 }
 0x457   :  { %16068 = vmatprep.subr.bf16.mxu0 %v22940_v61  ;;  %16260 = vmatprep.subr.bf16.mxu1 %v22941_v12  ;;  %v22947_v61 = vld [vmem:[#allocation79_spill] sm:$0xff]  ;;  %v22948_v12 = vld [vmem:[#allocation33_spill] sm:$0xff] }
 0x459   :  { %4230 = vmatmul.mubr.f32.vlgmr.msra.gmra.mrb[4].mxu0 %v20466_v54  ;;  %5085 = vmatmul.mubr.f32.vlgmr.msra.gmra.mrb[6].mxu1 %v20466_v54  ;;  %v22950_v54 = vld [vmem:[#allocation35_spill] sm:$0xff] }
 0x45a   :  { %16070 = vmatpush1.bf16.msra.mxu0 %v22942_v23  ;;  %16262 = vmatpush1.bf16.msra.mxu1 %v22943_v38  ;;  %v22951_v23 = vld [vmem:[#allocation81_spill] sm:$0xff]  ;;  %v22952_v38 = vld [vmem:[#allocation39_spill] sm:$0xff] }
 0x45b   :  { %16072 = vmatprep.subr.bf16.mxu0 %v22944_v31  ;;  %16264 = vmatprep.subr.bf16.mxu1 %v22945_v44  ;;  %v22953_v31 = vld [vmem:[#allocation82_spill] sm:$0xff]  ;;  %v22954_v44 = vld [vmem:[#allocation40_spill] sm:$0xff] }
 0x45c   :  { %4396 = vmatprep.mubr.f32.mxu0 %v22559_v29  ;;  %5251 = vmatprep.mubr.f32.mxu1 %v22559_v29 }
 0x45e   :  { %16074 = vmatpush1.bf16.msra.mxu0 %v22946_v53  ;;  %16266 = vmatpush1.bf16.msra.mxu1 %v22947_v61  ;;  %v22957_v53 = vld [vmem:[#allocation85_spill] sm:$0xff]  ;;  %v22958_v61 = vld [vmem:[#allocation44_spill] sm:$0xff] }
 0x45f   :  { %16076 = vmatprep.subr.bf16.mxu0 %v22948_v12  ;;  %16268 = vmatprep.subr.bf16.mxu1 %v22949_v1  ;;  %v22959_v12 = vld [vmem:[#allocation87_spill] sm:$0xff]  ;;  %v22960_v1 = vld [vmem:[#allocation46_spill] sm:$0xff] }
 0x462   :  { %16078 = vmatpush1.bf16.msra.mxu0 %v22950_v54  ;;  %16270 = vmatpush1.bf16.msra.mxu1 %v22951_v23  ;;  %v22961_v54 = vld [vmem:[#allocation88_spill] sm:$0xff]  ;;  %v22962_v23 = vld [vmem:[#allocation50_spill] sm:$0xff] }
 0x463   :  { %16080 = vmatprep.subr.bf16.mxu0 %v22952_v38  ;;  %16272 = vmatprep.subr.bf16.mxu1 %v22953_v31  ;;  %v22963_v38 = vld [vmem:[#allocation89_spill] sm:$0xff]  ;;  %v22964_v31 = vld [vmem:[#allocation52_spill] sm:$0xff] }
 0x466   :  { %16082 = vmatpush1.bf16.msra.mxu0 %v22954_v44  ;;  %16274 = vmatpush1.bf16.msra.mxu1 %v22955_v26  ;;  %v22965_v44 = vld [vmem:[#allocation92_spill] sm:$0xff]  ;;  %v22966_v26 = vld [vmem:[#allocation54_spill] sm:$0xff] }
 0x467   :  { %16084 = vmatprep.subr.bf16.mxu0 %v22956_v6  ;;  %16276 = vmatprep.subr.bf16.mxu1 %v22957_v53  ;;  %v22967_v6 = vld [vmem:[#allocation93_spill] sm:$0xff]  ;;  %v22968_v53 = vld [vmem:[#allocation56_spill] sm:$0xff] }
 0x46a   :  { %16086 = vmatpush1.bf16.msra.mxu0 %v22958_v61  ;;  %16278 = vmatpush1.bf16.msra.mxu1 %v22959_v12  ;;  %v22969_v61 = vld [vmem:[#allocation95_spill] sm:$0xff]  ;;  %v22970_v12 = vld [vmem:[#allocation58_spill] sm:$0xff] }
 0x46b   :  { %16088 = vmatprep.subr.bf16.mxu0 %v22960_v1  ;;  %16280 = vmatprep.subr.bf16.mxu1 %v22961_v54  ;;  %v22971_v1 = vld [vmem:[#allocation97_spill] sm:$0xff] }
 0x46e   :  { %16090 = vmatpush1.bf16.msra.mxu0 %v22962_v23  ;;  %16282 = vmatpush1.bf16.msra.mxu1 %v22963_v38 }
 0x46f   :  { %16092 = vmatprep.subr.bf16.mxu0 %v22964_v31  ;;  %16284 = vmatprep.subr.bf16.mxu1 %v22965_v44  ;;  %v22976_v44 = vld [vmem:[#allocation75_spill] sm:$0xff] }
 0x472   :  { %16094 = vmatpush1.bf16.msra.mxu0 %v22966_v26  ;;  %16286 = vmatpush1.bf16.msra.mxu1 %v22967_v6  ;;  %v22975_v6 = vld [vmem:[#allocation72_spill] sm:$0xff] }
 0x473   :  { %16096 = vmatprep.subr.bf16.mxu0 %v22968_v53  ;;  %16288 = vmatprep.subr.bf16.mxu1 %v22969_v61  ;;  %v22974_v61 = vld [vmem:[#allocation73_spill] sm:$0xff] }
 0x476   :  { %16098 = vmatpush1.bf16.msra.mxu0 %v22970_v12  ;;  %16290 = vmatpush1.bf16.msra.mxu1 %v22971_v1  ;;  %v22973_v1 = vld [vmem:[#allocation96_spill] sm:$0xff] }
 0x477   :  { %16100 = vmatprep.subr.bf16.mxu0 %v22828_v63  ;;  %16292 = vmatprep.subr.bf16.mxu1 %v22761_v27 }
 0x479   :  { %4398 = vmatmul.mubr.f32.vlgmr.msra.gmra.mrb[4].mxu0 %v20460_v46  ;;  %5253 = vmatmul.mubr.f32.vlgmr.msra.gmra.mrb[6].mxu1 %v20460_v46 }
 0x47a   :  { %16102 = vmatpush1.bf16.msra.mxu0 %v22829_v34  ;;  %16294 = vmatpush1.bf16.msra.mxu1 %v19540_v57 }
 0x47b   :  { %16104 = vmatprep.subr.bf16.mxu0 %v22830_v24  ;;  %16296 = vmatprep.subr.bf16.mxu1 %v19542_v40 }
 0x47c   :  { %4500 = vmatprep.mubr.f32.mxu0 %v22559_v29  ;;  %5355 = vmatprep.mubr.f32.mxu1 %v22559_v29 }
 0x47e   :  { %16106 = vmatpush1.bf16.msra.mxu0 %v22831_v28  ;;  %16298 = vmatpush1.bf16.msra.mxu1 %v19544_v19 }
 0x47f   :  { %16108 = vmatprep.subr.bf16.mxu0 %v22832_v39  ;;  %16300 = vmatprep.subr.bf16.mxu1 %v19548_v32 }
 0x482   :  { %16110 = vmatpush1.bf16.msra.mxu0 %v22833_v7  ;;  %16302 = vmatpush1.bf16.msra.mxu1 %v19550_v15 }
 0x483   :  { %16112 = vmatprep.subr.bf16.mxu0 %v22834_v25  ;;  %16304 = vmatprep.subr.bf16.mxu1 %v19552_v8 }
 0x486   :  { %16114 = vmatpush1.bf16.msra.mxu0 %v22835_v45  ;;  %16306 = vmatpush1.bf16.msra.mxu1 %v19557_v33 }
 0x487   :  { %16116 = vmatprep.subr.bf16.mxu0 %v22836_v51  ;;  %16308 = vmatprep.subr.bf16.mxu1 %v22762_v35 }
 0x48a   :  { %16118 = vmatpush1.bf16.msra.mxu0 %v22837_v36  ;;  %16310 = vmatpush1.bf16.msra.mxu1 %v22763_v49 }
 0x48b   :  { %16120 = vmatprep.subr.bf16.mxu0 %v22838_v3  ;;  %16312 = vmatprep.subr.bf16.mxu1 %v22764_v4 }
 0x48e   :  { %16122 = vmatpush1.bf16.msra.mxu0 %v22839_v42  ;;  %16314 = vmatpush1.bf16.msra.mxu1 %v22765_v58 }
 0x48f   :  { %16124 = vmatprep.subr.bf16.mxu0 %v22932_v30  ;;  %16316 = vmatprep.subr.bf16.mxu1 %v22933_v2 }
 0x492   :  { %16126 = vmatpush1.bf16.msra.mxu0 %v22934_v43  ;;  %16318 = vmatpush1.bf16.msra.mxu1 %v22935_v11 }
 0x493   :  { %16128 = vmatprep.subr.bf16.mxu0 %v22936_v62  ;;  %16320 = vmatprep.subr.bf16.mxu1 %v22937_v50  ;;  %v3643_v12 = vpop.permute.xlu1 %3642 }
 0x494   :  { %v3645_v53 = vmul.f32 %v3643_v12, %v22974_v61  ;;  %v3646_v26 = vmul.f32 %v3643_v12, %v22975_v6 }
 0x496   :  { %16130 = vmatpush1.bf16.msra.mxu0 %v22938_v47  ;;  %16322 = vmatpush1.bf16.msra.mxu1 %v22939_v9  ;;  %v3649_v31 = vadd.f32 %v3645_v53, %v22976_v44  ;;  %v3650_v38 = vadd.f32 %v3646_v26, %v20202_v20 }
 0x497   :  { %16324 = vmatprep.subr.bf16.mxu0 %v22828_v63  ;;  %16516 = vmatprep.subr.bf16.mxu1 %v22761_v27 }
 0x499   :  { %4502 = vmatmul.mubr.f32.vlgmr.msra.gmra.mrb[4].mxu0 %v20460_v46  ;;  %5357 = vmatmul.mubr.f32.vlgmr.msra.gmra.mrb[6].mxu1 %v20460_v46  ;;  %v22972_v46 = vld [vmem:[#allocation28_spill] sm:$0xff] }
 0x49a   :  { %16326 = vmatpush1.bf16.msra.mxu0 %v22829_v34  ;;  %16518 = vmatpush1.bf16.msra.mxu1 %v19540_v57 }
 0x49b   :  { %16328 = vmatprep.subr.bf16.mxu0 %v22830_v24  ;;  %16520 = vmatprep.subr.bf16.mxu1 %v19542_v40 }
 0x49c   :  { %5502 = vmatprep.mubr.f32.mxu0 %v22559_v29  ;;  %6357 = vmatprep.mubr.f32.mxu1 %v22559_v29 }
 0x49e   :  { %16330 = vmatpush1.bf16.msra.mxu0 %v22831_v28  ;;  %16522 = vmatpush1.bf16.msra.mxu1 %v19544_v19 }
 0x49f   :  { %16332 = vmatprep.subr.bf16.mxu0 %v22832_v39  ;;  %16524 = vmatprep.subr.bf16.mxu1 %v19548_v32 }
 0x4a2   :  { %16334 = vmatpush1.bf16.msra.mxu0 %v22833_v7  ;;  %16526 = vmatpush1.bf16.msra.mxu1 %v19550_v15 }
 0x4a3   :  { %16336 = vmatprep.subr.bf16.mxu0 %v22834_v25  ;;  %16528 = vmatprep.subr.bf16.mxu1 %v19552_v8 }
 0x4a6   :  { %16338 = vmatpush1.bf16.msra.mxu0 %v22835_v45  ;;  %16530 = vmatpush1.bf16.msra.mxu1 %v19557_v33 }
 0x4a7   :  { %16340 = vmatprep.subr.bf16.mxu0 %v22836_v51  ;;  %16532 = vmatprep.subr.bf16.mxu1 %v22762_v35 }
 0x4aa   :  { %16342 = vmatpush1.bf16.msra.mxu0 %v22837_v36  ;;  %16534 = vmatpush1.bf16.msra.mxu1 %v22763_v49 }
 0x4ab   :  { %16344 = vmatprep.subr.bf16.mxu0 %v22838_v3  ;;  %16536 = vmatprep.subr.bf16.mxu1 %v22764_v4 }
 0x4ae   :  { %16346 = vmatpush1.bf16.msra.mxu0 %v22839_v42  ;;  %16538 = vmatpush1.bf16.msra.mxu1 %v22765_v58 }
 0x4af   :  { %16348 = vmatprep.subr.bf16.mxu0 %v22932_v30  ;;  %16540 = vmatprep.subr.bf16.mxu1 %v22933_v2 }
 0x4b2   :  { %16350 = vmatpush1.bf16.msra.mxu0 %v22934_v43  ;;  %16542 = vmatpush1.bf16.msra.mxu1 %v22935_v11 }
 0x4b3   :  { %16352 = vmatprep.subr.bf16.mxu0 %v22936_v62  ;;  %16544 = vmatprep.subr.bf16.mxu1 %v22937_v50 }
 0x4b6   :  { %16354 = vmatpush1.bf16.msra.mxu0 %v22938_v47  ;;  %16546 = vmatpush1.bf16.msra.mxu1 %v22939_v9  ;;  %v3647_v47 = vmul.f32 %v3643_v12, %v22882_v22 }
 0x4b7   :  { %16356 = vmatprep.subr.bf16.mxu0 %v22972_v46  ;;  %16548 = vmatprep.subr.bf16.mxu1 %v22973_v1  ;;  %v3648_v1 = vmul.f32 %v3643_v12, %v22883_v41 }
 0x4b8   :  { %v3651_v61 = vadd.f32 %v3647_v47, %v20214_v14 }
 0x4b9   :  { %v3652_v53 = vadd.f32 %v3648_v1, %v20217_v37 }
 0x56c   :  { %v4503_v23 = vpop.f32.mrb[4].mxu0  ;;  %v5358_v54 = vpop.f32.mrb[6].mxu1 }
 0x56d   :  { %v5363_v50 = vadd.f32 %v4503_v23, %v3649_v31  ;;  %v4505_v62 = vpop.f32.mrb[5].mxu0  ;;  %v5360_v9 = vpop.f32.mrb[7].mxu1  ;;  %v5365_v44 = vadd.f32 %v5358_v54, %v3651_v61 }
 0x56e   :  { %v5364_v11 = vadd.f32 %v4505_v62, %v3650_v38  ;;  %v5366_v26 = vadd.f32 %v5360_v9, %v3652_v53 }
 0x56f   :  { %v14835_v46 = vmul.f32 -1.442695, %v5363_v50  ;;  %v14837_v20 = vmul.f32 -1.442695, %v5365_v44 }
 0x570   :  { %v14836_v43 = vmul.f32 -1.442695, %v5364_v11 }
 0x571   :  { %18602 = vpow2.f32 %v14835_v46 }
 0x572   :  { %18604 = vpow2.f32 %v14836_v43 }
 0x573   :  { %18606 = vtanh.f32 %v5366_v26  ;;  %v22977_v26 = vld [vmem:[#allocation104_spill] sm:$0xff] }
 0x574   :  { %18608 = vpow2.f32 %v14837_v20 }
 0x57b   :  { %v18603_v6 = vpop.eup %18602 }
 0x57c   :  { %v5376_v31 = vadd.f32 1.0, %v18603_v6  ;;  %v18605_v23 = vpop.eup %18604 }
 0x57d   :  { %v5377_v38 = vadd.f32 1.0, %v18605_v23  ;;  %v18607_v50 = vpop.eup %18606  ;;  %v22979_v23 = vld [vmem:[#allocation105_spill] sm:$0xff] }
 0x57e   :  { %18610 = vrcp.f32 %v5376_v31  ;;  %v18609_v11 = vpop.eup %18608  ;;  %v22978_v31 = vld [vmem:[#allocation45_spill] sm:$0xff] }
 0x57f   :  { %18612 = vrcp.f32 %v5377_v38  ;;  %v5378_v47 = vadd.f32 1.0, %v18609_v11  ;;  %v22980_v38 = vld [vmem:[#allocation47_spill] sm:$0xff]  ;;  %v22982_v11 = vld [vmem:[#allocation48_spill] sm:$0xff] }
 0x581   :  { %18614 = vrcp.f32 %v5378_v47  ;;  %v22986_v47 = vld [vmem:[#allocation51_spill] sm:$0xff] }
 0x588   :  { %v18611_v12 = vpop.eup %18610 }
 0x589   :  { %v5387_v62 = vmul.f32 %v18611_v12, %v18607_v50  ;;  %v18613_v46 = vpop.eup %18612  ;;  %v22981_v50 = vld [vmem:[#allocation106_spill] sm:$0xff]  ;;  %v22983_v12 = vld [vmem:[#allocation107_spill] sm:$0xff] }
 0x58a   :  { %v5386_v43 = vmul.f32 %v18613_v46, %v20457_v55  ;;  %v22985_v46 = vld [vmem:[#allocation108_spill] sm:$0xff] }
 0x58b   :  { %v18615_v6 = vpop.eup %18614 }
 0x58c   :  { %v20705_v1 = vadd.f32 %v5387_v62, %v5386_v43  ;;  %v22984_v62 = vld [vmem:[#allocation49_spill] sm:$0xff] }
 0x58d   :  { %v22987_v43 = vld [vmem:[#allocation109_spill] sm:$0xff] }
 0x58e   :  { %18616 = vtanh.f32 %v20705_v1 }
 0x598   :  { %v18617_v44 = vpop.eup %18616 }
 0x599   :  { %v5390_v61 = vmul.f32 %v18617_v44, %v18615_v6  ;;  %v22988_v6 = vld [vmem:[#allocation53_spill] sm:$0xff]  ;;  %v22989_v44 = vld [vmem:[#allocation110_spill] sm:$0xff] }
 0x59b   :  { %v20708_v20 = vand.u32 4294901760, %v5390_v61 }
 0x59d   :  { %v20711_v9 = vsub.f32 %v5390_v61, %v20708_v20  ;;  %v22990_v61 = vld [vmem:[#allocation55_spill] sm:$0xff] }
 0x59f   :  { %v20714_v54 = vand.u32 4294901760, %v20711_v9 }
 0x5a1   :  { %v5506_v53 = vsub.f32 %v20711_v9, %v20714_v54 }
 0x5a3   :  { %v5507_v55 = vand.u32 4294901760, %v5506_v53  ;;  %v22991_v53 = vld [vmem:[#allocation111_spill] sm:$0xff] }
 0x5a5   :  { %5508 = vmatmul.mubr.f32.vlgmr.msra.gmra.mrb[6].mxu0 %v5507_v55  ;;  %6363 = vmatmul.mubr.f32.vlgmr.msra.gmra.mrb[8].mxu1 %v5507_v55  ;;  %v22992_v55 = vld [vmem:[#allocation57_spill] sm:$0xff] }
 0x5a6   :  { %16358 = vmatpush1.bf16.msra.mxu0 %v22792_v13  ;;  %16550 = vmatpush1.bf16.msra.mxu1 %v22793_v48 }
 0x5a7   :  { %16360 = vmatprep.subr.bf16.mxu0 %v22794_v10  ;;  %16552 = vmatprep.subr.bf16.mxu1 %v22795_v17 }
 0x5a8   :  { %5738 = vmatprep.mubr.f32.mxu0 %v22559_v29  ;;  %6593 = vmatprep.mubr.f32.mxu1 %v22559_v29 }
 0x5aa   :  { %16362 = vmatpush1.bf16.msra.mxu0 %v22796_v56  ;;  %16554 = vmatpush1.bf16.msra.mxu1 %v22797_v60 }
 0x5ab   :  { %16364 = vmatprep.subr.bf16.mxu0 %v22798_v0  ;;  %16556 = vmatprep.subr.bf16.mxu1 %v22799_v18 }
 0x5ae   :  { %16366 = vmatpush1.bf16.msra.mxu0 %v22800_v21  ;;  %16558 = vmatpush1.bf16.msra.mxu1 %v22884_v59 }
 0x5af   :  { %16368 = vmatprep.subr.bf16.mxu0 %v22801_v5  ;;  %16560 = vmatprep.subr.bf16.mxu1 %v22885_v52 }
 0x5b2   :  { %16370 = vmatpush1.bf16.msra.mxu0 %v22802_v16  ;;  %16562 = vmatpush1.bf16.msra.mxu1 %v22977_v26 }
 0x5b3   :  { %16372 = vmatprep.subr.bf16.mxu0 %v22978_v31  ;;  %16564 = vmatprep.subr.bf16.mxu1 %v22979_v23  ;;  %v23047_v23 = vld [vmem:[#allocation83_spill] sm:$0xff]  ;;  %v23048_v31 = vld [vmem:[#allocation42_spill] sm:$0xff] }
 0x5b6   :  { %16374 = vmatpush1.bf16.msra.mxu0 %v22980_v38  ;;  %16566 = vmatpush1.bf16.msra.mxu1 %v22981_v50  ;;  %v23038_v50 = vld [vmem:[#allocation32_spill] sm:$0xff] }
 0x5b7   :  { %16376 = vmatprep.subr.bf16.mxu0 %v22982_v11  ;;  %16568 = vmatprep.subr.bf16.mxu1 %v22983_v12  ;;  %v22993_v11 = vld [vmem:[#allocation112_spill] sm:$0xff]  ;;  %v22994_v12 = vld [vmem:[#allocation59_spill] sm:$0xff] }
 0x5b8   :  { %v23041_v38 = vld [vmem:[#allocation80_spill] sm:$0xff] }
 0x5ba   :  { %16378 = vmatpush1.bf16.msra.mxu0 %v22984_v62  ;;  %16570 = vmatpush1.bf16.msra.mxu1 %v22985_v46  ;;  %v22995_v62 = vld [vmem:[#allocation113_spill] sm:$0xff] }
 0x5bb   :  { %16380 = vmatprep.subr.bf16.mxu0 %v22986_v47  ;;  %16572 = vmatprep.subr.bf16.mxu1 %v22987_v43  ;;  %v22996_v43 = vld [vmem:[#allocation60_spill] sm:$0xff]  ;;  %v23010_v46 = vld [vmem:[#allocation65_spill] sm:$0xff] }
 0x5bc   :  { %v23009_v47 = vld [vmem:[#allocation120_spill] sm:$0xff] }
 0x5be   :  { %16382 = vmatpush1.bf16.msra.mxu0 %v22988_v6  ;;  %16574 = vmatpush1.bf16.msra.mxu1 %v22989_v44  ;;  %v22997_v6 = vld [vmem:[#allocation114_spill] sm:$0xff]  ;;  %v22998_v44 = vld [vmem:[#allocation61_spill] sm:$0xff] }
 0x5bf   :  { %16384 = vmatprep.subr.bf16.mxu0 %v22990_v61  ;;  %16576 = vmatprep.subr.bf16.mxu1 %v22991_v53  ;;  %v22999_v61 = vld [vmem:[#allocation115_spill] sm:$0xff] }
 0x5c0   :  { %v23004_v53 = vld [vmem:[#allocation63_spill] sm:$0xff] }
 0x5c2   :  { %16386 = vmatpush1.bf16.msra.mxu0 %v22992_v55  ;;  %16578 = vmatpush1.bf16.msra.mxu1 %v22993_v11  ;;  %v23000_v11 = vld [vmem:[#allocation62_spill] sm:$0xff]  ;;  %v23003_v55 = vld [vmem:[#allocation117_spill] sm:$0xff] }
 0x5c3   :  { %16388 = vmatprep.subr.bf16.mxu0 %v22994_v12  ;;  %16580 = vmatprep.subr.bf16.mxu1 %v22995_v62  ;;  %v23001_v12 = vld [vmem:[#allocation116_spill] sm:$0xff]  ;;  %v23002_v62 = vld [vmem:[#allocation23_spill] sm:$0xff] }
 0x5c5   :  { %5740 = vmatmul.mubr.f32.vlgmr.msra.gmra.mrb[6].mxu0 %v20708_v20  ;;  %6595 = vmatmul.mubr.f32.vlgmr.msra.gmra.mrb[8].mxu1 %v20708_v20 }
 0x5c6   :  { %16390 = vmatpush1.bf16.msra.mxu0 %v22996_v43  ;;  %16582 = vmatpush1.bf16.msra.mxu1 %v22997_v6  ;;  %v23005_v43 = vld [vmem:[#allocation118_spill] sm:$0xff] }
 0x5c7   :  { %16392 = vmatprep.subr.bf16.mxu0 %v22998_v44  ;;  %16584 = vmatprep.subr.bf16.mxu1 %v22999_v61  ;;  %v23006_v6 = vld [vmem:[#allocation30_spill] sm:$0xff]  ;;  %v23007_v44 = vld [vmem:[#allocation119_spill] sm:$0xff]  ;;  %v23008_v61 = vld [vmem:[#allocation64_spill] sm:$0xff] }
 0x5c8   :  { %5874 = vmatprep.mubr.f32.mxu0 %v22559_v29  ;;  %6729 = vmatprep.mubr.f32.mxu1 %v22559_v29 }
 0x5ca   :  { %16394 = vmatpush1.bf16.msra.mxu0 %v23000_v11  ;;  %16586 = vmatpush1.bf16.msra.mxu1 %v23001_v12  ;;  %v23011_v11 = vld [vmem:[#allocation121_spill] sm:$0xff]  ;;  %v23012_v12 = vld [vmem:[#allocation66_spill] sm:$0xff] }
 0x5cb   :  { %16396 = vmatprep.subr.bf16.mxu0 %v23002_v62  ;;  %16588 = vmatprep.subr.bf16.mxu1 %v23003_v55  ;;  %v23013_v62 = vld [vmem:[#allocation122_spill] sm:$0xff]  ;;  %v23014_v55 = vld [vmem:[#allocation37_spill] sm:$0xff] }
 0x5ce   :  { %16398 = vmatpush1.bf16.msra.mxu0 %v23004_v53  ;;  %16590 = vmatpush1.bf16.msra.mxu1 %v23005_v43  ;;  %v23015_v53 = vld [vmem:[#allocation123_spill] sm:$0xff] }
 0x5cf   :  { %16400 = vmatprep.subr.bf16.mxu0 %v23006_v6  ;;  %16592 = vmatprep.subr.bf16.mxu1 %v23007_v44  ;;  %v23016_v43 = vld [vmem:[#allocation67_spill] sm:$0xff]  ;;  %v23017_v6 = vld [vmem:[#allocation124_spill] sm:$0xff] }
 0x5d0   :  { %v23018_v44 = vld [vmem:[#allocation68_spill] sm:$0xff] }
 0x5d2   :  { %16402 = vmatpush1.bf16.msra.mxu0 %v23008_v61  ;;  %16594 = vmatpush1.bf16.msra.mxu1 %v23009_v47  ;;  %v23019_v61 = vld [vmem:[#allocation125_spill] sm:$0xff] }
 0x5d3   :  { %16404 = vmatprep.subr.bf16.mxu0 %v23010_v46  ;;  %16596 = vmatprep.subr.bf16.mxu1 %v23011_v11  ;;  %v23020_v47 = vld [vmem:[#allocation69_spill] sm:$0xff]  ;;  %v23021_v46 = vld [vmem:[#allocation126_spill] sm:$0xff] }
 0x5d4   :  { %v23022_v11 = vld [vmem:[#allocation70_spill] sm:$0xff] }
 0x5d6   :  { %16406 = vmatpush1.bf16.msra.mxu0 %v23012_v12  ;;  %16598 = vmatpush1.bf16.msra.mxu1 %v23013_v62  ;;  %v23023_v12 = vld [vmem:[#allocation127_spill] sm:$0xff] }
 0x5d7   :  { %16408 = vmatprep.subr.bf16.mxu0 %v23014_v55  ;;  %16600 = vmatprep.subr.bf16.mxu1 %v23015_v53  ;;  %v23024_v62 = vld [vmem:[#allocation71_spill] sm:$0xff]  ;;  %v23025_v55 = vld [vmem:[#allocation128_spill] sm:$0xff]  ;;  %v23037_v53 = vld [vmem:[#allocation78_spill] sm:$0xff] }
 0x5da   :  { %16410 = vmatpush1.bf16.msra.mxu0 %v23016_v43  ;;  %16602 = vmatpush1.bf16.msra.mxu1 %v23017_v6  ;;  %v23035_v6 = vld [vmem:[#allocation77_spill] sm:$0xff]  ;;  %v23036_v43 = vld [vmem:[#allocation27_spill] sm:$0xff] }
 0x5db   :  { %16412 = vmatprep.subr.bf16.mxu0 %v23018_v44  ;;  %16604 = vmatprep.subr.bf16.mxu1 %v23019_v61  ;;  %v23033_v61 = vld [vmem:[#allocation76_spill] sm:$0xff]  ;;  %v23034_v44 = vld [vmem:[#allocation26_spill] sm:$0xff] }
 0x5de   :  { %16414 = vmatpush1.bf16.msra.mxu0 %v23020_v47  ;;  %16606 = vmatpush1.bf16.msra.mxu1 %v23021_v46  ;;  %v23031_v46 = vld [vmem:[#allocation94_spill] sm:$0xff]  ;;  %v23032_v47 = vld [vmem:[#allocation25_spill] sm:$0xff] }
 0x5df   :  { %16416 = vmatprep.subr.bf16.mxu0 %v23022_v11  ;;  %16608 = vmatprep.subr.bf16.mxu1 %v23023_v12  ;;  %v23029_v12 = vld [vmem:[#allocation91_spill] sm:$0xff]  ;;  %v23030_v11 = vld [vmem:[#allocation24_spill] sm:$0xff] }
 0x5e2   :  { %16418 = vmatpush1.bf16.msra.mxu0 %v23024_v62  ;;  %16610 = vmatpush1.bf16.msra.mxu1 %v23025_v55  ;;  %v23027_v55 = vld [vmem:[#allocation90_spill] sm:$0xff] }
 0x5e3   :  { %16420 = vmatprep.subr.bf16.mxu0 %v22828_v63  ;;  %16612 = vmatprep.subr.bf16.mxu1 %v22761_v27  ;;  %v23028_v62 = vld [vmem:[#allocation22_spill] sm:$0xff] }
 0x5e5   :  { %5877 = vmatmul.mubr.f32.vlgmr.msra.gmra.mrb[6].mxu0 %v20711_v9  ;;  %6732 = vmatmul.mubr.f32.vlgmr.msra.gmra.mrb[8].mxu1 %v20711_v9  ;;  %v23026_v9 = vld [vmem:[#allocation21_spill] sm:$0xff] }
 0x5e6   :  { %16422 = vmatpush1.bf16.msra.mxu0 %v22829_v34  ;;  %16614 = vmatpush1.bf16.msra.mxu1 %v19540_v57 }
 0x5e7   :  { %16424 = vmatprep.subr.bf16.mxu0 %v22830_v24  ;;  %16616 = vmatprep.subr.bf16.mxu1 %v19542_v40 }
 0x5e8   :  { %5979 = vmatprep.mubr.f32.mxu0 %v22559_v29  ;;  %6834 = vmatprep.mubr.f32.mxu1 %v22559_v29 }
 0x5ea   :  { %16426 = vmatpush1.bf16.msra.mxu0 %v22831_v28  ;;  %16618 = vmatpush1.bf16.msra.mxu1 %v19544_v19 }
 0x5eb   :  { %16428 = vmatprep.subr.bf16.mxu0 %v22832_v39  ;;  %16620 = vmatprep.subr.bf16.mxu1 %v19548_v32 }
 0x5ee   :  { %16430 = vmatpush1.bf16.msra.mxu0 %v22833_v7  ;;  %16622 = vmatpush1.bf16.msra.mxu1 %v19550_v15 }
 0x5ef   :  { %16432 = vmatprep.subr.bf16.mxu0 %v22834_v25  ;;  %16624 = vmatprep.subr.bf16.mxu1 %v19552_v8 }
 0x5f2   :  { %16434 = vmatpush1.bf16.msra.mxu0 %v22835_v45  ;;  %16626 = vmatpush1.bf16.msra.mxu1 %v19557_v33 }
 0x5f3   :  { %16436 = vmatprep.subr.bf16.mxu0 %v22836_v51  ;;  %16628 = vmatprep.subr.bf16.mxu1 %v22762_v35 }
 0x5f6   :  { %16438 = vmatpush1.bf16.msra.mxu0 %v22837_v36  ;;  %16630 = vmatpush1.bf16.msra.mxu1 %v22763_v49 }
 0x5f7   :  { %16440 = vmatprep.subr.bf16.mxu0 %v22838_v3  ;;  %16632 = vmatprep.subr.bf16.mxu1 %v22764_v4 }
 0x5fa   :  { %16442 = vmatpush1.bf16.msra.mxu0 %v22839_v42  ;;  %16634 = vmatpush1.bf16.msra.mxu1 %v22765_v58 }
 0x5fb   :  { %16444 = vmatprep.subr.bf16.mxu0 %v22932_v30  ;;  %16636 = vmatprep.subr.bf16.mxu1 %v22933_v2 }
 0x5fe   :  { %16446 = vmatpush1.bf16.msra.mxu0 %v23026_v9  ;;  %16638 = vmatpush1.bf16.msra.mxu1 %v23027_v55 }
 0x5ff   :  { %16448 = vmatprep.subr.bf16.mxu0 %v23028_v62  ;;  %16640 = vmatprep.subr.bf16.mxu1 %v23029_v12 }
 0x602   :  { %16450 = vmatpush1.bf16.msra.mxu0 %v23030_v11  ;;  %16642 = vmatpush1.bf16.msra.mxu1 %v23031_v46 }
 0x603   :  { %16452 = vmatprep.subr.bf16.mxu0 %v23032_v47  ;;  %16644 = vmatprep.subr.bf16.mxu1 %v23033_v61  ;;  %v23039_v47 = vld [vmem:[#allocation79_spill] sm:$0xff]  ;;  %v23040_v61 = vld [vmem:[#allocation33_spill] sm:$0xff] }
 0x605   :  { %5983 = vmatmul.mubr.f32.vlgmr.msra.gmra.mrb[6].mxu0 %v20714_v54  ;;  %6838 = vmatmul.mubr.f32.vlgmr.msra.gmra.mrb[8].mxu1 %v20714_v54  ;;  %v23042_v54 = vld [vmem:[#allocation35_spill] sm:$0xff] }
 0x606   :  { %16454 = vmatpush1.bf16.msra.mxu0 %v23034_v44  ;;  %16646 = vmatpush1.bf16.msra.mxu1 %v23035_v6  ;;  %v23043_v44 = vld [vmem:[#allocation81_spill] sm:$0xff]  ;;  %v23044_v6 = vld [vmem:[#allocation39_spill] sm:$0xff] }
 0x607   :  { %16456 = vmatprep.subr.bf16.mxu0 %v23036_v43  ;;  %16648 = vmatprep.subr.bf16.mxu1 %v23037_v53  ;;  %v23045_v43 = vld [vmem:[#allocation82_spill] sm:$0xff]  ;;  %v23046_v53 = vld [vmem:[#allocation40_spill] sm:$0xff] }
 0x608   :  { %6149 = vmatprep.mubr.f32.mxu0 %v22559_v29  ;;  %7004 = vmatprep.mubr.f32.mxu1 %v22559_v29 }
 0x60a   :  { %16458 = vmatpush1.bf16.msra.mxu0 %v23038_v50  ;;  %16650 = vmatpush1.bf16.msra.mxu1 %v23039_v47  ;;  %v23049_v50 = vld [vmem:[#allocation85_spill] sm:$0xff]  ;;  %v23050_v47 = vld [vmem:[#allocation44_spill] sm:$0xff] }
 0x60b   :  { %16460 = vmatprep.subr.bf16.mxu0 %v23040_v61  ;;  %16652 = vmatprep.subr.bf16.mxu1 %v23041_v38  ;;  %v23051_v61 = vld [vmem:[#allocation87_spill] sm:$0xff]  ;;  %v23052_v38 = vld [vmem:[#allocation46_spill] sm:$0xff] }
 0x60e   :  { %16462 = vmatpush1.bf16.msra.mxu0 %v23042_v54  ;;  %16654 = vmatpush1.bf16.msra.mxu1 %v23043_v44  ;;  %v23053_v54 = vld [vmem:[#allocation88_spill] sm:$0xff]  ;;  %v23054_v44 = vld [vmem:[#allocation50_spill] sm:$0xff] }
 0x60f   :  { %16464 = vmatprep.subr.bf16.mxu0 %v23044_v6  ;;  %16656 = vmatprep.subr.bf16.mxu1 %v23045_v43  ;;  %v23055_v6 = vld [vmem:[#allocation89_spill] sm:$0xff]  ;;  %v23056_v43 = vld [vmem:[#allocation52_spill] sm:$0xff] }
 0x612   :  { %16466 = vmatpush1.bf16.msra.mxu0 %v23046_v53  ;;  %16658 = vmatpush1.bf16.msra.mxu1 %v23047_v23  ;;  %v23057_v53 = vld [vmem:[#allocation92_spill] sm:$0xff]  ;;  %v23058_v23 = vld [vmem:[#allocation54_spill] sm:$0xff] }
 0x613   :  { %16468 = vmatprep.subr.bf16.mxu0 %v23048_v31  ;;  %16660 = vmatprep.subr.bf16.mxu1 %v23049_v50  ;;  %v23059_v31 = vld [vmem:[#allocation93_spill] sm:$0xff]  ;;  %v23060_v50 = vld [vmem:[#allocation56_spill] sm:$0xff] }
 0x616   :  { %16470 = vmatpush1.bf16.msra.mxu0 %v23050_v47  ;;  %16662 = vmatpush1.bf16.msra.mxu1 %v23051_v61  ;;  %v23061_v47 = vld [vmem:[#allocation95_spill] sm:$0xff]  ;;  %v23062_v61 = vld [vmem:[#allocation58_spill] sm:$0xff] }
 0x617   :  { %16472 = vmatprep.subr.bf16.mxu0 %v23052_v38  ;;  %16664 = vmatprep.subr.bf16.mxu1 %v23053_v54  ;;  %v23063_v38 = vld [vmem:[#allocation97_spill] sm:$0xff]  ;;  %v23069_v54 = vld [vmem:[#allocation74_spill] sm:$0xff] }
 0x61a   :  { %16474 = vmatpush1.bf16.msra.mxu0 %v23054_v44  ;;  %16666 = vmatpush1.bf16.msra.mxu1 %v23055_v6 }
 0x61b   :  { %16476 = vmatprep.subr.bf16.mxu0 %v23056_v43  ;;  %16668 = vmatprep.subr.bf16.mxu1 %v23057_v53  ;;  %v23068_v53 = vld [vmem:[#allocation75_spill] sm:$0xff] }
 0x61e   :  { %16478 = vmatpush1.bf16.msra.mxu0 %v23058_v23  ;;  %16670 = vmatpush1.bf16.msra.mxu1 %v23059_v31  ;;  %v23067_v31 = vld [vmem:[#allocation72_spill] sm:$0xff] }
 0x61f   :  { %16480 = vmatprep.subr.bf16.mxu0 %v23060_v50  ;;  %16672 = vmatprep.subr.bf16.mxu1 %v23061_v47  ;;  %v23066_v47 = vld [vmem:[#allocation73_spill] sm:$0xff] }
 0x622   :  { %16482 = vmatpush1.bf16.msra.mxu0 %v23062_v61  ;;  %16674 = vmatpush1.bf16.msra.mxu1 %v23063_v38  ;;  %v23065_v38 = vld [vmem:[#allocation96_spill] sm:$0xff]  ;;  %v5396_v61 = vpop.permute.xlu1 %5395 }
 0x623   :  { %16484 = vmatprep.subr.bf16.mxu0 %v22828_v63  ;;  %16676 = vmatprep.subr.bf16.mxu1 %v22761_v27  ;;  %v5398_v50 = vmul.f32 %v5396_v61, %v23066_v47  ;;  %v5399_v23 = vmul.f32 %v5396_v61, %v23067_v31 }
 0x625   :  { %6151 = vmatmul.mubr.f32.vlgmr.msra.gmra.mrb[6].mxu0 %v20708_v20  ;;  %7006 = vmatmul.mubr.f32.vlgmr.msra.gmra.mrb[8].mxu1 %v20708_v20  ;;  %v5402_v43 = vadd.f32 %v5398_v50, %v23068_v53 }
 0x626   :  { %16486 = vmatpush1.bf16.msra.mxu0 %v22829_v34  ;;  %16678 = vmatpush1.bf16.msra.mxu1 %v19540_v57 }
 0x627   :  { %16488 = vmatprep.subr.bf16.mxu0 %v22830_v24  ;;  %16680 = vmatprep.subr.bf16.mxu1 %v19542_v40 }
 0x628   :  { %6253 = vmatprep.mubr.f32.mxu0 %v22559_v29  ;;  %7108 = vmatprep.mubr.f32.mxu1 %v22559_v29 }
 0x62a   :  { %16490 = vmatpush1.bf16.msra.mxu0 %v22831_v28  ;;  %16682 = vmatpush1.bf16.msra.mxu1 %v19544_v19 }
 0x62b   :  { %16492 = vmatprep.subr.bf16.mxu0 %v22832_v39  ;;  %16684 = vmatprep.subr.bf16.mxu1 %v19548_v32 }
 0x62e   :  { %16494 = vmatpush1.bf16.msra.mxu0 %v22833_v7  ;;  %16686 = vmatpush1.bf16.msra.mxu1 %v19550_v15 }
 0x62f   :  { %16496 = vmatprep.subr.bf16.mxu0 %v22834_v25  ;;  %16688 = vmatprep.subr.bf16.mxu1 %v19552_v8 }
 0x632   :  { %16498 = vmatpush1.bf16.msra.mxu0 %v22835_v45  ;;  %16690 = vmatpush1.bf16.msra.mxu1 %v19557_v33 }
 0x633   :  { %16500 = vmatprep.subr.bf16.mxu0 %v22836_v51  ;;  %16692 = vmatprep.subr.bf16.mxu1 %v22762_v35 }
 0x636   :  { %16502 = vmatpush1.bf16.msra.mxu0 %v22837_v36  ;;  %16694 = vmatpush1.bf16.msra.mxu1 %v22763_v49 }
 0x637   :  { %16504 = vmatprep.subr.bf16.mxu0 %v22838_v3  ;;  %16696 = vmatprep.subr.bf16.mxu1 %v22764_v4 }
 0x63a   :  { %16506 = vmatpush1.bf16.msra.mxu0 %v22839_v42  ;;  %16698 = vmatpush1.bf16.msra.mxu1 %v22765_v58 }
 0x63b   :  { %16508 = vmatprep.subr.bf16.mxu0 %v22932_v30  ;;  %16700 = vmatprep.subr.bf16.mxu1 %v22933_v2 }
 0x63e   :  { %16510 = vmatpush1.bf16.msra.mxu0 %v23026_v9  ;;  %16702 = vmatpush1.bf16.msra.mxu1 %v23027_v55 }
 0x63f   :  { %16512 = vmatprep.subr.bf16.mxu0 %v23028_v62  ;;  %16704 = vmatprep.subr.bf16.mxu1 %v23029_v12 }
 0x642   :  { %16514 = vmatpush1.bf16.msra.mxu0 %v23030_v11  ;;  %16706 = vmatpush1.bf16.msra.mxu1 %v23031_v46 }
 0x643   :  { %16708 = vmatprep.subr.bf16.mxu0 %v22828_v63  ;;  %16900 = vmatprep.subr.bf16.mxu1 %v22761_v27 }
 0x645   :  { %6255 = vmatmul.mubr.f32.vlgmr.msra.gmra.mrb[6].mxu0 %v20708_v20  ;;  %7110 = vmatmul.mubr.f32.vlgmr.msra.gmra.mrb[8].mxu1 %v20708_v20  ;;  %v23064_v20 = vld [vmem:[#allocation28_spill] sm:$0xff] }
 0x646   :  { %16710 = vmatpush1.bf16.msra.mxu0 %v22829_v34  ;;  %16902 = vmatpush1.bf16.msra.mxu1 %v19540_v57 }
 0x647   :  { %16712 = vmatprep.subr.bf16.mxu0 %v22830_v24  ;;  %16904 = vmatprep.subr.bf16.mxu1 %v19542_v40 }
 0x648   :  { %7255 = vmatprep.mubr.f32.mxu0 %v22559_v29  ;;  %8110 = vmatprep.mubr.f32.mxu1 %v22559_v29 }
 0x64a   :  { %16714 = vmatpush1.bf16.msra.mxu0 %v22831_v28  ;;  %16906 = vmatpush1.bf16.msra.mxu1 %v19544_v19 }
 0x64b   :  { %16716 = vmatprep.subr.bf16.mxu0 %v22832_v39  ;;  %16908 = vmatprep.subr.bf16.mxu1 %v19548_v32 }
 0x64e   :  { %16718 = vmatpush1.bf16.msra.mxu0 %v22833_v7  ;;  %16910 = vmatpush1.bf16.msra.mxu1 %v19550_v15 }
 0x64f   :  { %16720 = vmatprep.subr.bf16.mxu0 %v22834_v25  ;;  %16912 = vmatprep.subr.bf16.mxu1 %v19552_v8 }
 0x652   :  { %16722 = vmatpush1.bf16.msra.mxu0 %v22835_v45  ;;  %16914 = vmatpush1.bf16.msra.mxu1 %v19557_v33 }
 0x653   :  { %16724 = vmatprep.subr.bf16.mxu0 %v22836_v51  ;;  %16916 = vmatprep.subr.bf16.mxu1 %v22762_v35 }
 0x656   :  { %16726 = vmatpush1.bf16.msra.mxu0 %v22837_v36  ;;  %16918 = vmatpush1.bf16.msra.mxu1 %v22763_v49 }
 0x657   :  { %16728 = vmatprep.subr.bf16.mxu0 %v22838_v3  ;;  %16920 = vmatprep.subr.bf16.mxu1 %v22764_v4 }
 0x65a   :  { %16730 = vmatpush1.bf16.msra.mxu0 %v22839_v42  ;;  %16922 = vmatpush1.bf16.msra.mxu1 %v22765_v58 }
 0x65b   :  { %16732 = vmatprep.subr.bf16.mxu0 %v22932_v30  ;;  %16924 = vmatprep.subr.bf16.mxu1 %v22933_v2 }
 0x65e   :  { %16734 = vmatpush1.bf16.msra.mxu0 %v23026_v9  ;;  %16926 = vmatpush1.bf16.msra.mxu1 %v23027_v55 }
 0x65f   :  { %16736 = vmatprep.subr.bf16.mxu0 %v23028_v62  ;;  %16928 = vmatprep.subr.bf16.mxu1 %v23029_v12  ;;  %v5403_v62 = vadd.f32 %v5399_v23, %v23069_v54 }
 0x662   :  { %16738 = vmatpush1.bf16.msra.mxu0 %v23030_v11  ;;  %16930 = vmatpush1.bf16.msra.mxu1 %v23031_v46 }
 0x663   :  { %16740 = vmatprep.subr.bf16.mxu0 %v23064_v20  ;;  %16932 = vmatprep.subr.bf16.mxu1 %v23065_v38  ;;  %v5400_v20 = vmul.f32 %v5396_v61, %v22882_v22  ;;  %v5401_v38 = vmul.f32 %v5396_v61, %v22883_v41 }
 0x665   :  { %v5404_v47 = vadd.f32 %v5400_v20, %v20214_v14  ;;  %v5405_v50 = vadd.f32 %v5401_v38, %v20217_v37 }
 0x718   :  { %v6256_v6 = vpop.f32.mrb[6].mxu0  ;;  %v7111_v44 = vpop.f32.mrb[8].mxu1 }
 0x719   :  { %v7116_v12 = vadd.f32 %v6256_v6, %v5402_v43  ;;  %v6258_v55 = vpop.f32.mrb[7].mxu0  ;;  %v7113_v11 = vpop.f32.mrb[9].mxu1  ;;  %v7118_v31 = vadd.f32 %v7111_v44, %v5404_v47 }
 0x71a   :  { %v7117_v9 = vadd.f32 %v6258_v55, %v5403_v62  ;;  %v7119_v53 = vadd.f32 %v7113_v11, %v5405_v50 }
 0x71b   :  { %v14839_v46 = vmul.f32 -1.442695, %v7116_v12  ;;  %v14841_v30 = vmul.f32 -1.442695, %v7118_v31 }
 0x71c   :  { %v14840_v2 = vmul.f32 -1.442695, %v7117_v9 }
 0x71d   :  { %18618 = vpow2.f32 %v14839_v46 }
 0x71e   :  { %18620 = vpow2.f32 %v14840_v2 }
 0x71f   :  { %18622 = vtanh.f32 %v7119_v53 }
 0x720   :  { %18624 = vpow2.f32 %v14841_v30 }
 0x727   :  { %v18619_v23 = vpop.eup %18618 }
 0x728   :  { %v7129_v43 = vadd.f32 1.0, %v18619_v23  ;;  %v18621_v6 = vpop.eup %18620  ;;  %v23070_v23 = vld [vmem:[#allocation45_spill] sm:$0xff] }
 0x729   :  { %v7130_v12 = vadd.f32 1.0, %v18621_v6  ;;  %v18623_v62 = vpop.eup %18622  ;;  %v23072_v6 = vld [vmem:[#allocation47_spill] sm:$0xff] }
 0x72a   :  { %18626 = vrcp.f32 %v7129_v43  ;;  %v18625_v46 = vpop.eup %18624  ;;  %v23071_v43 = vld [vmem:[#allocation105_spill] sm:$0xff] }
 0x72b   :  { %18628 = vrcp.f32 %v7130_v12  ;;  %v7131_v20 = vadd.f32 1.0, %v18625_v46  ;;  %v23073_v12 = vld [vmem:[#allocation106_spill] sm:$0xff]  ;;  %v23075_v46 = vld [vmem:[#allocation107_spill] sm:$0xff] }
 0x72d   :  { %18630 = vrcp.f32 %v7131_v20  ;;  %v23079_v20 = vld [vmem:[#allocation109_spill] sm:$0xff] }
 0x734   :  { %v18627_v55 = vpop.eup %18626 }
 0x735   :  { %v7140_v61 = vmul.f32 %v18627_v55, %v18623_v62  ;;  %v18629_v9 = vpop.eup %18628  ;;  %v23074_v62 = vld [vmem:[#allocation48_spill] sm:$0xff]  ;;  %v23076_v55 = vld [vmem:[#allocation49_spill] sm:$0xff] }
 0x736   :  { %v7139_v2 = vmul.f32 %v18629_v9, %v20705_v1  ;;  %v23078_v9 = vld [vmem:[#allocation51_spill] sm:$0xff] }
 0x737   :  { %v18631_v31 = vpop.eup %18630 }
 0x738   :  { %v20941_v47 = vadd.f32 %v7140_v61, %v7139_v2  ;;  %v23077_v61 = vld [vmem:[#allocation108_spill] sm:$0xff]  ;;  %v23080_v2 = vld [vmem:[#allocation53_spill] sm:$0xff] }
 0x73a   :  { %18632 = vtanh.f32 %v20941_v47 }
 0x744   :  { %v18633_v38 = vpop.eup %18632 }
 0x745   :  { %v7143_v11 = vmul.f32 %v18633_v38, %v18631_v31  ;;  %v23081_v31 = vld [vmem:[#allocation110_spill] sm:$0xff]  ;;  %v23082_v38 = vld [vmem:[#allocation55_spill] sm:$0xff] }
 0x747   :  { %v20944_v30 = vand.u32 4294901760, %v7143_v11 }
 0x749   :  { %v20947_v44 = vsub.f32 %v7143_v11, %v20944_v30  ;;  %v23083_v11 = vld [vmem:[#allocation111_spill] sm:$0xff] }
 0x74b   :  { %v20950_v53 = vand.u32 4294901760, %v20947_v44 }
 0x74d   :  { %v7259_v50 = vsub.f32 %v20947_v44, %v20950_v53 }
 0x74f   :  { %v7260_v1 = vand.u32 4294901760, %v7259_v50  ;;  %v23084_v50 = vld [vmem:[#allocation57_spill] sm:$0xff] }
 0x751   :  { %7261 = vmatmul.mubr.f32.vlgmr.msra.gmra.mrb[8].mxu0 %v7260_v1  ;;  %8116 = vmatmul.mubr.f32.vlgmr.msra.gmra.mrb[10].mxu1 %v7260_v1  ;;  %v23085_v1 = vld [vmem:[#allocation112_spill] sm:$0xff] }
 0x752   :  { %16742 = vmatpush1.bf16.msra.mxu0 %v22792_v13  ;;  %16934 = vmatpush1.bf16.msra.mxu1 %v22793_v48 }
 0x753   :  { %16744 = vmatprep.subr.bf16.mxu0 %v22794_v10  ;;  %16936 = vmatprep.subr.bf16.mxu1 %v22795_v17 }
 0x754   :  { %7491 = vmatprep.mubr.f32.mxu0 %v22559_v29  ;;  %8346 = vmatprep.mubr.f32.mxu1 %v22559_v29 }
 0x756   :  { %16746 = vmatpush1.bf16.msra.mxu0 %v22796_v56  ;;  %16938 = vmatpush1.bf16.msra.mxu1 %v22797_v60 }
 0x757   :  { %16748 = vmatprep.subr.bf16.mxu0 %v22798_v0  ;;  %16940 = vmatprep.subr.bf16.mxu1 %v22799_v18 }
 0x75a   :  { %16750 = vmatpush1.bf16.msra.mxu0 %v22800_v21  ;;  %16942 = vmatpush1.bf16.msra.mxu1 %v22884_v59 }
 0x75b   :  { %16752 = vmatprep.subr.bf16.mxu0 %v22801_v5  ;;  %16944 = vmatprep.subr.bf16.mxu1 %v22885_v52 }
 0x75e   :  { %16754 = vmatpush1.bf16.msra.mxu0 %v22802_v16  ;;  %16946 = vmatpush1.bf16.msra.mxu1 %v22977_v26  ;;  %v23142_v26 = vld [vmem:[#allocation42_spill] sm:$0xff] }
 0x75f   :  { %16756 = vmatprep.subr.bf16.mxu0 %v23070_v23  ;;  %16948 = vmatprep.subr.bf16.mxu1 %v23071_v43  ;;  %v23135_v43 = vld [vmem:[#allocation80_spill] sm:$0xff]  ;;  %v23141_v23 = vld [vmem:[#allocation83_spill] sm:$0xff] }
 0x762   :  { %16758 = vmatpush1.bf16.msra.mxu0 %v23072_v6  ;;  %16950 = vmatpush1.bf16.msra.mxu1 %v23073_v12  ;;  %v23131_v12 = vld [vmem:[#allocation78_spill] sm:$0xff]  ;;  %v23132_v6 = vld [vmem:[#allocation32_spill] sm:$0xff] }
 0x763   :  { %16760 = vmatprep.subr.bf16.mxu0 %v23074_v62  ;;  %16952 = vmatprep.subr.bf16.mxu1 %v23075_v46  ;;  %v23086_v46 = vld [vmem:[#allocation59_spill] sm:$0xff] }
 0x764   :  { %v23130_v62 = vld [vmem:[#allocation27_spill] sm:$0xff] }
 0x766   :  { %16762 = vmatpush1.bf16.msra.mxu0 %v23076_v55  ;;  %16954 = vmatpush1.bf16.msra.mxu1 %v23077_v61  ;;  %v23087_v55 = vld [vmem:[#allocation113_spill] sm:$0xff] }
 0x767   :  { %16764 = vmatprep.subr.bf16.mxu0 %v23078_v9  ;;  %16956 = vmatprep.subr.bf16.mxu1 %v23079_v20  ;;  %v23088_v20 = vld [vmem:[#allocation60_spill] sm:$0xff]  ;;  %v23102_v61 = vld [vmem:[#allocation65_spill] sm:$0xff] }
 0x768   :  { %v23101_v9 = vld [vmem:[#allocation120_spill] sm:$0xff] }
 0x76a   :  { %16766 = vmatpush1.bf16.msra.mxu0 %v23080_v2  ;;  %16958 = vmatpush1.bf16.msra.mxu1 %v23081_v31  ;;  %v23089_v2 = vld [vmem:[#allocation114_spill] sm:$0xff]  ;;  %v23090_v31 = vld [vmem:[#allocation61_spill] sm:$0xff] }
 0x76b   :  { %16768 = vmatprep.subr.bf16.mxu0 %v23082_v38  ;;  %16960 = vmatprep.subr.bf16.mxu1 %v23083_v11  ;;  %v23091_v38 = vld [vmem:[#allocation115_spill] sm:$0xff] }
 0x76c   :  { %v23096_v11 = vld [vmem:[#allocation63_spill] sm:$0xff] }
 0x76e   :  { %16770 = vmatpush1.bf16.msra.mxu0 %v23084_v50  ;;  %16962 = vmatpush1.bf16.msra.mxu1 %v23085_v1  ;;  %v23092_v1 = vld [vmem:[#allocation62_spill] sm:$0xff]  ;;  %v23095_v50 = vld [vmem:[#allocation117_spill] sm:$0xff] }
 0x76f   :  { %16772 = vmatprep.subr.bf16.mxu0 %v23086_v46  ;;  %16964 = vmatprep.subr.bf16.mxu1 %v23087_v55  ;;  %v23093_v46 = vld [vmem:[#allocation116_spill] sm:$0xff]  ;;  %v23094_v55 = vld [vmem:[#allocation23_spill] sm:$0xff] }
 0x771   :  { %7493 = vmatmul.mubr.f32.vlgmr.msra.gmra.mrb[8].mxu0 %v20944_v30  ;;  %8348 = vmatmul.mubr.f32.vlgmr.msra.gmra.mrb[10].mxu1 %v20944_v30 }
 0x772   :  { %16774 = vmatpush1.bf16.msra.mxu0 %v23088_v20  ;;  %16966 = vmatpush1.bf16.msra.mxu1 %v23089_v2  ;;  %v23097_v20 = vld [vmem:[#allocation118_spill] sm:$0xff] }
 0x773   :  { %16776 = vmatprep.subr.bf16.mxu0 %v23090_v31  ;;  %16968 = vmatprep.subr.bf16.mxu1 %v23091_v38  ;;  %v23098_v2 = vld [vmem:[#allocation30_spill] sm:$0xff]  ;;  %v23099_v31 = vld [vmem:[#allocation119_spill] sm:$0xff]  ;;  %v23100_v38 = vld [vmem:[#allocation64_spill] sm:$0xff] }
 0x774   :  { %7627 = vmatprep.mubr.f32.mxu0 %v22559_v29  ;;  %8482 = vmatprep.mubr.f32.mxu1 %v22559_v29 }
 0x776   :  { %16778 = vmatpush1.bf16.msra.mxu0 %v23092_v1  ;;  %16970 = vmatpush1.bf16.msra.mxu1 %v23093_v46  ;;  %v23103_v1 = vld [vmem:[#allocation121_spill] sm:$0xff]  ;;  %v23104_v46 = vld [vmem:[#allocation66_spill] sm:$0xff] }
 0x777   :  { %16780 = vmatprep.subr.bf16.mxu0 %v23094_v55  ;;  %16972 = vmatprep.subr.bf16.mxu1 %v23095_v50  ;;  %v23105_v55 = vld [vmem:[#allocation122_spill] sm:$0xff]  ;;  %v23106_v50 = vld [vmem:[#allocation37_spill] sm:$0xff] }
 0x77a   :  { %16782 = vmatpush1.bf16.msra.mxu0 %v23096_v11  ;;  %16974 = vmatpush1.bf16.msra.mxu1 %v23097_v20  ;;  %v23107_v11 = vld [vmem:[#allocation123_spill] sm:$0xff] }
 0x77b   :  { %16784 = vmatprep.subr.bf16.mxu0 %v23098_v2  ;;  %16976 = vmatprep.subr.bf16.mxu1 %v23099_v31  ;;  %v23108_v20 = vld [vmem:[#allocation67_spill] sm:$0xff]  ;;  %v23109_v2 = vld [vmem:[#allocation124_spill] sm:$0xff] }
 0x77c   :  { %v23110_v31 = vld [vmem:[#allocation68_spill] sm:$0xff] }
 0x77e   :  { %16786 = vmatpush1.bf16.msra.mxu0 %v23100_v38  ;;  %16978 = vmatpush1.bf16.msra.mxu1 %v23101_v9  ;;  %v23111_v38 = vld [vmem:[#allocation125_spill] sm:$0xff] }
 0x77f   :  { %16788 = vmatprep.subr.bf16.mxu0 %v23102_v61  ;;  %16980 = vmatprep.subr.bf16.mxu1 %v23103_v1  ;;  %v23112_v9 = vld [vmem:[#allocation69_spill] sm:$0xff]  ;;  %v23113_v61 = vld [vmem:[#allocation126_spill] sm:$0xff] }
 0x780   :  { %v23114_v1 = vld [vmem:[#allocation70_spill] sm:$0xff] }
 0x782   :  { %16790 = vmatpush1.bf16.msra.mxu0 %v23104_v46  ;;  %16982 = vmatpush1.bf16.msra.mxu1 %v23105_v55  ;;  %v23115_v46 = vld [vmem:[#allocation127_spill] sm:$0xff] }
 0x783   :  { %16792 = vmatprep.subr.bf16.mxu0 %v23106_v50  ;;  %16984 = vmatprep.subr.bf16.mxu1 %v23107_v11  ;;  %v23116_v55 = vld [vmem:[#allocation71_spill] sm:$0xff]  ;;  %v23117_v50 = vld [vmem:[#allocation128_spill] sm:$0xff]  ;;  %v23129_v11 = vld [vmem:[#allocation77_spill] sm:$0xff] }
 0x786   :  { %16794 = vmatpush1.bf16.msra.mxu0 %v23108_v20  ;;  %16986 = vmatpush1.bf16.msra.mxu1 %v23109_v2  ;;  %v23127_v2 = vld [vmem:[#allocation76_spill] sm:$0xff]  ;;  %v23128_v20 = vld [vmem:[#allocation26_spill] sm:$0xff] }
 0x787   :  { %16796 = vmatprep.subr.bf16.mxu0 %v23110_v31  ;;  %16988 = vmatprep.subr.bf16.mxu1 %v23111_v38  ;;  %v23125_v38 = vld [vmem:[#allocation94_spill] sm:$0xff]  ;;  %v23126_v31 = vld [vmem:[#allocation25_spill] sm:$0xff] }
 0x78a   :  { %16798 = vmatpush1.bf16.msra.mxu0 %v23112_v9  ;;  %16990 = vmatpush1.bf16.msra.mxu1 %v23113_v61  ;;  %v23123_v61 = vld [vmem:[#allocation91_spill] sm:$0xff]  ;;  %v23124_v9 = vld [vmem:[#allocation24_spill] sm:$0xff] }
 0x78b   :  { %16800 = vmatprep.subr.bf16.mxu0 %v23114_v1  ;;  %16992 = vmatprep.subr.bf16.mxu1 %v23115_v46  ;;  %v23121_v46 = vld [vmem:[#allocation90_spill] sm:$0xff] }
 0x78c   :  { %v23122_v1 = vld [vmem:[#allocation22_spill] sm:$0xff] }
 0x78e   :  { %16802 = vmatpush1.bf16.msra.mxu0 %v23116_v55  ;;  %16994 = vmatpush1.bf16.msra.mxu1 %v23117_v50  ;;  %v23119_v50 = vld [vmem:[#allocation86_spill] sm:$0xff]  ;;  %v23120_v55 = vld [vmem:[#allocation21_spill] sm:$0xff] }
 0x78f   :  { %16804 = vmatprep.subr.bf16.mxu0 %v22828_v63  ;;  %16996 = vmatprep.subr.bf16.mxu1 %v22761_v27 }
 0x791   :  { %7630 = vmatmul.mubr.f32.vlgmr.msra.gmra.mrb[8].mxu0 %v20947_v44  ;;  %8485 = vmatmul.mubr.f32.vlgmr.msra.gmra.mrb[10].mxu1 %v20947_v44  ;;  %v23118_v44 = vld [vmem:[#allocation20_spill] sm:$0xff] }
 0x792   :  { %16806 = vmatpush1.bf16.msra.mxu0 %v22829_v34  ;;  %16998 = vmatpush1.bf16.msra.mxu1 %v19540_v57 }
 0x793   :  { %16808 = vmatprep.subr.bf16.mxu0 %v22830_v24  ;;  %17000 = vmatprep.subr.bf16.mxu1 %v19542_v40 }
 0x794   :  { %7732 = vmatprep.mubr.f32.mxu0 %v22559_v29  ;;  %8587 = vmatprep.mubr.f32.mxu1 %v22559_v29 }
 0x796   :  { %16810 = vmatpush1.bf16.msra.mxu0 %v22831_v28  ;;  %17002 = vmatpush1.bf16.msra.mxu1 %v19544_v19 }
 0x797   :  { %16812 = vmatprep.subr.bf16.mxu0 %v22832_v39  ;;  %17004 = vmatprep.subr.bf16.mxu1 %v19548_v32 }
 0x79a   :  { %16814 = vmatpush1.bf16.msra.mxu0 %v22833_v7  ;;  %17006 = vmatpush1.bf16.msra.mxu1 %v19550_v15 }
 0x79b   :  { %16816 = vmatprep.subr.bf16.mxu0 %v22834_v25  ;;  %17008 = vmatprep.subr.bf16.mxu1 %v19552_v8 }
 0x79e   :  { %16818 = vmatpush1.bf16.msra.mxu0 %v22835_v45  ;;  %17010 = vmatpush1.bf16.msra.mxu1 %v19557_v33 }
 0x79f   :  { %16820 = vmatprep.subr.bf16.mxu0 %v22836_v51  ;;  %17012 = vmatprep.subr.bf16.mxu1 %v22762_v35 }
 0x7a2   :  { %16822 = vmatpush1.bf16.msra.mxu0 %v22837_v36  ;;  %17014 = vmatpush1.bf16.msra.mxu1 %v22763_v49 }
 0x7a3   :  { %16824 = vmatprep.subr.bf16.mxu0 %v22838_v3  ;;  %17016 = vmatprep.subr.bf16.mxu1 %v22764_v4 }
 0x7a6   :  { %16826 = vmatpush1.bf16.msra.mxu0 %v22839_v42  ;;  %17018 = vmatpush1.bf16.msra.mxu1 %v22765_v58 }
 0x7a7   :  { %16828 = vmatprep.subr.bf16.mxu0 %v23118_v44  ;;  %17020 = vmatprep.subr.bf16.mxu1 %v23119_v50 }
 0x7aa   :  { %16830 = vmatpush1.bf16.msra.mxu0 %v23120_v55  ;;  %17022 = vmatpush1.bf16.msra.mxu1 %v23121_v46 }
 0x7ab   :  { %16832 = vmatprep.subr.bf16.mxu0 %v23122_v1  ;;  %17024 = vmatprep.subr.bf16.mxu1 %v23123_v61 }
 0x7ae   :  { %16834 = vmatpush1.bf16.msra.mxu0 %v23124_v9  ;;  %17026 = vmatpush1.bf16.msra.mxu1 %v23125_v38 }
 0x7af   :  { %16836 = vmatprep.subr.bf16.mxu0 %v23126_v31  ;;  %17028 = vmatprep.subr.bf16.mxu1 %v23127_v2  ;;  %v23133_v31 = vld [vmem:[#allocation79_spill] sm:$0xff]  ;;  %v23134_v2 = vld [vmem:[#allocation33_spill] sm:$0xff] }
 0x7b1   :  { %7736 = vmatmul.mubr.f32.vlgmr.msra.gmra.mrb[8].mxu0 %v20950_v53  ;;  %8591 = vmatmul.mubr.f32.vlgmr.msra.gmra.mrb[10].mxu1 %v20950_v53  ;;  %v23136_v53 = vld [vmem:[#allocation35_spill] sm:$0xff] }
 0x7b2   :  { %16838 = vmatpush1.bf16.msra.mxu0 %v23128_v20  ;;  %17030 = vmatpush1.bf16.msra.mxu1 %v23129_v11  ;;  %v23137_v20 = vld [vmem:[#allocation81_spill] sm:$0xff]  ;;  %v23138_v11 = vld [vmem:[#allocation39_spill] sm:$0xff] }
 0x7b3   :  { %16840 = vmatprep.subr.bf16.mxu0 %v23130_v62  ;;  %17032 = vmatprep.subr.bf16.mxu1 %v23131_v12  ;;  %v23139_v62 = vld [vmem:[#allocation82_spill] sm:$0xff]  ;;  %v23140_v12 = vld [vmem:[#allocation40_spill] sm:$0xff] }
 0x7b4   :  { %7902 = vmatprep.mubr.f32.mxu0 %v22559_v29  ;;  %8757 = vmatprep.mubr.f32.mxu1 %v22559_v29 }
 0x7b6   :  { %16842 = vmatpush1.bf16.msra.mxu0 %v23132_v6  ;;  %17034 = vmatpush1.bf16.msra.mxu1 %v23133_v31  ;;  %v23143_v6 = vld [vmem:[#allocation85_spill] sm:$0xff]  ;;  %v23144_v31 = vld [vmem:[#allocation44_spill] sm:$0xff] }
 0x7b7   :  { %16844 = vmatprep.subr.bf16.mxu0 %v23134_v2  ;;  %17036 = vmatprep.subr.bf16.mxu1 %v23135_v43  ;;  %v23145_v2 = vld [vmem:[#allocation87_spill] sm:$0xff]  ;;  %v23146_v43 = vld [vmem:[#allocation46_spill] sm:$0xff] }
 0x7ba   :  { %16846 = vmatpush1.bf16.msra.mxu0 %v23136_v53  ;;  %17038 = vmatpush1.bf16.msra.mxu1 %v23137_v20  ;;  %v23147_v53 = vld [vmem:[#allocation88_spill] sm:$0xff]  ;;  %v23148_v20 = vld [vmem:[#allocation50_spill] sm:$0xff] }
 0x7bb   :  { %16848 = vmatprep.subr.bf16.mxu0 %v23138_v11  ;;  %17040 = vmatprep.subr.bf16.mxu1 %v23139_v62  ;;  %v23149_v11 = vld [vmem:[#allocation89_spill] sm:$0xff]  ;;  %v23150_v62 = vld [vmem:[#allocation52_spill] sm:$0xff] }
 0x7be   :  { %16850 = vmatpush1.bf16.msra.mxu0 %v23140_v12  ;;  %17042 = vmatpush1.bf16.msra.mxu1 %v23141_v23  ;;  %v23151_v12 = vld [vmem:[#allocation92_spill] sm:$0xff]  ;;  %v23152_v23 = vld [vmem:[#allocation54_spill] sm:$0xff] }
 0x7bf   :  { %16852 = vmatprep.subr.bf16.mxu0 %v23142_v26  ;;  %17044 = vmatprep.subr.bf16.mxu1 %v23143_v6  ;;  %v23153_v26 = vld [vmem:[#allocation93_spill] sm:$0xff]  ;;  %v23154_v6 = vld [vmem:[#allocation56_spill] sm:$0xff] }
 0x7c2   :  { %16854 = vmatpush1.bf16.msra.mxu0 %v23144_v31  ;;  %17046 = vmatpush1.bf16.msra.mxu1 %v23145_v2  ;;  %v23155_v31 = vld [vmem:[#allocation95_spill] sm:$0xff]  ;;  %v23156_v2 = vld [vmem:[#allocation58_spill] sm:$0xff] }
 0x7c3   :  { %16856 = vmatprep.subr.bf16.mxu0 %v23146_v43  ;;  %17048 = vmatprep.subr.bf16.mxu1 %v23147_v53  ;;  %v23157_v43 = vld [vmem:[#allocation97_spill] sm:$0xff] }
 0x7c6   :  { %16858 = vmatpush1.bf16.msra.mxu0 %v23148_v20  ;;  %17050 = vmatpush1.bf16.msra.mxu1 %v23149_v11 }
 0x7c7   :  { %16860 = vmatprep.subr.bf16.mxu0 %v23150_v62  ;;  %17052 = vmatprep.subr.bf16.mxu1 %v23151_v12  ;;  %v23162_v12 = vld [vmem:[#allocation75_spill] sm:$0xff] }
 0x7ca   :  { %16862 = vmatpush1.bf16.msra.mxu0 %v23152_v23  ;;  %17054 = vmatpush1.bf16.msra.mxu1 %v23153_v26  ;;  %v23161_v26 = vld [vmem:[#allocation72_spill] sm:$0xff] }
 0x7cb   :  { %16864 = vmatprep.subr.bf16.mxu0 %v23154_v6  ;;  %17056 = vmatprep.subr.bf16.mxu1 %v23155_v31  ;;  %v23160_v31 = vld [vmem:[#allocation73_spill] sm:$0xff] }
 0x7ce   :  { %16866 = vmatpush1.bf16.msra.mxu0 %v23156_v2  ;;  %17058 = vmatpush1.bf16.msra.mxu1 %v23157_v43  ;;  %v23159_v43 = vld [vmem:[#allocation96_spill] sm:$0xff]  ;;  %v7149_v2 = vpop.permute.xlu0 %7148 }
 0x7cf   :  { %16868 = vmatprep.subr.bf16.mxu0 %v22828_v63  ;;  %17060 = vmatprep.subr.bf16.mxu1 %v22761_v27  ;;  %v7151_v6 = vmul.f32 %v7149_v2, %v23160_v31  ;;  %v7152_v23 = vmul.f32 %v7149_v2, %v23161_v26 }
 0x7d1   :  { %7904 = vmatmul.mubr.f32.vlgmr.msra.gmra.mrb[8].mxu0 %v20944_v30  ;;  %8759 = vmatmul.mubr.f32.vlgmr.msra.gmra.mrb[10].mxu1 %v20944_v30  ;;  %v7155_v62 = vadd.f32 %v7151_v6, %v23162_v12  ;;  %v7156_v53 = vadd.f32 %v7152_v23, %v23069_v54 }
 0x7d2   :  { %16870 = vmatpush1.bf16.msra.mxu0 %v22829_v34  ;;  %17062 = vmatpush1.bf16.msra.mxu1 %v19540_v57 }
 0x7d3   :  { %16872 = vmatprep.subr.bf16.mxu0 %v22830_v24  ;;  %17064 = vmatprep.subr.bf16.mxu1 %v19542_v40 }
 0x7d4   :  { %8006 = vmatprep.mubr.f32.mxu0 %v22559_v29  ;;  %8861 = vmatprep.mubr.f32.mxu1 %v22559_v29 }
 0x7d6   :  { %16874 = vmatpush1.bf16.msra.mxu0 %v22831_v28  ;;  %17066 = vmatpush1.bf16.msra.mxu1 %v19544_v19 }
 0x7d7   :  { %16876 = vmatprep.subr.bf16.mxu0 %v22832_v39  ;;  %17068 = vmatprep.subr.bf16.mxu1 %v19548_v32 }
 0x7da   :  { %16878 = vmatpush1.bf16.msra.mxu0 %v22833_v7  ;;  %17070 = vmatpush1.bf16.msra.mxu1 %v19550_v15 }
 0x7db   :  { %16880 = vmatprep.subr.bf16.mxu0 %v22834_v25  ;;  %17072 = vmatprep.subr.bf16.mxu1 %v19552_v8 }
 0x7de   :  { %16882 = vmatpush1.bf16.msra.mxu0 %v22835_v45  ;;  %17074 = vmatpush1.bf16.msra.mxu1 %v19557_v33 }
 0x7df   :  { %16884 = vmatprep.subr.bf16.mxu0 %v22836_v51  ;;  %17076 = vmatprep.subr.bf16.mxu1 %v22762_v35 }
 0x7e2   :  { %16886 = vmatpush1.bf16.msra.mxu0 %v22837_v36  ;;  %17078 = vmatpush1.bf16.msra.mxu1 %v22763_v49 }
 0x7e3   :  { %16888 = vmatprep.subr.bf16.mxu0 %v22838_v3  ;;  %17080 = vmatprep.subr.bf16.mxu1 %v22764_v4 }
 0x7e6   :  { %16890 = vmatpush1.bf16.msra.mxu0 %v22839_v42  ;;  %17082 = vmatpush1.bf16.msra.mxu1 %v22765_v58 }
 0x7e7   :  { %16892 = vmatprep.subr.bf16.mxu0 %v23118_v44  ;;  %17084 = vmatprep.subr.bf16.mxu1 %v23119_v50 }
 0x7ea   :  { %16894 = vmatpush1.bf16.msra.mxu0 %v23120_v55  ;;  %17086 = vmatpush1.bf16.msra.mxu1 %v23121_v46 }
 0x7eb   :  { %16896 = vmatprep.subr.bf16.mxu0 %v23122_v1  ;;  %17088 = vmatprep.subr.bf16.mxu1 %v23123_v61 }
 0x7ee   :  { %16898 = vmatpush1.bf16.msra.mxu0 %v23124_v9  ;;  %17090 = vmatpush1.bf16.msra.mxu1 %v23125_v38 }
 0x7ef   :  { %17092 = vmatprep.subr.bf16.mxu0 %v22828_v63  ;;  %17284 = vmatprep.subr.bf16.mxu1 %v22761_v27 }
 0x7f1   :  { %8008 = vmatmul.mubr.f32.vlgmr.msra.gmra.mrb[8].mxu0 %v20944_v30  ;;  %8863 = vmatmul.mubr.f32.vlgmr.msra.gmra.mrb[10].mxu1 %v20944_v30  ;;  %v23158_v30 = vld [vmem:[#allocation28_spill] sm:$0xff] }
 0x7f2   :  { %17094 = vmatpush1.bf16.msra.mxu0 %v22829_v34  ;;  %17286 = vmatpush1.bf16.msra.mxu1 %v19540_v57 }
 0x7f3   :  { %17096 = vmatprep.subr.bf16.mxu0 %v22830_v24  ;;  %17288 = vmatprep.subr.bf16.mxu1 %v19542_v40 }
 0x7f4   :  { %9008 = vmatprep.mubr.f32.mxu0 %v22559_v29  ;;  %9863 = vmatprep.mubr.f32.mxu1 %v22559_v29 }
 0x7f6   :  { %17098 = vmatpush1.bf16.msra.mxu0 %v22831_v28  ;;  %17290 = vmatpush1.bf16.msra.mxu1 %v19544_v19 }
 0x7f7   :  { %17100 = vmatprep.subr.bf16.mxu0 %v22832_v39  ;;  %17292 = vmatprep.subr.bf16.mxu1 %v19548_v32 }
 0x7fa   :  { %17102 = vmatpush1.bf16.msra.mxu0 %v22833_v7  ;;  %17294 = vmatpush1.bf16.msra.mxu1 %v19550_v15 }
 0x7fb   :  { %17104 = vmatprep.subr.bf16.mxu0 %v22834_v25  ;;  %17296 = vmatprep.subr.bf16.mxu1 %v19552_v8 }
 0x7fe   :  { %17106 = vmatpush1.bf16.msra.mxu0 %v22835_v45  ;;  %17298 = vmatpush1.bf16.msra.mxu1 %v19557_v33 }
 0x7ff   :  { %17108 = vmatprep.subr.bf16.mxu0 %v22836_v51  ;;  %17300 = vmatprep.subr.bf16.mxu1 %v22762_v35 }
 0x802   :  { %17110 = vmatpush1.bf16.msra.mxu0 %v22837_v36  ;;  %17302 = vmatpush1.bf16.msra.mxu1 %v22763_v49 }
 0x803   :  { %17112 = vmatprep.subr.bf16.mxu0 %v22838_v3  ;;  %17304 = vmatprep.subr.bf16.mxu1 %v22764_v4 }
 0x806   :  { %17114 = vmatpush1.bf16.msra.mxu0 %v22839_v42  ;;  %17306 = vmatpush1.bf16.msra.mxu1 %v22765_v58 }
 0x807   :  { %17116 = vmatprep.subr.bf16.mxu0 %v23118_v44  ;;  %17308 = vmatprep.subr.bf16.mxu1 %v23119_v50 }
 0x80a   :  { %17118 = vmatpush1.bf16.msra.mxu0 %v23120_v55  ;;  %17310 = vmatpush1.bf16.msra.mxu1 %v23121_v46 }
 0x80b   :  { %17120 = vmatprep.subr.bf16.mxu0 %v23122_v1  ;;  %17312 = vmatprep.subr.bf16.mxu1 %v23123_v61 }
 0x80e   :  { %17122 = vmatpush1.bf16.msra.mxu0 %v23124_v9  ;;  %17314 = vmatpush1.bf16.msra.mxu1 %v23125_v38 }
 0x80f   :  { %17124 = vmatprep.subr.bf16.mxu0 %v23158_v30  ;;  %17316 = vmatprep.subr.bf16.mxu1 %v23159_v43  ;;  %v7153_v30 = vmul.f32 %v7149_v2, %v22882_v22  ;;  %v7154_v43 = vmul.f32 %v7149_v2, %v22883_v41 }
 0x811   :  { %v7157_v31 = vadd.f32 %v7153_v30, %v20214_v14  ;;  %v7158_v6 = vadd.f32 %v7154_v43, %v20217_v37 }
 0x8c4   :  { %v8009_v11 = vpop.f32.mrb[8].mxu0  ;;  %v8864_v20 = vpop.f32.mrb[10].mxu1 }
 0x8c5   :  { %v8869_v61 = vadd.f32 %v8009_v11, %v7155_v62  ;;  %v8011_v1 = vpop.f32.mrb[9].mxu0  ;;  %v8866_v9 = vpop.f32.mrb[11].mxu1  ;;  %v8871_v26 = vadd.f32 %v8864_v20, %v7157_v31 }
 0x8c6   :  { %v8870_v46 = vadd.f32 %v8011_v1, %v7156_v53  ;;  %v8872_v12 = vadd.f32 %v8866_v9, %v7158_v6 }
 0x8c7   :  { %v14843_v38 = vmul.f32 -1.442695, %v8869_v61  ;;  %v14845_v50 = vmul.f32 -1.442695, %v8871_v26 }
 0x8c8   :  { %v14844_v55 = vmul.f32 -1.442695, %v8870_v46 }
 0x8c9   :  { %18634 = vpow2.f32 %v14843_v38 }
 0x8ca   :  { %18636 = vpow2.f32 %v14844_v55 }
 0x8cb   :  { %18638 = vtanh.f32 %v8872_v12 }
 0x8cc   :  { %18640 = vpow2.f32 %v14845_v50 }
 0x8d3   :  { %v18635_v23 = vpop.eup %18634 }
 0x8d4   :  { %v8882_v62 = vadd.f32 1.0, %v18635_v23  ;;  %v18637_v11 = vpop.eup %18636  ;;  %v23163_v23 = vld [vmem:[#allocation104_spill] sm:$0xff] }
 0x8d5   :  { %v8883_v61 = vadd.f32 1.0, %v18637_v11  ;;  %v18639_v46 = vpop.eup %18638  ;;  %v23165_v11 = vld [vmem:[#allocation105_spill] sm:$0xff] }
 0x8d6   :  { %18642 = vrcp.f32 %v8882_v62  ;;  %v18641_v38 = vpop.eup %18640  ;;  %v23164_v62 = vld [vmem:[#allocation45_spill] sm:$0xff] }
 0x8d7   :  { %18644 = vrcp.f32 %v8883_v61  ;;  %v8884_v30 = vadd.f32 1.0, %v18641_v38  ;;  %v23166_v61 = vld [vmem:[#allocation47_spill] sm:$0xff]  ;;  %v23168_v38 = vld [vmem:[#allocation48_spill] sm:$0xff] }
 0x8d9   :  { %18646 = vrcp.f32 %v8884_v30  ;;  %v23172_v30 = vld [vmem:[#allocation51_spill] sm:$0xff] }
 0x8e0   :  { %v18643_v1 = vpop.eup %18642 }
 0x8e1   :  { %v8893_v2 = vmul.f32 %v18643_v1, %v18639_v46  ;;  %v18645_v53 = vpop.eup %18644  ;;  %v23167_v46 = vld [vmem:[#allocation106_spill] sm:$0xff]  ;;  %v23169_v1 = vld [vmem:[#allocation107_spill] sm:$0xff] }
 0x8e2   :  { %v8892_v55 = vmul.f32 %v18645_v53, %v20941_v47  ;;  %v23171_v53 = vld [vmem:[#allocation108_spill] sm:$0xff] }
 0x8e3   :  { %v18647_v26 = vpop.eup %18646 }
 0x8e4   :  { %v21177_v20 = vadd.f32 %v8893_v2, %v8892_v55  ;;  %v23170_v2 = vld [vmem:[#allocation49_spill] sm:$0xff] }
 0x8e5   :  { %v23173_v55 = vld [vmem:[#allocation109_spill] sm:$0xff] }
 0x8e6   :  { %18648 = vtanh.f32 %v21177_v20 }
 0x8f0   :  { %v18649_v43 = vpop.eup %18648 }
 0x8f1   :  { %v8896_v12 = vmul.f32 %v18649_v43, %v18647_v26  ;;  %v23174_v26 = vld [vmem:[#allocation53_spill] sm:$0xff]  ;;  %v23175_v43 = vld [vmem:[#allocation110_spill] sm:$0xff] }
 0x8f3   :  { %v21180_v9 = vand.u32 4294901760, %v8896_v12 }
 0x8f5   :  { %v21183_v31 = vsub.f32 %v8896_v12, %v21180_v9  ;;  %v23176_v12 = vld [vmem:[#allocation55_spill] sm:$0xff] }
 0x8f7   :  { %v21186_v50 = vand.u32 4294901760, %v21183_v31 }
 0x8f9   :  { %v9012_v6 = vsub.f32 %v21183_v31, %v21186_v50 }
 0x8fb   :  { %v9013_v47 = vand.u32 4294901760, %v9012_v6  ;;  %v23177_v6 = vld [vmem:[#allocation111_spill] sm:$0xff] }
 0x8fd   :  { %9014 = vmatmul.mubr.f32.vlgmr.msra.gmra.mrb[10].mxu0 %v9013_v47  ;;  %9869 = vmatmul.mubr.f32.vlgmr.msra.gmra.mrb[12].mxu1 %v9013_v47  ;;  %v23178_v47 = vld [vmem:[#allocation57_spill] sm:$0xff] }
 0x8fe   :  { %17126 = vmatpush1.bf16.msra.mxu0 %v22792_v13  ;;  %17318 = vmatpush1.bf16.msra.mxu1 %v22793_v48 }
 0x8ff   :  { %17128 = vmatprep.subr.bf16.mxu0 %v22794_v10  ;;  %17320 = vmatprep.subr.bf16.mxu1 %v22795_v17 }
 0x900   :  { %9244 = vmatprep.mubr.f32.mxu0 %v22559_v29  ;;  %10099 = vmatprep.mubr.f32.mxu1 %v22559_v29 }
 0x902   :  { %17130 = vmatpush1.bf16.msra.mxu0 %v22796_v56  ;;  %17322 = vmatpush1.bf16.msra.mxu1 %v22797_v60 }
 0x903   :  { %17132 = vmatprep.subr.bf16.mxu0 %v22798_v0  ;;  %17324 = vmatprep.subr.bf16.mxu1 %v22799_v18 }
 0x906   :  { %17134 = vmatpush1.bf16.msra.mxu0 %v22800_v21  ;;  %17326 = vmatpush1.bf16.msra.mxu1 %v22884_v59 }
 0x907   :  { %17136 = vmatprep.subr.bf16.mxu0 %v22801_v5  ;;  %17328 = vmatprep.subr.bf16.mxu1 %v22885_v52 }
 0x90a   :  { %17138 = vmatpush1.bf16.msra.mxu0 %v22802_v16  ;;  %17330 = vmatpush1.bf16.msra.mxu1 %v23163_v23  ;;  %v23235_v23 = vld [vmem:[#allocation42_spill] sm:$0xff] }
 0x90b   :  { %17140 = vmatprep.subr.bf16.mxu0 %v23164_v62  ;;  %17332 = vmatprep.subr.bf16.mxu1 %v23165_v11  ;;  %v23228_v11 = vld [vmem:[#allocation80_spill] sm:$0xff]  ;;  %v23234_v62 = vld [vmem:[#allocation83_spill] sm:$0xff] }
 0x90e   :  { %17142 = vmatpush1.bf16.msra.mxu0 %v23166_v61  ;;  %17334 = vmatpush1.bf16.msra.mxu1 %v23167_v46  ;;  %v23224_v46 = vld [vmem:[#allocation78_spill] sm:$0xff]  ;;  %v23225_v61 = vld [vmem:[#allocation32_spill] sm:$0xff] }
 0x90f   :  { %17144 = vmatprep.subr.bf16.mxu0 %v23168_v38  ;;  %17336 = vmatprep.subr.bf16.mxu1 %v23169_v1  ;;  %v23179_v38 = vld [vmem:[#allocation112_spill] sm:$0xff]  ;;  %v23180_v1 = vld [vmem:[#allocation59_spill] sm:$0xff] }
 0x912   :  { %17146 = vmatpush1.bf16.msra.mxu0 %v23170_v2  ;;  %17338 = vmatpush1.bf16.msra.mxu1 %v23171_v53  ;;  %v23181_v2 = vld [vmem:[#allocation113_spill] sm:$0xff] }
 0x913   :  { %17148 = vmatprep.subr.bf16.mxu0 %v23172_v30  ;;  %17340 = vmatprep.subr.bf16.mxu1 %v23173_v55  ;;  %v23182_v55 = vld [vmem:[#allocation60_spill] sm:$0xff]  ;;  %v23196_v53 = vld [vmem:[#allocation65_spill] sm:$0xff] }
 0x914   :  { %v23195_v30 = vld [vmem:[#allocation120_spill] sm:$0xff] }
 0x916   :  { %17150 = vmatpush1.bf16.msra.mxu0 %v23174_v26  ;;  %17342 = vmatpush1.bf16.msra.mxu1 %v23175_v43  ;;  %v23183_v26 = vld [vmem:[#allocation114_spill] sm:$0xff]  ;;  %v23184_v43 = vld [vmem:[#allocation61_spill] sm:$0xff] }
 0x917   :  { %17152 = vmatprep.subr.bf16.mxu0 %v23176_v12  ;;  %17344 = vmatprep.subr.bf16.mxu1 %v23177_v6  ;;  %v23185_v12 = vld [vmem:[#allocation115_spill] sm:$0xff] }
 0x918   :  { %v23190_v6 = vld [vmem:[#allocation63_spill] sm:$0xff] }
 0x91a   :  { %17154 = vmatpush1.bf16.msra.mxu0 %v23178_v47  ;;  %17346 = vmatpush1.bf16.msra.mxu1 %v23179_v38  ;;  %v23186_v38 = vld [vmem:[#allocation62_spill] sm:$0xff]  ;;  %v23189_v47 = vld [vmem:[#allocation117_spill] sm:$0xff] }
 0x91b   :  { %17156 = vmatprep.subr.bf16.mxu0 %v23180_v1  ;;  %17348 = vmatprep.subr.bf16.mxu1 %v23181_v2  ;;  %v23187_v1 = vld [vmem:[#allocation116_spill] sm:$0xff]  ;;  %v23188_v2 = vld [vmem:[#allocation23_spill] sm:$0xff] }
 0x91d   :  { %9246 = vmatmul.mubr.f32.vlgmr.msra.gmra.mrb[10].mxu0 %v21180_v9  ;;  %10101 = vmatmul.mubr.f32.vlgmr.msra.gmra.mrb[12].mxu1 %v21180_v9 }
 0x91e   :  { %17158 = vmatpush1.bf16.msra.mxu0 %v23182_v55  ;;  %17350 = vmatpush1.bf16.msra.mxu1 %v23183_v26  ;;  %v23191_v55 = vld [vmem:[#allocation118_spill] sm:$0xff] }
 0x91f   :  { %17160 = vmatprep.subr.bf16.mxu0 %v23184_v43  ;;  %17352 = vmatprep.subr.bf16.mxu1 %v23185_v12  ;;  %v23192_v26 = vld [vmem:[#allocation30_spill] sm:$0xff]  ;;  %v23193_v43 = vld [vmem:[#allocation119_spill] sm:$0xff]  ;;  %v23194_v12 = vld [vmem:[#allocation64_spill] sm:$0xff] }
 0x920   :  { %9380 = vmatprep.mubr.f32.mxu0 %v22559_v29  ;;  %10235 = vmatprep.mubr.f32.mxu1 %v22559_v29 }
 0x922   :  { %17162 = vmatpush1.bf16.msra.mxu0 %v23186_v38  ;;  %17354 = vmatpush1.bf16.msra.mxu1 %v23187_v1  ;;  %v23197_v38 = vld [vmem:[#allocation121_spill] sm:$0xff]  ;;  %v23198_v1 = vld [vmem:[#allocation66_spill] sm:$0xff] }
 0x923   :  { %17164 = vmatprep.subr.bf16.mxu0 %v23188_v2  ;;  %17356 = vmatprep.subr.bf16.mxu1 %v23189_v47  ;;  %v23199_v2 = vld [vmem:[#allocation122_spill] sm:$0xff]  ;;  %v23200_v47 = vld [vmem:[#allocation37_spill] sm:$0xff] }
 0x926   :  { %17166 = vmatpush1.bf16.msra.mxu0 %v23190_v6  ;;  %17358 = vmatpush1.bf16.msra.mxu1 %v23191_v55  ;;  %v23201_v6 = vld [vmem:[#allocation123_spill] sm:$0xff] }
 0x927   :  { %17168 = vmatprep.subr.bf16.mxu0 %v23192_v26  ;;  %17360 = vmatprep.subr.bf16.mxu1 %v23193_v43  ;;  %v23202_v55 = vld [vmem:[#allocation67_spill] sm:$0xff]  ;;  %v23203_v26 = vld [vmem:[#allocation124_spill] sm:$0xff] }
 0x928   :  { %v23204_v43 = vld [vmem:[#allocation68_spill] sm:$0xff] }
 0x92a   :  { %17170 = vmatpush1.bf16.msra.mxu0 %v23194_v12  ;;  %17362 = vmatpush1.bf16.msra.mxu1 %v23195_v30  ;;  %v23205_v12 = vld [vmem:[#allocation125_spill] sm:$0xff] }
 0x92b   :  { %17172 = vmatprep.subr.bf16.mxu0 %v23196_v53  ;;  %17364 = vmatprep.subr.bf16.mxu1 %v23197_v38  ;;  %v23206_v30 = vld [vmem:[#allocation69_spill] sm:$0xff]  ;;  %v23207_v53 = vld [vmem:[#allocation126_spill] sm:$0xff] }
 0x92c   :  { %v23208_v38 = vld [vmem:[#allocation70_spill] sm:$0xff] }
 0x92e   :  { %17174 = vmatpush1.bf16.msra.mxu0 %v23198_v1  ;;  %17366 = vmatpush1.bf16.msra.mxu1 %v23199_v2  ;;  %v23209_v1 = vld [vmem:[#allocation127_spill] sm:$0xff] }
 0x92f   :  { %17176 = vmatprep.subr.bf16.mxu0 %v23200_v47  ;;  %17368 = vmatprep.subr.bf16.mxu1 %v23201_v6  ;;  %v23210_v2 = vld [vmem:[#allocation71_spill] sm:$0xff]  ;;  %v23211_v47 = vld [vmem:[#allocation128_spill] sm:$0xff] }
 0x930   :  { %v23223_v6 = vld [vmem:[#allocation27_spill] sm:$0xff] }
 0x932   :  { %17178 = vmatpush1.bf16.msra.mxu0 %v23202_v55  ;;  %17370 = vmatpush1.bf16.msra.mxu1 %v23203_v26  ;;  %v23221_v26 = vld [vmem:[#allocation26_spill] sm:$0xff]  ;;  %v23222_v55 = vld [vmem:[#allocation77_spill] sm:$0xff] }
 0x933   :  { %17180 = vmatprep.subr.bf16.mxu0 %v23204_v43  ;;  %17372 = vmatprep.subr.bf16.mxu1 %v23205_v12  ;;  %v23219_v12 = vld [vmem:[#allocation25_spill] sm:$0xff]  ;;  %v23220_v43 = vld [vmem:[#allocation76_spill] sm:$0xff] }
 0x936   :  { %17182 = vmatpush1.bf16.msra.mxu0 %v23206_v30  ;;  %17374 = vmatpush1.bf16.msra.mxu1 %v23207_v53  ;;  %v23217_v53 = vld [vmem:[#allocation24_spill] sm:$0xff]  ;;  %v23218_v30 = vld [vmem:[#allocation94_spill] sm:$0xff] }
 0x937   :  { %17184 = vmatprep.subr.bf16.mxu0 %v23208_v38  ;;  %17376 = vmatprep.subr.bf16.mxu1 %v23209_v1  ;;  %v23215_v1 = vld [vmem:[#allocation22_spill] sm:$0xff]  ;;  %v23216_v38 = vld [vmem:[#allocation91_spill] sm:$0xff] }
 0x93a   :  { %17186 = vmatpush1.bf16.msra.mxu0 %v23210_v2  ;;  %17378 = vmatpush1.bf16.msra.mxu1 %v23211_v47  ;;  %v23213_v47 = vld [vmem:[#allocation21_spill] sm:$0xff]  ;;  %v23214_v2 = vld [vmem:[#allocation90_spill] sm:$0xff] }
 0x93b   :  { %17188 = vmatprep.subr.bf16.mxu0 %v22828_v63  ;;  %17380 = vmatprep.subr.bf16.mxu1 %v22761_v27 }
 0x93d   :  { %9383 = vmatmul.mubr.f32.vlgmr.msra.gmra.mrb[10].mxu0 %v21183_v31  ;;  %10238 = vmatmul.mubr.f32.vlgmr.msra.gmra.mrb[12].mxu1 %v21183_v31  ;;  %v23212_v31 = vld [vmem:[#allocation86_spill] sm:$0xff] }
 0x93e   :  { %17190 = vmatpush1.bf16.msra.mxu0 %v22829_v34  ;;  %17382 = vmatpush1.bf16.msra.mxu1 %v19540_v57 }
 0x93f   :  { %17192 = vmatprep.subr.bf16.mxu0 %v22830_v24  ;;  %17384 = vmatprep.subr.bf16.mxu1 %v19542_v40 }
 0x940   :  { %9485 = vmatprep.mubr.f32.mxu0 %v22559_v29  ;;  %10340 = vmatprep.mubr.f32.mxu1 %v22559_v29 }
 0x942   :  { %17194 = vmatpush1.bf16.msra.mxu0 %v22831_v28  ;;  %17386 = vmatpush1.bf16.msra.mxu1 %v19544_v19 }
 0x943   :  { %17196 = vmatprep.subr.bf16.mxu0 %v22832_v39  ;;  %17388 = vmatprep.subr.bf16.mxu1 %v19548_v32 }
 0x946   :  { %17198 = vmatpush1.bf16.msra.mxu0 %v22833_v7  ;;  %17390 = vmatpush1.bf16.msra.mxu1 %v19550_v15 }
 0x947   :  { %17200 = vmatprep.subr.bf16.mxu0 %v22834_v25  ;;  %17392 = vmatprep.subr.bf16.mxu1 %v19552_v8 }
 0x94a   :  { %17202 = vmatpush1.bf16.msra.mxu0 %v22835_v45  ;;  %17394 = vmatpush1.bf16.msra.mxu1 %v19557_v33 }
 0x94b   :  { %17204 = vmatprep.subr.bf16.mxu0 %v22836_v51  ;;  %17396 = vmatprep.subr.bf16.mxu1 %v22762_v35 }
 0x94e   :  { %17206 = vmatpush1.bf16.msra.mxu0 %v22837_v36  ;;  %17398 = vmatpush1.bf16.msra.mxu1 %v22763_v49 }
 0x94f   :  { %17208 = vmatprep.subr.bf16.mxu0 %v22838_v3  ;;  %17400 = vmatprep.subr.bf16.mxu1 %v22764_v4 }
 0x952   :  { %17210 = vmatpush1.bf16.msra.mxu0 %v22839_v42  ;;  %17402 = vmatpush1.bf16.msra.mxu1 %v22765_v58 }
 0x953   :  { %17212 = vmatprep.subr.bf16.mxu0 %v23118_v44  ;;  %17404 = vmatprep.subr.bf16.mxu1 %v23212_v31 }
 0x956   :  { %17214 = vmatpush1.bf16.msra.mxu0 %v23213_v47  ;;  %17406 = vmatpush1.bf16.msra.mxu1 %v23214_v2 }
 0x957   :  { %17216 = vmatprep.subr.bf16.mxu0 %v23215_v1  ;;  %17408 = vmatprep.subr.bf16.mxu1 %v23216_v38 }
 0x95a   :  { %17218 = vmatpush1.bf16.msra.mxu0 %v23217_v53  ;;  %17410 = vmatpush1.bf16.msra.mxu1 %v23218_v30 }
 0x95b   :  { %17220 = vmatprep.subr.bf16.mxu0 %v23219_v12  ;;  %17412 = vmatprep.subr.bf16.mxu1 %v23220_v43  ;;  %v23226_v12 = vld [vmem:[#allocation79_spill] sm:$0xff]  ;;  %v23227_v43 = vld [vmem:[#allocation33_spill] sm:$0xff] }
 0x95d   :  { %9489 = vmatmul.mubr.f32.vlgmr.msra.gmra.mrb[10].mxu0 %v21186_v50  ;;  %10344 = vmatmul.mubr.f32.vlgmr.msra.gmra.mrb[12].mxu1 %v21186_v50  ;;  %v23229_v50 = vld [vmem:[#allocation35_spill] sm:$0xff] }
 0x95e   :  { %17222 = vmatpush1.bf16.msra.mxu0 %v23221_v26  ;;  %17414 = vmatpush1.bf16.msra.mxu1 %v23222_v55  ;;  %v23230_v26 = vld [vmem:[#allocation81_spill] sm:$0xff]  ;;  %v23231_v55 = vld [vmem:[#allocation39_spill] sm:$0xff] }
 0x95f   :  { %17224 = vmatprep.subr.bf16.mxu0 %v23223_v6  ;;  %17416 = vmatprep.subr.bf16.mxu1 %v23224_v46  ;;  %v23232_v6 = vld [vmem:[#allocation82_spill] sm:$0xff]  ;;  %v23233_v46 = vld [vmem:[#allocation40_spill] sm:$0xff] }
 0x960   :  { %9655 = vmatprep.mubr.f32.mxu0 %v22559_v29  ;;  %10510 = vmatprep.mubr.f32.mxu1 %v22559_v29 }
 0x962   :  { %17226 = vmatpush1.bf16.msra.mxu0 %v23225_v61  ;;  %17418 = vmatpush1.bf16.msra.mxu1 %v23226_v12  ;;  %v23236_v61 = vld [vmem:[#allocation85_spill] sm:$0xff]  ;;  %v23237_v12 = vld [vmem:[#allocation44_spill] sm:$0xff] }
 0x963   :  { %17228 = vmatprep.subr.bf16.mxu0 %v23227_v43  ;;  %17420 = vmatprep.subr.bf16.mxu1 %v23228_v11  ;;  %v23238_v43 = vld [vmem:[#allocation87_spill] sm:$0xff]  ;;  %v23239_v11 = vld [vmem:[#allocation46_spill] sm:$0xff] }
 0x966   :  { %17230 = vmatpush1.bf16.msra.mxu0 %v23229_v50  ;;  %17422 = vmatpush1.bf16.msra.mxu1 %v23230_v26  ;;  %v23240_v50 = vld [vmem:[#allocation88_spill] sm:$0xff]  ;;  %v23241_v26 = vld [vmem:[#allocation50_spill] sm:$0xff] }
 0x967   :  { %17232 = vmatprep.subr.bf16.mxu0 %v23231_v55  ;;  %17424 = vmatprep.subr.bf16.mxu1 %v23232_v6  ;;  %v23242_v55 = vld [vmem:[#allocation89_spill] sm:$0xff]  ;;  %v23243_v6 = vld [vmem:[#allocation52_spill] sm:$0xff] }
 0x96a   :  { %17234 = vmatpush1.bf16.msra.mxu0 %v23233_v46  ;;  %17426 = vmatpush1.bf16.msra.mxu1 %v23234_v62  ;;  %v23244_v46 = vld [vmem:[#allocation92_spill] sm:$0xff]  ;;  %v23245_v62 = vld [vmem:[#allocation54_spill] sm:$0xff] }
 0x96b   :  { %17236 = vmatprep.subr.bf16.mxu0 %v23235_v23  ;;  %17428 = vmatprep.subr.bf16.mxu1 %v23236_v61  ;;  %v23246_v23 = vld [vmem:[#allocation93_spill] sm:$0xff]  ;;  %v23247_v61 = vld [vmem:[#allocation56_spill] sm:$0xff] }
 0x96e   :  { %17238 = vmatpush1.bf16.msra.mxu0 %v23237_v12  ;;  %17430 = vmatpush1.bf16.msra.mxu1 %v23238_v43  ;;  %v23248_v12 = vld [vmem:[#allocation95_spill] sm:$0xff]  ;;  %v23249_v43 = vld [vmem:[#allocation58_spill] sm:$0xff] }
 0x96f   :  { %17240 = vmatprep.subr.bf16.mxu0 %v23239_v11  ;;  %17432 = vmatprep.subr.bf16.mxu1 %v23240_v50  ;;  %v23250_v11 = vld [vmem:[#allocation97_spill] sm:$0xff] }
 0x972   :  { %17242 = vmatpush1.bf16.msra.mxu0 %v23241_v26  ;;  %17434 = vmatpush1.bf16.msra.mxu1 %v23242_v55 }
 0x973   :  { %17244 = vmatprep.subr.bf16.mxu0 %v23243_v6  ;;  %17436 = vmatprep.subr.bf16.mxu1 %v23244_v46  ;;  %v23255_v46 = vld [vmem:[#allocation75_spill] sm:$0xff] }
 0x976   :  { %17246 = vmatpush1.bf16.msra.mxu0 %v23245_v62  ;;  %17438 = vmatpush1.bf16.msra.mxu1 %v23246_v23  ;;  %v23254_v23 = vld [vmem:[#allocation72_spill] sm:$0xff] }
 0x977   :  { %17248 = vmatprep.subr.bf16.mxu0 %v23247_v61  ;;  %17440 = vmatprep.subr.bf16.mxu1 %v23248_v12  ;;  %v23253_v12 = vld [vmem:[#allocation73_spill] sm:$0xff] }
 0x97a   :  { %17250 = vmatpush1.bf16.msra.mxu0 %v23249_v43  ;;  %17442 = vmatpush1.bf16.msra.mxu1 %v23250_v11  ;;  %v23252_v11 = vld [vmem:[#allocation96_spill] sm:$0xff]  ;;  %v8902_v43 = vpop.permute.xlu1 %8901 }
 0x97b   :  { %17252 = vmatprep.subr.bf16.mxu0 %v22828_v63  ;;  %17444 = vmatprep.subr.bf16.mxu1 %v22761_v27  ;;  %v8904_v61 = vmul.f32 %v8902_v43, %v23253_v12  ;;  %v8905_v62 = vmul.f32 %v8902_v43, %v23254_v23 }
 0x97d   :  { %9657 = vmatmul.mubr.f32.vlgmr.msra.gmra.mrb[10].mxu0 %v21180_v9  ;;  %10512 = vmatmul.mubr.f32.vlgmr.msra.gmra.mrb[12].mxu1 %v21180_v9  ;;  %v8908_v6 = vadd.f32 %v8904_v61, %v23255_v46  ;;  %v8909_v50 = vadd.f32 %v8905_v62, %v23069_v54 }
 0x97e   :  { %17254 = vmatpush1.bf16.msra.mxu0 %v22829_v34  ;;  %17446 = vmatpush1.bf16.msra.mxu1 %v19540_v57 }
 0x97f   :  { %17256 = vmatprep.subr.bf16.mxu0 %v22830_v24  ;;  %17448 = vmatprep.subr.bf16.mxu1 %v19542_v40 }
 0x980   :  { %9759 = vmatprep.mubr.f32.mxu0 %v22559_v29  ;;  %10614 = vmatprep.mubr.f32.mxu1 %v22559_v29 }
 0x982   :  { %17258 = vmatpush1.bf16.msra.mxu0 %v22831_v28  ;;  %17450 = vmatpush1.bf16.msra.mxu1 %v19544_v19 }
 0x983   :  { %17260 = vmatprep.subr.bf16.mxu0 %v22832_v39  ;;  %17452 = vmatprep.subr.bf16.mxu1 %v19548_v32 }
 0x986   :  { %17262 = vmatpush1.bf16.msra.mxu0 %v22833_v7  ;;  %17454 = vmatpush1.bf16.msra.mxu1 %v19550_v15 }
 0x987   :  { %17264 = vmatprep.subr.bf16.mxu0 %v22834_v25  ;;  %17456 = vmatprep.subr.bf16.mxu1 %v19552_v8 }
 0x98a   :  { %17266 = vmatpush1.bf16.msra.mxu0 %v22835_v45  ;;  %17458 = vmatpush1.bf16.msra.mxu1 %v19557_v33 }
 0x98b   :  { %17268 = vmatprep.subr.bf16.mxu0 %v22836_v51  ;;  %17460 = vmatprep.subr.bf16.mxu1 %v22762_v35 }
 0x98e   :  { %17270 = vmatpush1.bf16.msra.mxu0 %v22837_v36  ;;  %17462 = vmatpush1.bf16.msra.mxu1 %v22763_v49 }
 0x98f   :  { %17272 = vmatprep.subr.bf16.mxu0 %v22838_v3  ;;  %17464 = vmatprep.subr.bf16.mxu1 %v22764_v4 }
 0x992   :  { %17274 = vmatpush1.bf16.msra.mxu0 %v22839_v42  ;;  %17466 = vmatpush1.bf16.msra.mxu1 %v22765_v58 }
 0x993   :  { %17276 = vmatprep.subr.bf16.mxu0 %v23118_v44  ;;  %17468 = vmatprep.subr.bf16.mxu1 %v23212_v31 }
 0x996   :  { %17278 = vmatpush1.bf16.msra.mxu0 %v23213_v47  ;;  %17470 = vmatpush1.bf16.msra.mxu1 %v23214_v2 }
 0x997   :  { %17280 = vmatprep.subr.bf16.mxu0 %v23215_v1  ;;  %17472 = vmatprep.subr.bf16.mxu1 %v23216_v38 }
 0x99a   :  { %17282 = vmatpush1.bf16.msra.mxu0 %v23217_v53  ;;  %17474 = vmatpush1.bf16.msra.mxu1 %v23218_v30 }
 0x99b   :  { %17476 = vmatprep.subr.bf16.mxu0 %v22828_v63  ;;  %17668 = vmatprep.subr.bf16.mxu1 %v22761_v27 }
 0x99d   :  { %9761 = vmatmul.mubr.f32.vlgmr.msra.gmra.mrb[10].mxu0 %v21180_v9  ;;  %10616 = vmatmul.mubr.f32.vlgmr.msra.gmra.mrb[12].mxu1 %v21180_v9  ;;  %v23251_v9 = vld [vmem:[#allocation28_spill] sm:$0xff] }
 0x99e   :  { %17478 = vmatpush1.bf16.msra.mxu0 %v22829_v34  ;;  %17670 = vmatpush1.bf16.msra.mxu1 %v19540_v57 }
 0x99f   :  { %17480 = vmatprep.subr.bf16.mxu0 %v22830_v24  ;;  %17672 = vmatprep.subr.bf16.mxu1 %v19542_v40 }
 0x9a0   :  { %10761 = vmatprep.mubr.f32.mxu0 %v22559_v29  ;;  %11616 = vmatprep.mubr.f32.mxu1 %v22559_v29 }
 0x9a2   :  { %17482 = vmatpush1.bf16.msra.mxu0 %v22831_v28  ;;  %17674 = vmatpush1.bf16.msra.mxu1 %v19544_v19 }
 0x9a3   :  { %17484 = vmatprep.subr.bf16.mxu0 %v22832_v39  ;;  %17676 = vmatprep.subr.bf16.mxu1 %v19548_v32 }
 0x9a6   :  { %17486 = vmatpush1.bf16.msra.mxu0 %v22833_v7  ;;  %17678 = vmatpush1.bf16.msra.mxu1 %v19550_v15 }
 0x9a7   :  { %17488 = vmatprep.subr.bf16.mxu0 %v22834_v25  ;;  %17680 = vmatprep.subr.bf16.mxu1 %v19552_v8 }
 0x9aa   :  { %17490 = vmatpush1.bf16.msra.mxu0 %v22835_v45  ;;  %17682 = vmatpush1.bf16.msra.mxu1 %v19557_v33 }
 0x9ab   :  { %17492 = vmatprep.subr.bf16.mxu0 %v22836_v51  ;;  %17684 = vmatprep.subr.bf16.mxu1 %v22762_v35 }
 0x9ae   :  { %17494 = vmatpush1.bf16.msra.mxu0 %v22837_v36  ;;  %17686 = vmatpush1.bf16.msra.mxu1 %v22763_v49 }
 0x9af   :  { %17496 = vmatprep.subr.bf16.mxu0 %v22838_v3  ;;  %17688 = vmatprep.subr.bf16.mxu1 %v22764_v4 }
 0x9b2   :  { %17498 = vmatpush1.bf16.msra.mxu0 %v22839_v42  ;;  %17690 = vmatpush1.bf16.msra.mxu1 %v22765_v58 }
 0x9b3   :  { %17500 = vmatprep.subr.bf16.mxu0 %v23118_v44  ;;  %17692 = vmatprep.subr.bf16.mxu1 %v23212_v31 }
 0x9b6   :  { %17502 = vmatpush1.bf16.msra.mxu0 %v23213_v47  ;;  %17694 = vmatpush1.bf16.msra.mxu1 %v23214_v2 }
 0x9b7   :  { %17504 = vmatprep.subr.bf16.mxu0 %v23215_v1  ;;  %17696 = vmatprep.subr.bf16.mxu1 %v23216_v38 }
 0x9ba   :  { %17506 = vmatpush1.bf16.msra.mxu0 %v23217_v53  ;;  %17698 = vmatpush1.bf16.msra.mxu1 %v23218_v30 }
 0x9bb   :  { %17508 = vmatprep.subr.bf16.mxu0 %v23251_v9  ;;  %17700 = vmatprep.subr.bf16.mxu1 %v23252_v11  ;;  %v8906_v9 = vmul.f32 %v8902_v43, %v22882_v22  ;;  %v8907_v11 = vmul.f32 %v8902_v43, %v22883_v41 }
 0x9bd   :  { %v8910_v12 = vadd.f32 %v8906_v9, %v20214_v14  ;;  %v8911_v61 = vadd.f32 %v8907_v11, %v20217_v37 }
 0xa70   :  { %v9762_v55 = vpop.f32.mrb[10].mxu0  ;;  %v10617_v26 = vpop.f32.mrb[12].mxu1 }
 0xa71   :  { %v10622_v38 = vadd.f32 %v9762_v55, %v8908_v6  ;;  %v9764_v1 = vpop.f32.mrb[11].mxu0  ;;  %v10619_v53 = vpop.f32.mrb[13].mxu1  ;;  %v10624_v23 = vadd.f32 %v10617_v26, %v8910_v12 }
 0xa72   :  { %v10623_v2 = vadd.f32 %v9764_v1, %v8909_v50  ;;  %v10625_v46 = vadd.f32 %v10619_v53, %v8911_v61 }
 0xa73   :  { %v14847_v30 = vmul.f32 -1.442695, %v10622_v38  ;;  %v14849_v31 = vmul.f32 -1.442695, %v10624_v23 }
 0xa74   :  { %v14848_v47 = vmul.f32 -1.442695, %v10623_v2 }
 0xa75   :  { %18650 = vpow2.f32 %v14847_v30 }
 0xa76   :  { %18652 = vpow2.f32 %v14848_v47 }
 0xa77   :  { %18654 = vtanh.f32 %v10625_v46 }
 0xa78   :  { %18656 = vpow2.f32 %v14849_v31 }
 0xa7f   :  { %v18651_v62 = vpop.eup %18650 }
 0xa80   :  { %v10635_v55 = vadd.f32 1.0, %v18651_v62  ;;  %v18653_v6 = vpop.eup %18652  ;;  %v23256_v62 = vld [vmem:[#allocation104_spill] sm:$0xff] }
 0xa81   :  { %v10636_v38 = vadd.f32 1.0, %v18653_v6  ;;  %v18655_v1 = vpop.eup %18654  ;;  %v23258_v6 = vld [vmem:[#allocation105_spill] sm:$0xff] }
 0xa82   :  { %18658 = vrcp.f32 %v10635_v55  ;;  %v18657_v2 = vpop.eup %18656  ;;  %v23257_v55 = vld [vmem:[#allocation45_spill] sm:$0xff] }
 0xa83   :  { %18660 = vrcp.f32 %v10636_v38  ;;  %v10637_v9 = vadd.f32 1.0, %v18657_v2  ;;  %v23259_v38 = vld [vmem:[#allocation47_spill] sm:$0xff]  ;;  %v23261_v2 = vld [vmem:[#allocation48_spill] sm:$0xff] }
 0xa85   :  { %18662 = vrcp.f32 %v10637_v9  ;;  %v23265_v9 = vld [vmem:[#allocation51_spill] sm:$0xff] }
 0xa8c   :  { %v18659_v30 = vpop.eup %18658 }
 0xa8d   :  { %v10646_v43 = vmul.f32 %v18659_v30, %v18655_v1  ;;  %v18661_v50 = vpop.eup %18660  ;;  %v23260_v1 = vld [vmem:[#allocation106_spill] sm:$0xff]  ;;  %v23262_v30 = vld [vmem:[#allocation107_spill] sm:$0xff] }
 0xa8e   :  { %v10645_v26 = vmul.f32 %v18661_v50, %v21177_v20  ;;  %v23264_v50 = vld [vmem:[#allocation108_spill] sm:$0xff] }
 0xa8f   :  { %v18663_v23 = vpop.eup %18662 }
 0xa90   :  { %v21413_v12 = vadd.f32 %v10646_v43, %v10645_v26  ;;  %v23263_v43 = vld [vmem:[#allocation49_spill] sm:$0xff] }
 0xa91   :  { %v23266_v26 = vld [vmem:[#allocation109_spill] sm:$0xff] }
 0xa92   :  { %18664 = vtanh.f32 %v21413_v12 }
 0xa9c   :  { %v18665_v11 = vpop.eup %18664 }
 0xa9d   :  { %v10649_v46 = vmul.f32 %v18665_v11, %v18663_v23  ;;  %v23267_v23 = vld [vmem:[#allocation53_spill] sm:$0xff]  ;;  %v23268_v11 = vld [vmem:[#allocation110_spill] sm:$0xff] }
 0xa9f   :  { %v21416_v53 = vand.u32 4294901760, %v10649_v46 }
 0xaa1   :  { %v21419_v47 = vsub.f32 %v10649_v46, %v21416_v53  ;;  %v23269_v46 = vld [vmem:[#allocation55_spill] sm:$0xff] }
 0xaa3   :  { %v21422_v31 = vand.u32 4294901760, %v21419_v47 }
 0xaa5   :  { %v10765_v61 = vsub.f32 %v21419_v47, %v21422_v31 }
 0xaa7   :  { %v10766_v20 = vand.u32 4294901760, %v10765_v61  ;;  %v23270_v61 = vld [vmem:[#allocation111_spill] sm:$0xff] }
 0xaa9   :  { %10767 = vmatmul.mubr.f32.vlgmr.msra.gmra.mrb[12].mxu0 %v10766_v20  ;;  %11622 = vmatmul.mubr.f32.vlgmr.msra.gmra.mrb[14].mxu1 %v10766_v20  ;;  %v23271_v20 = vld [vmem:[#allocation57_spill] sm:$0xff] }
 0xaaa   :  { %17510 = vmatpush1.bf16.msra.mxu0 %v22792_v13  ;;  %17702 = vmatpush1.bf16.msra.mxu1 %v22793_v48 }
 0xaab   :  { %17512 = vmatprep.subr.bf16.mxu0 %v22794_v10  ;;  %17704 = vmatprep.subr.bf16.mxu1 %v22795_v17 }
 0xaac   :  { %10997 = vmatprep.mubr.f32.mxu0 %v22559_v29  ;;  %11852 = vmatprep.mubr.f32.mxu1 %v22559_v29 }
 0xaae   :  { %17514 = vmatpush1.bf16.msra.mxu0 %v22796_v56  ;;  %17706 = vmatpush1.bf16.msra.mxu1 %v22797_v60 }
 0xaaf   :  { %17516 = vmatprep.subr.bf16.mxu0 %v22798_v0  ;;  %17708 = vmatprep.subr.bf16.mxu1 %v22799_v18 }
 0xab2   :  { %17518 = vmatpush1.bf16.msra.mxu0 %v22800_v21  ;;  %17710 = vmatpush1.bf16.msra.mxu1 %v22884_v59 }
 0xab3   :  { %17520 = vmatprep.subr.bf16.mxu0 %v22801_v5  ;;  %17712 = vmatprep.subr.bf16.mxu1 %v22885_v52 }
 0xab6   :  { %17522 = vmatpush1.bf16.msra.mxu0 %v22802_v16  ;;  %17714 = vmatpush1.bf16.msra.mxu1 %v23256_v62  ;;  %v23328_v62 = vld [vmem:[#allocation42_spill] sm:$0xff] }
 0xab7   :  { %17524 = vmatprep.subr.bf16.mxu0 %v23257_v55  ;;  %17716 = vmatprep.subr.bf16.mxu1 %v23258_v6  ;;  %v23321_v6 = vld [vmem:[#allocation80_spill] sm:$0xff]  ;;  %v23327_v55 = vld [vmem:[#allocation83_spill] sm:$0xff] }
 0xaba   :  { %17526 = vmatpush1.bf16.msra.mxu0 %v23259_v38  ;;  %17718 = vmatpush1.bf16.msra.mxu1 %v23260_v1  ;;  %v23317_v1 = vld [vmem:[#allocation78_spill] sm:$0xff]  ;;  %v23318_v38 = vld [vmem:[#allocation32_spill] sm:$0xff] }
 0xabb   :  { %17528 = vmatprep.subr.bf16.mxu0 %v23261_v2  ;;  %17720 = vmatprep.subr.bf16.mxu1 %v23262_v30  ;;  %v23272_v2 = vld [vmem:[#allocation112_spill] sm:$0xff]  ;;  %v23273_v30 = vld [vmem:[#allocation59_spill] sm:$0xff] }
 0xabe   :  { %17530 = vmatpush1.bf16.msra.mxu0 %v23263_v43  ;;  %17722 = vmatpush1.bf16.msra.mxu1 %v23264_v50  ;;  %v23274_v43 = vld [vmem:[#allocation113_spill] sm:$0xff] }
 0xabf   :  { %17532 = vmatprep.subr.bf16.mxu0 %v23265_v9  ;;  %17724 = vmatprep.subr.bf16.mxu1 %v23266_v26  ;;  %v23275_v26 = vld [vmem:[#allocation60_spill] sm:$0xff]  ;;  %v23289_v50 = vld [vmem:[#allocation65_spill] sm:$0xff] }
 0xac0   :  { %v23288_v9 = vld [vmem:[#allocation120_spill] sm:$0xff] }
 0xac2   :  { %17534 = vmatpush1.bf16.msra.mxu0 %v23267_v23  ;;  %17726 = vmatpush1.bf16.msra.mxu1 %v23268_v11  ;;  %v23276_v23 = vld [vmem:[#allocation114_spill] sm:$0xff]  ;;  %v23277_v11 = vld [vmem:[#allocation61_spill] sm:$0xff] }
 0xac3   :  { %17536 = vmatprep.subr.bf16.mxu0 %v23269_v46  ;;  %17728 = vmatprep.subr.bf16.mxu1 %v23270_v61  ;;  %v23278_v46 = vld [vmem:[#allocation115_spill] sm:$0xff] }
 0xac4   :  { %v23283_v61 = vld [vmem:[#allocation63_spill] sm:$0xff] }
 0xac6   :  { %17538 = vmatpush1.bf16.msra.mxu0 %v23271_v20  ;;  %17730 = vmatpush1.bf16.msra.mxu1 %v23272_v2  ;;  %v23279_v2 = vld [vmem:[#allocation62_spill] sm:$0xff]  ;;  %v23282_v20 = vld [vmem:[#allocation117_spill] sm:$0xff] }
 0xac7   :  { %17540 = vmatprep.subr.bf16.mxu0 %v23273_v30  ;;  %17732 = vmatprep.subr.bf16.mxu1 %v23274_v43  ;;  %v23280_v30 = vld [vmem:[#allocation116_spill] sm:$0xff]  ;;  %v23281_v43 = vld [vmem:[#allocation23_spill] sm:$0xff] }
 0xac9   :  { %10999 = vmatmul.mubr.f32.vlgmr.msra.gmra.mrb[12].mxu0 %v21416_v53  ;;  %11854 = vmatmul.mubr.f32.vlgmr.msra.gmra.mrb[14].mxu1 %v21416_v53 }
 0xaca   :  { %17542 = vmatpush1.bf16.msra.mxu0 %v23275_v26  ;;  %17734 = vmatpush1.bf16.msra.mxu1 %v23276_v23  ;;  %v23284_v26 = vld [vmem:[#allocation118_spill] sm:$0xff] }
 0xacb   :  { %17544 = vmatprep.subr.bf16.mxu0 %v23277_v11  ;;  %17736 = vmatprep.subr.bf16.mxu1 %v23278_v46  ;;  %v23285_v23 = vld [vmem:[#allocation30_spill] sm:$0xff]  ;;  %v23286_v11 = vld [vmem:[#allocation119_spill] sm:$0xff]  ;;  %v23287_v46 = vld [vmem:[#allocation64_spill] sm:$0xff] }
 0xacc   :  { %11133 = vmatprep.mubr.f32.mxu0 %v22559_v29  ;;  %11988 = vmatprep.mubr.f32.mxu1 %v22559_v29 }
 0xace   :  { %17546 = vmatpush1.bf16.msra.mxu0 %v23279_v2  ;;  %17738 = vmatpush1.bf16.msra.mxu1 %v23280_v30  ;;  %v23290_v2 = vld [vmem:[#allocation121_spill] sm:$0xff]  ;;  %v23291_v30 = vld [vmem:[#allocation66_spill] sm:$0xff] }
 0xacf   :  { %17548 = vmatprep.subr.bf16.mxu0 %v23281_v43  ;;  %17740 = vmatprep.subr.bf16.mxu1 %v23282_v20  ;;  %v23292_v43 = vld [vmem:[#allocation122_spill] sm:$0xff]  ;;  %v23293_v20 = vld [vmem:[#allocation37_spill] sm:$0xff] }
 0xad2   :  { %17550 = vmatpush1.bf16.msra.mxu0 %v23283_v61  ;;  %17742 = vmatpush1.bf16.msra.mxu1 %v23284_v26  ;;  %v23294_v61 = vld [vmem:[#allocation123_spill] sm:$0xff] }
 0xad3   :  { %17552 = vmatprep.subr.bf16.mxu0 %v23285_v23  ;;  %17744 = vmatprep.subr.bf16.mxu1 %v23286_v11  ;;  %v23295_v26 = vld [vmem:[#allocation67_spill] sm:$0xff]  ;;  %v23296_v23 = vld [vmem:[#allocation124_spill] sm:$0xff] }
 0xad4   :  { %v23297_v11 = vld [vmem:[#allocation68_spill] sm:$0xff] }
 0xad6   :  { %17554 = vmatpush1.bf16.msra.mxu0 %v23287_v46  ;;  %17746 = vmatpush1.bf16.msra.mxu1 %v23288_v9  ;;  %v23298_v46 = vld [vmem:[#allocation125_spill] sm:$0xff] }
 0xad7   :  { %17556 = vmatprep.subr.bf16.mxu0 %v23289_v50  ;;  %17748 = vmatprep.subr.bf16.mxu1 %v23290_v2  ;;  %v23299_v9 = vld [vmem:[#allocation69_spill] sm:$0xff]  ;;  %v23300_v50 = vld [vmem:[#allocation126_spill] sm:$0xff] }
 0xad8   :  { %v23301_v2 = vld [vmem:[#allocation70_spill] sm:$0xff] }
 0xada   :  { %17558 = vmatpush1.bf16.msra.mxu0 %v23291_v30  ;;  %17750 = vmatpush1.bf16.msra.mxu1 %v23292_v43  ;;  %v23302_v30 = vld [vmem:[#allocation127_spill] sm:$0xff] }
 0xadb   :  { %17560 = vmatprep.subr.bf16.mxu0 %v23293_v20  ;;  %17752 = vmatprep.subr.bf16.mxu1 %v23294_v61  ;;  %v23303_v43 = vld [vmem:[#allocation71_spill] sm:$0xff]  ;;  %v23304_v20 = vld [vmem:[#allocation128_spill] sm:$0xff] }
 0xadc   :  { %v23316_v61 = vld [vmem:[#allocation27_spill] sm:$0xff] }
 0xade   :  { %17562 = vmatpush1.bf16.msra.mxu0 %v23295_v26  ;;  %17754 = vmatpush1.bf16.msra.mxu1 %v23296_v23  ;;  %v23314_v23 = vld [vmem:[#allocation26_spill] sm:$0xff]  ;;  %v23315_v26 = vld [vmem:[#allocation77_spill] sm:$0xff] }
 0xadf   :  { %17564 = vmatprep.subr.bf16.mxu0 %v23297_v11  ;;  %17756 = vmatprep.subr.bf16.mxu1 %v23298_v46  ;;  %v23312_v46 = vld [vmem:[#allocation25_spill] sm:$0xff]  ;;  %v23313_v11 = vld [vmem:[#allocation76_spill] sm:$0xff] }
 0xae2   :  { %17566 = vmatpush1.bf16.msra.mxu0 %v23299_v9  ;;  %17758 = vmatpush1.bf16.msra.mxu1 %v23300_v50  ;;  %v23310_v50 = vld [vmem:[#allocation24_spill] sm:$0xff]  ;;  %v23311_v9 = vld [vmem:[#allocation94_spill] sm:$0xff] }
 0xae3   :  { %17568 = vmatprep.subr.bf16.mxu0 %v23301_v2  ;;  %17760 = vmatprep.subr.bf16.mxu1 %v23302_v30  ;;  %v23308_v30 = vld [vmem:[#allocation22_spill] sm:$0xff]  ;;  %v23309_v2 = vld [vmem:[#allocation91_spill] sm:$0xff] }
 0xae6   :  { %17570 = vmatpush1.bf16.msra.mxu0 %v23303_v43  ;;  %17762 = vmatpush1.bf16.msra.mxu1 %v23304_v20  ;;  %v23306_v20 = vld [vmem:[#allocation21_spill] sm:$0xff]  ;;  %v23307_v43 = vld [vmem:[#allocation90_spill] sm:$0xff] }
 0xae7   :  { %17572 = vmatprep.subr.bf16.mxu0 %v22828_v63  ;;  %17764 = vmatprep.subr.bf16.mxu1 %v22761_v27 }
 0xae9   :  { %11136 = vmatmul.mubr.f32.vlgmr.msra.gmra.mrb[12].mxu0 %v21419_v47  ;;  %11991 = vmatmul.mubr.f32.vlgmr.msra.gmra.mrb[14].mxu1 %v21419_v47  ;;  %v23305_v47 = vld [vmem:[#allocation86_spill] sm:$0xff] }
 0xaea   :  { %17574 = vmatpush1.bf16.msra.mxu0 %v22829_v34  ;;  %17766 = vmatpush1.bf16.msra.mxu1 %v19540_v57 }
 0xaeb   :  { %17576 = vmatprep.subr.bf16.mxu0 %v22830_v24  ;;  %17768 = vmatprep.subr.bf16.mxu1 %v19542_v40 }
 0xaec   :  { %11238 = vmatprep.mubr.f32.mxu0 %v22559_v29  ;;  %12093 = vmatprep.mubr.f32.mxu1 %v22559_v29 }
 0xaee   :  { %17578 = vmatpush1.bf16.msra.mxu0 %v22831_v28  ;;  %17770 = vmatpush1.bf16.msra.mxu1 %v19544_v19 }
 0xaef   :  { %17580 = vmatprep.subr.bf16.mxu0 %v22832_v39  ;;  %17772 = vmatprep.subr.bf16.mxu1 %v19548_v32 }
 0xaf2   :  { %17582 = vmatpush1.bf16.msra.mxu0 %v22833_v7  ;;  %17774 = vmatpush1.bf16.msra.mxu1 %v19550_v15 }
 0xaf3   :  { %17584 = vmatprep.subr.bf16.mxu0 %v22834_v25  ;;  %17776 = vmatprep.subr.bf16.mxu1 %v19552_v8 }
 0xaf6   :  { %17586 = vmatpush1.bf16.msra.mxu0 %v22835_v45  ;;  %17778 = vmatpush1.bf16.msra.mxu1 %v19557_v33 }
 0xaf7   :  { %17588 = vmatprep.subr.bf16.mxu0 %v22836_v51  ;;  %17780 = vmatprep.subr.bf16.mxu1 %v22762_v35 }
 0xafa   :  { %17590 = vmatpush1.bf16.msra.mxu0 %v22837_v36  ;;  %17782 = vmatpush1.bf16.msra.mxu1 %v22763_v49 }
 0xafb   :  { %17592 = vmatprep.subr.bf16.mxu0 %v22838_v3  ;;  %17784 = vmatprep.subr.bf16.mxu1 %v22764_v4 }
 0xafe   :  { %17594 = vmatpush1.bf16.msra.mxu0 %v22839_v42  ;;  %17786 = vmatpush1.bf16.msra.mxu1 %v22765_v58 }
 0xaff   :  { %17596 = vmatprep.subr.bf16.mxu0 %v23118_v44  ;;  %17788 = vmatprep.subr.bf16.mxu1 %v23305_v47 }
 0xb02   :  { %17598 = vmatpush1.bf16.msra.mxu0 %v23306_v20  ;;  %17790 = vmatpush1.bf16.msra.mxu1 %v23307_v43 }
 0xb03   :  { %17600 = vmatprep.subr.bf16.mxu0 %v23308_v30  ;;  %17792 = vmatprep.subr.bf16.mxu1 %v23309_v2 }
 0xb06   :  { %17602 = vmatpush1.bf16.msra.mxu0 %v23310_v50  ;;  %17794 = vmatpush1.bf16.msra.mxu1 %v23311_v9 }
 0xb07   :  { %17604 = vmatprep.subr.bf16.mxu0 %v23312_v46  ;;  %17796 = vmatprep.subr.bf16.mxu1 %v23313_v11  ;;  %v23319_v46 = vld [vmem:[#allocation79_spill] sm:$0xff]  ;;  %v23320_v11 = vld [vmem:[#allocation33_spill] sm:$0xff] }
 0xb09   :  { %11242 = vmatmul.mubr.f32.vlgmr.msra.gmra.mrb[12].mxu0 %v21422_v31  ;;  %12097 = vmatmul.mubr.f32.vlgmr.msra.gmra.mrb[14].mxu1 %v21422_v31  ;;  %v23322_v31 = vld [vmem:[#allocation35_spill] sm:$0xff] }
 0xb0a   :  { %17606 = vmatpush1.bf16.msra.mxu0 %v23314_v23  ;;  %17798 = vmatpush1.bf16.msra.mxu1 %v23315_v26  ;;  %v23323_v23 = vld [vmem:[#allocation81_spill] sm:$0xff]  ;;  %v23324_v26 = vld [vmem:[#allocation39_spill] sm:$0xff] }
 0xb0b   :  { %17608 = vmatprep.subr.bf16.mxu0 %v23316_v61  ;;  %17800 = vmatprep.subr.bf16.mxu1 %v23317_v1  ;;  %v23325_v61 = vld [vmem:[#allocation82_spill] sm:$0xff]  ;;  %v23326_v1 = vld [vmem:[#allocation40_spill] sm:$0xff] }
 0xb0c   :  { %11408 = vmatprep.mubr.f32.mxu0 %v22559_v29  ;;  %12263 = vmatprep.mubr.f32.mxu1 %v22559_v29 }
 0xb0e   :  { %17610 = vmatpush1.bf16.msra.mxu0 %v23318_v38  ;;  %17802 = vmatpush1.bf16.msra.mxu1 %v23319_v46  ;;  %v23329_v38 = vld [vmem:[#allocation85_spill] sm:$0xff]  ;;  %v23330_v46 = vld [vmem:[#allocation44_spill] sm:$0xff] }
 0xb0f   :  { %17612 = vmatprep.subr.bf16.mxu0 %v23320_v11  ;;  %17804 = vmatprep.subr.bf16.mxu1 %v23321_v6  ;;  %v23331_v11 = vld [vmem:[#allocation87_spill] sm:$0xff]  ;;  %v23332_v6 = vld [vmem:[#allocation46_spill] sm:$0xff] }
 0xb12   :  { %17614 = vmatpush1.bf16.msra.mxu0 %v23322_v31  ;;  %17806 = vmatpush1.bf16.msra.mxu1 %v23323_v23  ;;  %v23333_v31 = vld [vmem:[#allocation88_spill] sm:$0xff]  ;;  %v23334_v23 = vld [vmem:[#allocation50_spill] sm:$0xff] }
 0xb13   :  { %17616 = vmatprep.subr.bf16.mxu0 %v23324_v26  ;;  %17808 = vmatprep.subr.bf16.mxu1 %v23325_v61  ;;  %v23335_v26 = vld [vmem:[#allocation89_spill] sm:$0xff]  ;;  %v23336_v61 = vld [vmem:[#allocation52_spill] sm:$0xff] }
 0xb16   :  { %17618 = vmatpush1.bf16.msra.mxu0 %v23326_v1  ;;  %17810 = vmatpush1.bf16.msra.mxu1 %v23327_v55  ;;  %v23337_v1 = vld [vmem:[#allocation92_spill] sm:$0xff]  ;;  %v23338_v55 = vld [vmem:[#allocation54_spill] sm:$0xff] }
 0xb17   :  { %17620 = vmatprep.subr.bf16.mxu0 %v23328_v62  ;;  %17812 = vmatprep.subr.bf16.mxu1 %v23329_v38  ;;  %v23339_v62 = vld [vmem:[#allocation93_spill] sm:$0xff]  ;;  %v23340_v38 = vld [vmem:[#allocation56_spill] sm:$0xff] }
 0xb1a   :  { %17622 = vmatpush1.bf16.msra.mxu0 %v23330_v46  ;;  %17814 = vmatpush1.bf16.msra.mxu1 %v23331_v11  ;;  %v23341_v46 = vld [vmem:[#allocation95_spill] sm:$0xff]  ;;  %v23342_v11 = vld [vmem:[#allocation58_spill] sm:$0xff] }
 0xb1b   :  { %17624 = vmatprep.subr.bf16.mxu0 %v23332_v6  ;;  %17816 = vmatprep.subr.bf16.mxu1 %v23333_v31  ;;  %v23343_v6 = vld [vmem:[#allocation97_spill] sm:$0xff] }
 0xb1e   :  { %17626 = vmatpush1.bf16.msra.mxu0 %v23334_v23  ;;  %17818 = vmatpush1.bf16.msra.mxu1 %v23335_v26 }
 0xb1f   :  { %17628 = vmatprep.subr.bf16.mxu0 %v23336_v61  ;;  %17820 = vmatprep.subr.bf16.mxu1 %v23337_v1  ;;  %v23348_v1 = vld [vmem:[#allocation75_spill] sm:$0xff] }
 0xb22   :  { %17630 = vmatpush1.bf16.msra.mxu0 %v23338_v55  ;;  %17822 = vmatpush1.bf16.msra.mxu1 %v23339_v62  ;;  %v23347_v62 = vld [vmem:[#allocation72_spill] sm:$0xff] }
 0xb23   :  { %17632 = vmatprep.subr.bf16.mxu0 %v23340_v38  ;;  %17824 = vmatprep.subr.bf16.mxu1 %v23341_v46  ;;  %v23346_v46 = vld [vmem:[#allocation73_spill] sm:$0xff] }
 0xb26   :  { %17634 = vmatpush1.bf16.msra.mxu0 %v23342_v11  ;;  %17826 = vmatpush1.bf16.msra.mxu1 %v23343_v6  ;;  %v23345_v6 = vld [vmem:[#allocation96_spill] sm:$0xff]  ;;  %v10655_v11 = vpop.permute.xlu0 %10654 }
 0xb27   :  { %17636 = vmatprep.subr.bf16.mxu0 %v22828_v63  ;;  %17828 = vmatprep.subr.bf16.mxu1 %v22761_v27  ;;  %v10657_v38 = vmul.f32 %v10655_v11, %v23346_v46  ;;  %v10658_v55 = vmul.f32 %v10655_v11, %v23347_v62 }
 0xb29   :  { %11410 = vmatmul.mubr.f32.vlgmr.msra.gmra.mrb[12].mxu0 %v21416_v53  ;;  %12265 = vmatmul.mubr.f32.vlgmr.msra.gmra.mrb[14].mxu1 %v21416_v53  ;;  %v10661_v61 = vadd.f32 %v10657_v38, %v23348_v1  ;;  %v10662_v31 = vadd.f32 %v10658_v55, %v23069_v54 }
 0xb2a   :  { %17638 = vmatpush1.bf16.msra.mxu0 %v22829_v34  ;;  %17830 = vmatpush1.bf16.msra.mxu1 %v19540_v57 }
 0xb2b   :  { %17640 = vmatprep.subr.bf16.mxu0 %v22830_v24  ;;  %17832 = vmatprep.subr.bf16.mxu1 %v19542_v40 }
 0xb2c   :  { %11512 = vmatprep.mubr.f32.mxu0 %v22559_v29  ;;  %12367 = vmatprep.mubr.f32.mxu1 %v22559_v29 }
 0xb2e   :  { %17642 = vmatpush1.bf16.msra.mxu0 %v22831_v28  ;;  %17834 = vmatpush1.bf16.msra.mxu1 %v19544_v19 }
 0xb2f   :  { %17644 = vmatprep.subr.bf16.mxu0 %v22832_v39  ;;  %17836 = vmatprep.subr.bf16.mxu1 %v19548_v32 }
 0xb32   :  { %17646 = vmatpush1.bf16.msra.mxu0 %v22833_v7  ;;  %17838 = vmatpush1.bf16.msra.mxu1 %v19550_v15 }
 0xb33   :  { %17648 = vmatprep.subr.bf16.mxu0 %v22834_v25  ;;  %17840 = vmatprep.subr.bf16.mxu1 %v19552_v8 }
 0xb36   :  { %17650 = vmatpush1.bf16.msra.mxu0 %v22835_v45  ;;  %17842 = vmatpush1.bf16.msra.mxu1 %v19557_v33 }
 0xb37   :  { %17652 = vmatprep.subr.bf16.mxu0 %v22836_v51  ;;  %17844 = vmatprep.subr.bf16.mxu1 %v22762_v35 }
 0xb3a   :  { %17654 = vmatpush1.bf16.msra.mxu0 %v22837_v36  ;;  %17846 = vmatpush1.bf16.msra.mxu1 %v22763_v49 }
 0xb3b   :  { %17656 = vmatprep.subr.bf16.mxu0 %v22838_v3  ;;  %17848 = vmatprep.subr.bf16.mxu1 %v22764_v4 }
 0xb3e   :  { %17658 = vmatpush1.bf16.msra.mxu0 %v22839_v42  ;;  %17850 = vmatpush1.bf16.msra.mxu1 %v22765_v58 }
 0xb3f   :  { %17660 = vmatprep.subr.bf16.mxu0 %v23118_v44  ;;  %17852 = vmatprep.subr.bf16.mxu1 %v23305_v47 }
 0xb42   :  { %17662 = vmatpush1.bf16.msra.mxu0 %v23306_v20  ;;  %17854 = vmatpush1.bf16.msra.mxu1 %v23307_v43 }
 0xb43   :  { %17664 = vmatprep.subr.bf16.mxu0 %v23308_v30  ;;  %17856 = vmatprep.subr.bf16.mxu1 %v23309_v2 }
 0xb46   :  { %17666 = vmatpush1.bf16.msra.mxu0 %v23310_v50  ;;  %17858 = vmatpush1.bf16.msra.mxu1 %v23311_v9 }
 0xb47   :  { %17860 = vmatprep.subr.bf16.mxu0 %v22828_v63  ;;  %18052 = vmatprep.subr.bf16.mxu1 %v22761_v27 }
 0xb49   :  { %11514 = vmatmul.mubr.f32.vlgmr.msra.gmra.mrb[12].mxu0 %v21416_v53  ;;  %12369 = vmatmul.mubr.f32.vlgmr.msra.gmra.mrb[14].mxu1 %v21416_v53  ;;  %v23344_v53 = vld [vmem:[#allocation28_spill] sm:$0xff] }
 0xb4a   :  { %17862 = vmatpush1.bf16.msra.mxu0 %v22829_v34  ;;  %18054 = vmatpush1.bf16.msra.mxu1 %v19540_v57 }
 0xb4b   :  { %17864 = vmatprep.subr.bf16.mxu0 %v22830_v24  ;;  %18056 = vmatprep.subr.bf16.mxu1 %v19542_v40 }
 0xb4c   :  { %12514 = vmatprep.mubr.f32.mxu0 %v22559_v29  ;;  %13369 = vmatprep.mubr.f32.mxu1 %v22559_v29 }
 0xb4e   :  { %17866 = vmatpush1.bf16.msra.mxu0 %v22831_v28  ;;  %18058 = vmatpush1.bf16.msra.mxu1 %v19544_v19 }
 0xb4f   :  { %17868 = vmatprep.subr.bf16.mxu0 %v22832_v39  ;;  %18060 = vmatprep.subr.bf16.mxu1 %v19548_v32 }
 0xb52   :  { %17870 = vmatpush1.bf16.msra.mxu0 %v22833_v7  ;;  %18062 = vmatpush1.bf16.msra.mxu1 %v19550_v15 }
 0xb53   :  { %17872 = vmatprep.subr.bf16.mxu0 %v22834_v25  ;;  %18064 = vmatprep.subr.bf16.mxu1 %v19552_v8 }
 0xb56   :  { %17874 = vmatpush1.bf16.msra.mxu0 %v22835_v45  ;;  %18066 = vmatpush1.bf16.msra.mxu1 %v19557_v33 }
 0xb57   :  { %17876 = vmatprep.subr.bf16.mxu0 %v22836_v51  ;;  %18068 = vmatprep.subr.bf16.mxu1 %v22762_v35 }
 0xb5a   :  { %17878 = vmatpush1.bf16.msra.mxu0 %v22837_v36  ;;  %18070 = vmatpush1.bf16.msra.mxu1 %v22763_v49 }
 0xb5b   :  { %17880 = vmatprep.subr.bf16.mxu0 %v22838_v3  ;;  %18072 = vmatprep.subr.bf16.mxu1 %v22764_v4 }
 0xb5e   :  { %17882 = vmatpush1.bf16.msra.mxu0 %v22839_v42  ;;  %18074 = vmatpush1.bf16.msra.mxu1 %v22765_v58 }
 0xb5f   :  { %17884 = vmatprep.subr.bf16.mxu0 %v23118_v44  ;;  %18076 = vmatprep.subr.bf16.mxu1 %v23305_v47 }
 0xb62   :  { %17886 = vmatpush1.bf16.msra.mxu0 %v23306_v20  ;;  %18078 = vmatpush1.bf16.msra.mxu1 %v23307_v43 }
 0xb63   :  { %17888 = vmatprep.subr.bf16.mxu0 %v23308_v30  ;;  %18080 = vmatprep.subr.bf16.mxu1 %v23309_v2 }
 0xb66   :  { %17890 = vmatpush1.bf16.msra.mxu0 %v23310_v50  ;;  %18082 = vmatpush1.bf16.msra.mxu1 %v23311_v9  ;;  %v10659_v9 = vmul.f32 %v10655_v11, %v22882_v22 }
 0xb67   :  { %17892 = vmatprep.subr.bf16.mxu0 %v23344_v53  ;;  %18084 = vmatprep.subr.bf16.mxu1 %v23345_v6  ;;  %v10660_v6 = vmul.f32 %v10655_v11, %v22883_v41 }
 0xb68   :  { %v10663_v46 = vadd.f32 %v10659_v9, %v20214_v14 }
 0xb69   :  { %v10664_v38 = vadd.f32 %v10660_v6, %v20217_v37 }
 0xc1c   :  { %v11515_v26 = vpop.f32.mrb[12].mxu0  ;;  %v12370_v23 = vpop.f32.mrb[14].mxu1 }
 0xc1d   :  { %v12375_v2 = vadd.f32 %v11515_v26, %v10661_v61  ;;  %v11517_v30 = vpop.f32.mrb[13].mxu0  ;;  %v12372_v50 = vpop.f32.mrb[15].mxu1  ;;  %v12377_v62 = vadd.f32 %v12370_v23, %v10663_v46 }
 0xc1e   :  { %v12376_v43 = vadd.f32 %v11517_v30, %v10662_v31  ;;  %v12378_v1 = vadd.f32 %v12372_v50, %v10664_v38 }
 0xc1f   :  { %v14851_v53 = vmul.f32 -1.442695, %v12375_v2  ;;  %v14853_v47 = vmul.f32 -1.442695, %v12377_v62 }
 0xc20   :  { %v14852_v20 = vmul.f32 -1.442695, %v12376_v43 }
 0xc21   :  { %18666 = vpow2.f32 %v14851_v53 }
 0xc22   :  { %18668 = vpow2.f32 %v14852_v20 }
 0xc23   :  { %18670 = vtanh.f32 %v12378_v1 }
 0xc24   :  { %18672 = vpow2.f32 %v14853_v47 }
 0xc2b   :  { %v18667_v55 = vpop.eup %18666 }
 0xc2c   :  { %v12388_v26 = vadd.f32 1.0, %v18667_v55  ;;  %v18669_v61 = vpop.eup %18668  ;;  %v23362_v55 = vld [vmem:[#allocation55_spill] sm:$0xff] }
 0xc2d   :  { %v12389_v30 = vadd.f32 1.0, %v18669_v61  ;;  %v18671_v2 = vpop.eup %18670  ;;  %v23364_v61 = vld [vmem:[#allocation57_spill] sm:$0xff] }
 0xc2e   :  { %18674 = vrcp.f32 %v12388_v26  ;;  %v18673_v43 = vpop.eup %18672  ;;  %v23363_v26 = vld [vmem:[#allocation111_spill] sm:$0xff] }
 0xc2f   :  { %18676 = vrcp.f32 %v12389_v30  ;;  %v12390_v9 = vadd.f32 1.0, %v18673_v43  ;;  %v23365_v30 = vld [vmem:[#allocation112_spill] sm:$0xff]  ;;  %v23367_v43 = vld [vmem:[#allocation113_spill] sm:$0xff] }
 0xc31   :  { %18678 = vrcp.f32 %v12390_v9  ;;  %v23371_v9 = vld [vmem:[#allocation115_spill] sm:$0xff] }
 0xc38   :  { %v18675_v31 = vpop.eup %18674 }
 0xc39   :  { %v12399_v11 = vmul.f32 %v18675_v31, %v18671_v2  ;;  %v18677_v53 = vpop.eup %18676  ;;  %v23366_v2 = vld [vmem:[#allocation59_spill] sm:$0xff]  ;;  %v23368_v31 = vld [vmem:[#allocation60_spill] sm:$0xff] }
 0xc3a   :  { %v12398_v23 = vmul.f32 %v18677_v53, %v21413_v12  ;;  %v23370_v53 = vld [vmem:[#allocation61_spill] sm:$0xff] }
 0xc3b   :  { %v18679_v62 = vpop.eup %18678 }
 0xc3c   :  { %v21649_v46 = vadd.f32 %v12399_v11, %v12398_v23  ;;  %v23369_v11 = vld [vmem:[#allocation114_spill] sm:$0xff] }
 0xc3d   :  { %v23372_v23 = vld [vmem:[#allocation62_spill] sm:$0xff] }
 0xc3e   :  { %18680 = vtanh.f32 %v21649_v46 }
 0xc48   :  { %v18681_v1 = vpop.eup %18680 }
 0xc49   :  { %v12402_v50 = vmul.f32 %v18681_v1, %v18679_v62  ;;  %v23373_v62 = vld [vmem:[#allocation116_spill] sm:$0xff]  ;;  %v23374_v1 = vld [vmem:[#allocation23_spill] sm:$0xff] }
 0xc4b   :  { %v21652_v20 = vand.u32 4294901760, %v12402_v50 }
 0xc4d   :  { %v21655_v47 = vsub.f32 %v12402_v50, %v21652_v20  ;;  %v23375_v50 = vld [vmem:[#allocation117_spill] sm:$0xff] }
 0xc4f   :  { %v21658_v6 = vand.u32 4294901760, %v21655_v47 }
 0xc51   :  { %v12518_v38 = vsub.f32 %v21655_v47, %v21658_v6 }
 0xc53   :  { %v12519_v12 = vand.u32 4294901760, %v12518_v38  ;;  %v23376_v38 = vld [vmem:[#allocation63_spill] sm:$0xff] }
 0xc55   :  { %12520 = vmatmul.mubr.f32.vlgmr.msra.gmra.mrb[14].mxu0 %v12519_v12  ;;  %13375 = vmatmul.mubr.f32.vlgmr.msra.gmra.mrb[16].mxu1 %v12519_v12  ;;  %v23377_v12 = vld [vmem:[#allocation118_spill] sm:$0xff] }
 0xc56   :  { %17894 = vmatpush1.bf16.msra.mxu0 %v22792_v13  ;;  %18086 = vmatpush1.bf16.msra.mxu1 %v22793_v48  ;;  %v23349_v13 = vld [vmem:[#allocation104_spill] sm:$0xff]  ;;  %v23350_v48 = vld [vmem:[#allocation45_spill] sm:$0xff] }
 0xc57   :  { %17896 = vmatprep.subr.bf16.mxu0 %v22794_v10  ;;  %18088 = vmatprep.subr.bf16.mxu1 %v22795_v17  ;;  %v23351_v10 = vld [vmem:[#allocation105_spill] sm:$0xff]  ;;  %v23352_v17 = vld [vmem:[#allocation47_spill] sm:$0xff] }
 0xc58   :  { %12750 = vmatprep.mubr.f32.mxu0 %v22559_v29  ;;  %13605 = vmatprep.mubr.f32.mxu1 %v22559_v29 }
 0xc5a   :  { %17898 = vmatpush1.bf16.msra.mxu0 %v22796_v56  ;;  %18090 = vmatpush1.bf16.msra.mxu1 %v22797_v60  ;;  %v23353_v56 = vld [vmem:[#allocation106_spill] sm:$0xff]  ;;  %v23354_v60 = vld [vmem:[#allocation48_spill] sm:$0xff] }
 0xc5b   :  { %17900 = vmatprep.subr.bf16.mxu0 %v22798_v0  ;;  %18092 = vmatprep.subr.bf16.mxu1 %v22799_v18  ;;  %v23355_v0 = vld [vmem:[#allocation107_spill] sm:$0xff]  ;;  %v23356_v18 = vld [vmem:[#allocation49_spill] sm:$0xff] }
 0xc5e   :  { %17902 = vmatpush1.bf16.msra.mxu0 %v22800_v21  ;;  %18094 = vmatpush1.bf16.msra.mxu1 %v22884_v59  ;;  %v23357_v21 = vld [vmem:[#allocation108_spill] sm:$0xff]  ;;  %v23360_v59 = vld [vmem:[#allocation53_spill] sm:$0xff] }
 0xc5f   :  { %17904 = vmatprep.subr.bf16.mxu0 %v22801_v5  ;;  %18096 = vmatprep.subr.bf16.mxu1 %v22885_v52  ;;  %v23358_v5 = vld [vmem:[#allocation51_spill] sm:$0xff]  ;;  %v23361_v52 = vld [vmem:[#allocation110_spill] sm:$0xff] }
 0xc62   :  { %17906 = vmatpush1.bf16.msra.mxu0 %v22802_v16  ;;  %18098 = vmatpush1.bf16.msra.mxu1 %v23349_v13  ;;  %v23359_v16 = vld [vmem:[#allocation109_spill] sm:$0xff]  ;;  %v23378_v13 = vld [vmem:[#allocation30_spill] sm:$0xff] }
 0xc63   :  { %17908 = vmatprep.subr.bf16.mxu0 %v23350_v48  ;;  %18100 = vmatprep.subr.bf16.mxu1 %v23351_v10  ;;  %v23379_v48 = vld [vmem:[#allocation119_spill] sm:$0xff]  ;;  %v23380_v10 = vld [vmem:[#allocation64_spill] sm:$0xff] }
 0xc66   :  { %17910 = vmatpush1.bf16.msra.mxu0 %v23352_v17  ;;  %18102 = vmatpush1.bf16.msra.mxu1 %v23353_v56  ;;  %v23381_v17 = vld [vmem:[#allocation120_spill] sm:$0xff]  ;;  %v23382_v56 = vld [vmem:[#allocation65_spill] sm:$0xff] }
 0xc67   :  { %17912 = vmatprep.subr.bf16.mxu0 %v23354_v60  ;;  %18104 = vmatprep.subr.bf16.mxu1 %v23355_v0  ;;  %v23383_v60 = vld [vmem:[#allocation121_spill] sm:$0xff]  ;;  %v23384_v0 = vld [vmem:[#allocation66_spill] sm:$0xff] }
 0xc6a   :  { %17914 = vmatpush1.bf16.msra.mxu0 %v23356_v18  ;;  %18106 = vmatpush1.bf16.msra.mxu1 %v23357_v21  ;;  %v23385_v18 = vld [vmem:[#allocation122_spill] sm:$0xff]  ;;  %v23386_v21 = vld [vmem:[#allocation37_spill] sm:$0xff] }
 0xc6b   :  { %17916 = vmatprep.subr.bf16.mxu0 %v23358_v5  ;;  %18108 = vmatprep.subr.bf16.mxu1 %v23359_v16  ;;  %v23387_v5 = vld [vmem:[#allocation123_spill] sm:$0xff] }
 0xc6c   :  { %v23388_v16 = vld [vmem:[#allocation67_spill] sm:$0xff] }
 0xc6e   :  { %17918 = vmatpush1.bf16.msra.mxu0 %v23360_v59  ;;  %18110 = vmatpush1.bf16.msra.mxu1 %v23361_v52  ;;  %v23389_v59 = vld [vmem:[#allocation124_spill] sm:$0xff] }
 0xc6f   :  { %17920 = vmatprep.subr.bf16.mxu0 %v23362_v55  ;;  %18112 = vmatprep.subr.bf16.mxu1 %v23363_v26  ;;  %v23390_v52 = vld [vmem:[#allocation68_spill] sm:$0xff]  ;;  %v23391_v55 = vld [vmem:[#allocation125_spill] sm:$0xff] }
 0xc70   :  { %v23392_v26 = vld [vmem:[#allocation69_spill] sm:$0xff] }
 0xc72   :  { %17922 = vmatpush1.bf16.msra.mxu0 %v23364_v61  ;;  %18114 = vmatpush1.bf16.msra.mxu1 %v23365_v30  ;;  %v23393_v61 = vld [vmem:[#allocation126_spill] sm:$0xff] }
 0xc73   :  { %17924 = vmatprep.subr.bf16.mxu0 %v23366_v2  ;;  %18116 = vmatprep.subr.bf16.mxu1 %v23367_v43  ;;  %v23394_v30 = vld [vmem:[#allocation70_spill] sm:$0xff]  ;;  %v23395_v2 = vld [vmem:[#allocation127_spill] sm:$0xff] }
 0xc74   :  { %v23396_v43 = vld [vmem:[#allocation71_spill] sm:$0xff] }
 0xc75   :  { %12752 = vmatmul.mubr.f32.vlgmr.msra.gmra.mrb[14].mxu0 %v21652_v20  ;;  %13607 = vmatmul.mubr.f32.vlgmr.msra.gmra.mrb[16].mxu1 %v21652_v20 }
 0xc76   :  { %17926 = vmatpush1.bf16.msra.mxu0 %v23368_v31  ;;  %18118 = vmatpush1.bf16.msra.mxu1 %v23369_v11  ;;  %v23397_v31 = vld [vmem:[#allocation128_spill] sm:$0xff]  ;;  %v23399_v11 = vld [vmem:[#allocation21_spill] sm:$0xff] }
 0xc77   :  { %17928 = vmatprep.subr.bf16.mxu0 %v23370_v53  ;;  %18120 = vmatprep.subr.bf16.mxu1 %v23371_v9  ;;  %v23400_v53 = vld [vmem:[#allocation90_spill] sm:$0xff] }
 0xc78   :  { %12886 = vmatprep.mubr.f32.mxu0 %v22559_v29  ;;  %13741 = vmatprep.mubr.f32.mxu1 %v22559_v29  ;;  %v23401_v9 = vld [vmem:[#allocation22_spill] sm:$0xff] }
 0xc7a   :  { %17930 = vmatpush1.bf16.msra.mxu0 %v23372_v23  ;;  %18122 = vmatpush1.bf16.msra.mxu1 %v23373_v62  ;;  %v23402_v23 = vld [vmem:[#allocation91_spill] sm:$0xff]  ;;  %v23403_v62 = vld [vmem:[#allocation24_spill] sm:$0xff] }
 0xc7b   :  { %17932 = vmatprep.subr.bf16.mxu0 %v23374_v1  ;;  %18124 = vmatprep.subr.bf16.mxu1 %v23375_v50  ;;  %v23404_v1 = vld [vmem:[#allocation94_spill] sm:$0xff]  ;;  %v23405_v50 = vld [vmem:[#allocation25_spill] sm:$0xff] }
 0xc7e   :  { %17934 = vmatpush1.bf16.msra.mxu0 %v23376_v38  ;;  %18126 = vmatpush1.bf16.msra.mxu1 %v23377_v12  ;;  %v23406_v38 = vld [vmem:[#allocation76_spill] sm:$0xff]  ;;  %v23407_v12 = vld [vmem:[#allocation26_spill] sm:$0xff] }
 0xc7f   :  { %17936 = vmatprep.subr.bf16.mxu0 %v23378_v13  ;;  %18128 = vmatprep.subr.bf16.mxu1 %v23379_v48  ;;  %v23408_v13 = vld [vmem:[#allocation77_spill] sm:$0xff]  ;;  %v23409_v48 = vld [vmem:[#allocation27_spill] sm:$0xff] }
 0xc82   :  { %17938 = vmatpush1.bf16.msra.mxu0 %v23380_v10  ;;  %18130 = vmatpush1.bf16.msra.mxu1 %v23381_v17  ;;  %v23410_v10 = vld [vmem:[#allocation78_spill] sm:$0xff]  ;;  %v23411_v17 = vld [vmem:[#allocation32_spill] sm:$0xff] }
 0xc83   :  { %17940 = vmatprep.subr.bf16.mxu0 %v23382_v56  ;;  %18132 = vmatprep.subr.bf16.mxu1 %v23383_v60  ;;  %v23412_v56 = vld [vmem:[#allocation79_spill] sm:$0xff]  ;;  %v23413_v60 = vld [vmem:[#allocation33_spill] sm:$0xff] }
 0xc86   :  { %17942 = vmatpush1.bf16.msra.mxu0 %v23384_v0  ;;  %18134 = vmatpush1.bf16.msra.mxu1 %v23385_v18  ;;  %v23414_v0 = vld [vmem:[#allocation80_spill] sm:$0xff]  ;;  %v23416_v18 = vld [vmem:[#allocation81_spill] sm:$0xff] }
 0xc87   :  { %17944 = vmatprep.subr.bf16.mxu0 %v23386_v21  ;;  %18136 = vmatprep.subr.bf16.mxu1 %v23387_v5  ;;  %v23417_v21 = vld [vmem:[#allocation39_spill] sm:$0xff]  ;;  %v23418_v5 = vld [vmem:[#allocation82_spill] sm:$0xff] }
 0xc8a   :  { %17946 = vmatpush1.bf16.msra.mxu0 %v23388_v16  ;;  %18138 = vmatpush1.bf16.msra.mxu1 %v23389_v59  ;;  %v23419_v16 = vld [vmem:[#allocation40_spill] sm:$0xff]  ;;  %v23420_v59 = vld [vmem:[#allocation83_spill] sm:$0xff] }
 0xc8b   :  { %17948 = vmatprep.subr.bf16.mxu0 %v23390_v52  ;;  %18140 = vmatprep.subr.bf16.mxu1 %v23391_v55  ;;  %v23421_v52 = vld [vmem:[#allocation42_spill] sm:$0xff]  ;;  %v23422_v55 = vld [vmem:[#allocation85_spill] sm:$0xff] }
 0xc8e   :  { %17950 = vmatpush1.bf16.msra.mxu0 %v23392_v26  ;;  %18142 = vmatpush1.bf16.msra.mxu1 %v23393_v61  ;;  %v23423_v26 = vld [vmem:[#allocation44_spill] sm:$0xff]  ;;  %v23424_v61 = vld [vmem:[#allocation87_spill] sm:$0xff] }
 0xc8f   :  { %17952 = vmatprep.subr.bf16.mxu0 %v23394_v30  ;;  %18144 = vmatprep.subr.bf16.mxu1 %v23395_v2  ;;  %v23425_v30 = vld [vmem:[#allocation46_spill] sm:$0xff]  ;;  %v23426_v2 = vld [vmem:[#allocation88_spill] sm:$0xff] }
 0xc92   :  { %17954 = vmatpush1.bf16.msra.mxu0 %v23396_v43  ;;  %18146 = vmatpush1.bf16.msra.mxu1 %v23397_v31  ;;  %v23427_v43 = vld [vmem:[#allocation50_spill] sm:$0xff]  ;;  %v23428_v31 = vld [vmem:[#allocation89_spill] sm:$0xff] }
 0xc93   :  { %17956 = vmatprep.subr.bf16.mxu0 %v22828_v63  ;;  %18148 = vmatprep.subr.bf16.mxu1 %v22761_v27 }
 0xc95   :  { %12889 = vmatmul.mubr.f32.vlgmr.msra.gmra.mrb[14].mxu0 %v21655_v47  ;;  %13744 = vmatmul.mubr.f32.vlgmr.msra.gmra.mrb[16].mxu1 %v21655_v47  ;;  %v23398_v47 = vld [vmem:[#allocation86_spill] sm:$0xff] }
 0xc96   :  { %17958 = vmatpush1.bf16.msra.mxu0 %v22829_v34  ;;  %18150 = vmatpush1.bf16.msra.mxu1 %v19540_v57 }
 0xc97   :  { %17960 = vmatprep.subr.bf16.mxu0 %v22830_v24  ;;  %18152 = vmatprep.subr.bf16.mxu1 %v19542_v40 }
 0xc98   :  { %12991 = vmatprep.mubr.f32.mxu0 %v22559_v29  ;;  %13846 = vmatprep.mubr.f32.mxu1 %v22559_v29 }
 0xc9a   :  { %17962 = vmatpush1.bf16.msra.mxu0 %v22831_v28  ;;  %18154 = vmatpush1.bf16.msra.mxu1 %v19544_v19 }
 0xc9b   :  { %17964 = vmatprep.subr.bf16.mxu0 %v22832_v39  ;;  %18156 = vmatprep.subr.bf16.mxu1 %v19548_v32 }
 0xc9e   :  { %17966 = vmatpush1.bf16.msra.mxu0 %v22833_v7  ;;  %18158 = vmatpush1.bf16.msra.mxu1 %v19550_v15 }
 0xc9f   :  { %17968 = vmatprep.subr.bf16.mxu0 %v22834_v25  ;;  %18160 = vmatprep.subr.bf16.mxu1 %v19552_v8 }
 0xca2   :  { %17970 = vmatpush1.bf16.msra.mxu0 %v22835_v45  ;;  %18162 = vmatpush1.bf16.msra.mxu1 %v19557_v33 }
 0xca3   :  { %17972 = vmatprep.subr.bf16.mxu0 %v22836_v51  ;;  %18164 = vmatprep.subr.bf16.mxu1 %v22762_v35 }
 0xca6   :  { %17974 = vmatpush1.bf16.msra.mxu0 %v22837_v36  ;;  %18166 = vmatpush1.bf16.msra.mxu1 %v22763_v49 }
 0xca7   :  { %17976 = vmatprep.subr.bf16.mxu0 %v22838_v3  ;;  %18168 = vmatprep.subr.bf16.mxu1 %v22764_v4 }
 0xcaa   :  { %17978 = vmatpush1.bf16.msra.mxu0 %v22839_v42  ;;  %18170 = vmatpush1.bf16.msra.mxu1 %v22765_v58 }
 0xcab   :  { %17980 = vmatprep.subr.bf16.mxu0 %v23118_v44  ;;  %18172 = vmatprep.subr.bf16.mxu1 %v23398_v47 }
 0xcae   :  { %17982 = vmatpush1.bf16.msra.mxu0 %v23399_v11  ;;  %18174 = vmatpush1.bf16.msra.mxu1 %v23400_v53 }
 0xcaf   :  { %17984 = vmatprep.subr.bf16.mxu0 %v23401_v9  ;;  %18176 = vmatprep.subr.bf16.mxu1 %v23402_v23 }
 0xcb2   :  { %17986 = vmatpush1.bf16.msra.mxu0 %v23403_v62  ;;  %18178 = vmatpush1.bf16.msra.mxu1 %v23404_v1 }
 0xcb3   :  { %17988 = vmatprep.subr.bf16.mxu0 %v23405_v50  ;;  %18180 = vmatprep.subr.bf16.mxu1 %v23406_v38  ;;  %v23429_v50 = vld [vmem:[#allocation52_spill] sm:$0xff] }
 0xcb4   :  { %v23430_v38 = vld [vmem:[#allocation92_spill] sm:$0xff] }
 0xcb5   :  { %12995 = vmatmul.mubr.f32.vlgmr.msra.gmra.mrb[14].mxu0 %v21658_v6  ;;  %13850 = vmatmul.mubr.f32.vlgmr.msra.gmra.mrb[16].mxu1 %v21658_v6  ;;  %v23415_v6 = vld [vmem:[#allocation35_spill] sm:$0xff] }
 0xcb6   :  { %17990 = vmatpush1.bf16.msra.mxu0 %v23407_v12  ;;  %18182 = vmatpush1.bf16.msra.mxu1 %v23408_v13  ;;  %v23431_v12 = vld [vmem:[#allocation54_spill] sm:$0xff]  ;;  %v23432_v13 = vld [vmem:[#allocation93_spill] sm:$0xff] }
 0xcb7   :  { %17992 = vmatprep.subr.bf16.mxu0 %v23409_v48  ;;  %18184 = vmatprep.subr.bf16.mxu1 %v23410_v10  ;;  %v23433_v48 = vld [vmem:[#allocation56_spill] sm:$0xff]  ;;  %v23434_v10 = vld [vmem:[#allocation95_spill] sm:$0xff] }
 0xcb8   :  { %13161 = vmatprep.mubr.f32.mxu0 %v22559_v29  ;;  %14016 = vmatprep.mubr.f32.mxu1 %v22559_v29 }
 0xcba   :  { %17994 = vmatpush1.bf16.msra.mxu0 %v23411_v17  ;;  %18186 = vmatpush1.bf16.msra.mxu1 %v23412_v56  ;;  %v23435_v17 = vld [vmem:[#allocation58_spill] sm:$0xff]  ;;  %v23436_v56 = vld [vmem:[#allocation97_spill] sm:$0xff] }
 0xcbb   :  { %17996 = vmatprep.subr.bf16.mxu0 %v23413_v60  ;;  %18188 = vmatprep.subr.bf16.mxu1 %v23414_v0  ;;  %v14169_v60 = vld [vmem:[#allocation4 + $0x68] sm:$0xff] }
 0xcbe   :  { %17998 = vmatpush1.bf16.msra.mxu0 %v23415_v6  ;;  %18190 = vmatpush1.bf16.msra.mxu1 %v23416_v18 }
 0xcbf   :  { %18000 = vmatprep.subr.bf16.mxu0 %v23417_v21  ;;  %18192 = vmatprep.subr.bf16.mxu1 %v23418_v5  ;;  %v14170_v5 = vld [vmem:[#allocation4 + $0x70] sm:$0xff] }
 0xcc2   :  { %18002 = vmatpush1.bf16.msra.mxu0 %v23419_v16  ;;  %18194 = vmatpush1.bf16.msra.mxu1 %v23420_v59 }
 0xcc3   :  { %18004 = vmatprep.subr.bf16.mxu0 %v23421_v52  ;;  %18196 = vmatprep.subr.bf16.mxu1 %v23422_v55  ;;  %v14219_v52 = vand.u32 4294901760, %v14169_v60  ;;  %v14171_v55 = vld [vmem:[#allocation4 + $0x78] sm:$0xff] }
 0xcc6   :  { %18006 = vmatpush1.bf16.msra.mxu0 %v23423_v26  ;;  %18198 = vmatpush1.bf16.msra.mxu1 %v23424_v61  ;;  %v14222_v26 = vand.u32 4294901760, %v14170_v5 }
 0xcc7   :  { %18008 = vmatprep.subr.bf16.mxu0 %v23425_v30  ;;  %18200 = vmatprep.subr.bf16.mxu1 %v23426_v2 }
 0xcca   :  { %18010 = vmatpush1.bf16.msra.mxu0 %v23427_v43  ;;  %18202 = vmatpush1.bf16.msra.mxu1 %v23428_v31 }
 0xccb   :  { %18012 = vmatprep.subr.bf16.mxu0 %v23429_v50  ;;  %18204 = vmatprep.subr.bf16.mxu1 %v23430_v38  ;;  %v21885_v38 = vsub.f32 %v14169_v60, %v14219_v52 }
 0xcce   :  { %18014 = vmatpush1.bf16.msra.mxu0 %v23431_v12  ;;  %18206 = vmatpush1.bf16.msra.mxu1 %v23432_v13  ;;  %v14225_v12 = vand.u32 4294901760, %v14171_v55  ;;  %v21887_v13 = vsub.f32 %v14170_v5, %v14222_v26 }
 0xccf   :  { %18016 = vmatprep.subr.bf16.mxu0 %v23433_v48  ;;  %18208 = vmatprep.subr.bf16.mxu1 %v23434_v10 }
 0xcd0   :  { %v21895_v10 = vsub.f32 %v14171_v55, %v14225_v12 }
 0xcd2   :  { %18018 = vmatpush1.bf16.msra.mxu0 %v23435_v17  ;;  %18210 = vmatpush1.bf16.msra.mxu1 %v23436_v56  ;;  %v21902_v56 = vpack.c.bf16 %v14225_v12, %v14222_v26 }
 0xcd3   :  { %18020 = vmatprep.subr.bf16.mxu0 %v22828_v63  ;;  %18212 = vmatprep.subr.bf16.mxu1 %v22761_v27  ;;  %v14161_v63 = vld [vmem:[#allocation4 + $0x28] sm:$0xff] }
 0xcd5   :  { %13163 = vmatmul.mubr.f32.vlgmr.msra.gmra.mrb[14].mxu0 %v21652_v20  ;;  %14018 = vmatmul.mubr.f32.vlgmr.msra.gmra.mrb[16].mxu1 %v21652_v20 }
 0xcd6   :  { %18022 = vmatpush1.bf16.msra.mxu0 %v22829_v34  ;;  %18214 = vmatpush1.bf16.msra.mxu1 %v19540_v57  ;;  %v14195_v34 = vand.u32 4294901760, %v14161_v63 }
 0xcd7   :  { %18024 = vmatprep.subr.bf16.mxu0 %v22830_v24  ;;  %18216 = vmatprep.subr.bf16.mxu1 %v19542_v40  ;;  %v14156_v40 = vld [vmem:[#allocation4] sm:$0xff] }
 0xcd8   :  { %13265 = vmatprep.mubr.f32.mxu0 %v22559_v29  ;;  %14120 = vmatprep.mubr.f32.mxu1 %v22559_v29  ;;  %v14180_v57 = vand.u32 4294901760, %v14156_v40 }
 0xcda   :  { %18026 = vmatpush1.bf16.msra.mxu0 %v22831_v28  ;;  %18218 = vmatpush1.bf16.msra.mxu1 %v19544_v19  ;;  %v18754_v19 = vmov 0.0|0.0   ;;  %v14163_v28 = vld [vmem:[#allocation4 + $0x38] sm:$0xff] }
 0xcdb   :  { %18028 = vmatprep.subr.bf16.mxu0 %v22832_v39  ;;  %18220 = vmatprep.subr.bf16.mxu1 %v19548_v32  ;;  %v14157_v32 = vld [vmem:[#allocation4 + $0x8] sm:$0xff]  ;;  %v14160_v39 = vld [vmem:[#allocation4 + $0x20] sm:$0xff] }
 0xcde   :  { %18030 = vmatpush1.bf16.msra.mxu0 %v22833_v7  ;;  %18222 = vmatpush1.bf16.msra.mxu1 %v19550_v15  ;;  %v14158_v15 = vld [vmem:[#allocation4 + $0x10] sm:$0xff] }
 0xcdf   :  { %18032 = vmatprep.subr.bf16.mxu0 %v22834_v25  ;;  %18224 = vmatprep.subr.bf16.mxu1 %v19552_v8  ;;  %v14162_v25 = vld [vmem:[#allocation4 + $0x30] sm:$0xff] }
 0xce0   :  { %v14198_v27 = vand.u32 4294901760, %v14162_v25 }
 0xce2   :  { %18034 = vmatpush1.bf16.msra.mxu0 %v22835_v45  ;;  %18226 = vmatpush1.bf16.msra.mxu1 %v19557_v33  ;;  %v14183_v33 = vand.u32 4294901760, %v14157_v32 }
 0xce3   :  { %18036 = vmatprep.subr.bf16.mxu0 %v22836_v51  ;;  %18228 = vmatprep.subr.bf16.mxu1 %v22762_v35  ;;  %v14201_v35 = vand.u32 4294901760, %v14163_v28 }
 0xce4   :  { %v21840_v8 = vpack.c.bf16 %v14183_v33, %v14180_v57 }
 0xce5   :  { %v21869_v0 = vsub.f32 %v14163_v28, %v14201_v35 }
 0xce6   :  { %18038 = vmatpush1.bf16.msra.mxu0 %v22837_v36  ;;  %18230 = vmatpush1.bf16.msra.mxu1 %v22763_v49  ;;  %v14186_v36 = vand.u32 4294901760, %v14158_v15  ;;  %v21852_v49 = vsub.f32 %v14156_v40, %v14180_v57 }
 0xce7   :  { %18040 = vmatprep.subr.bf16.mxu0 %v22838_v3  ;;  %18232 = vmatprep.subr.bf16.mxu1 %v22764_v4  ;;  %v14192_v3 = vand.u32 4294901760, %v14160_v39  ;;  %v21854_v4 = vsub.f32 %v14157_v32, %v14183_v33  ;;  %v22501_v60 = vand.u32 4294901760, %v21869_v0 }
 0xce8   :  { %v22508_v40 = vand.u32 4294901760, %v21852_v49 }
 0xce9   :  { %v21849_v24 = vpack.c.bf16 %v14195_v34, %v14192_v3  ;;  %v22507_v32 = vand.u32 4294901760, %v21854_v4 }
 0xcea   :  { %18042 = vmatpush1.bf16.msra.mxu0 %v22839_v42  ;;  %18234 = vmatpush1.bf16.msra.mxu1 %v22765_v58  ;;  %v14159_v42 = vld [vmem:[#allocation4 + $0x18] sm:$0xff]  ;;  %v21856_v58 = vsub.f32 %v14158_v15, %v14186_v36  ;;  %v14274_v57 = vsub.f32 %v21852_v49, %v22508_v40 }
 0xceb   :  { %18044 = vmatprep.subr.bf16.mxu0 %v23118_v44  ;;  %18236 = vmatprep.subr.bf16.mxu1 %v23398_v47  ;;  %v14189_v51 = vand.u32 4294901760, %v14159_v42  ;;  %v14164_v44 = vld [vmem:[#allocation4 + $0x40] sm:$0xff]  ;;  %v14166_v47 = vld [vmem:[#allocation4 + $0x50] sm:$0xff]  ;;  %v14281_v33 = vsub.f32 %v21854_v4, %v22507_v32 }
 0xcec   :  { %v14204_v6 = vand.u32 4294901760, %v14164_v44  ;;  %v14210_v21 = vand.u32 4294901760, %v14166_v47  ;;  %v14275_v15 = vand.u32 4294901760, %v14274_v57 }
 0xced   :  { %v21845_v45 = vpack.c.bf16 %v14189_v51, %v14186_v36  ;;  %v21858_v7 = vsub.f32 %v14159_v42, %v14189_v51  ;;  %v14282_v42 = vand.u32 4294901760, %v14281_v33  ;;  %v22506_v36 = vand.u32 4294901760, %v21856_v58 }
 0xcee   :  { %18046 = vmatpush1.bf16.msra.mxu0 %v23399_v11  ;;  %18238 = vmatpush1.bf16.msra.mxu1 %v23400_v53  ;;  %v21861_v11 = vsub.f32 %v14160_v39, %v14192_v3  ;;  %v21863_v53 = vsub.f32 %v14161_v63, %v14195_v34  ;;  %v21875_v30 = vsub.f32 %v14164_v44, %v14204_v6 }
 0xcef   :  { %18048 = vmatprep.subr.bf16.mxu0 %v23401_v9  ;;  %18240 = vmatprep.subr.bf16.mxu1 %v23402_v23  ;;  %v21865_v9 = vpack.c.bf16 %v14201_v35, %v14198_v27  ;;  %v21867_v23 = vsub.f32 %v14162_v25, %v14198_v27  ;;  %v21879_v43 = vsub.f32 %v14166_v47, %v14210_v21  ;;  %v22505_v51 = vand.u32 4294901760, %v21858_v7 }
 0xcf0   :  { %v21917_v39 = vpack.c.bf16 %v14282_v42, %v14275_v15  ;;  %v14288_v63 = vsub.f32 %v21856_v58, %v22506_v36  ;;  %v22504_v28 = vand.u32 4294901760, %v21861_v11  ;;  %v22503_v27 = vand.u32 4294901760, %v21863_v53 }
 0xcf1   :  { %v14295_v3 = vsub.f32 %v21858_v7, %v22505_v51  ;;  %v22498_v15 = vand.u32 4294901760, %v21879_v43 }
 0xcf2   :  { %18050 = vmatpush1.bf16.msra.mxu0 %v23403_v62  ;;  %18242 = vmatpush1.bf16.msra.mxu1 %v23404_v1  ;;  %v14167_v62 = vld [vmem:[#allocation4 + $0x58] sm:$0xff]  ;;  %v14168_v1 = vld [vmem:[#allocation4 + $0x60] sm:$0xff]  ;;  %v14289_v34 = vand.u32 4294901760, %v14288_v63  ;;  %v14302_v44 = vsub.f32 %v21861_v11, %v22504_v28 }
 0xcf3   :  { %18243 = vmatprep.subr.bf16.mxu0 %v18754_v19  ;;  %v14213_v16 = vand.u32 4294901760, %v14167_v62  ;;  %v14216_v59 = vand.u32 4294901760, %v14168_v1  ;;  %v14296_v25 = vand.u32 4294901760, %v14295_v3  ;;  %v14344_v3 = vsub.f32 %v21879_v43, %v22498_v15  ;;  %v23439_v15 = vld [vmem:[#allocation75_spill] sm:$0xff] }
 0xcf4   :  { %v14303_v47 = vand.u32 4294901760, %v14302_v44 }
 0xcf5   :  { %13267 = vmatmul.mubr.f32.vlgmr.msra.gmra.mrb[14].mxu0 %v21652_v20  ;;  %14122 = vmatmul.mubr.f32.vlgmr.msra.gmra.mrb[16].mxu1 %v21652_v20  ;;  %v14165_v20 = vld [vmem:[#allocation4 + $0x48] sm:$0xff]  ;;  %v21881_v31 = vsub.f32 %v14167_v62, %v14213_v16  ;;  %v21883_v50 = vsub.f32 %v14168_v1, %v14216_v59  ;;  %v21890_v48 = vpack.c.bf16 %v14213_v16, %v14210_v21  ;;  %v22502_v1 = vand.u32 4294901760, %v21867_v23 }
 0xcf6   :  { %18245 = vmatpush3.bf16.msra.mxu0 %v21840_v8  ;;  %v14207_v18 = vand.u32 4294901760, %v14165_v20  ;;  %14993 = vmatprep.mubr.msk.f32.mxu0 %vm18755_vm0, %v22559_v29  ;;  %v21898_v17 = vpack.c.bf16 %v14219_v52, %v14216_v59  ;;  %v21927_v35 = vpack.c.bf16 %v14296_v25, %v14289_v34  ;;  %v14323_v21 = vsub.f32 %v21869_v0, %v22501_v60 }
 0xcf7   :  { %18246 = vmatprep.subr.bf16.mxu0 %v18754_v19  ;;  %v22500_v59 = vand.u32 4294901760, %v21875_v30  ;;  %v22497_v42 = vand.u32 4294901760, %v21881_v31  ;;  %v14345_v25 = vand.u32 4294901760, %v14344_v3 }
 0xcf8   :  { %v21873_v61 = vpack.c.bf16 %v14207_v18, %v14204_v6  ;;  %v21877_v2 = vsub.f32 %v14165_v20, %v14207_v18  ;;  %v14309_v20 = vsub.f32 %v21863_v53, %v22503_v27  ;;  %v14316_v18 = vsub.f32 %v21867_v23, %v22502_v1 }
 0xcf9   :  { %v14324_v16 = vand.u32 4294901760, %v14323_v21  ;;  %v14330_v26 = vsub.f32 %v21875_v30, %v22500_v59  ;;  %v14351_v34 = vsub.f32 %v21881_v31, %v22497_v42 }
 0xcfa   :  { %18248 = vmatpush3.bf16.msra.mxu0 %v21845_v45  ;;  %v14310_v62 = vand.u32 4294901760, %v14309_v20  ;;  %v14317_v5 = vand.u32 4294901760, %v14316_v18  ;;  %v22499_v52 = vand.u32 4294901760, %v21877_v2  ;;  %v22496_v20 = vand.u32 4294901760, %v21883_v50 }
 0xcfb   :  { %18249 = vmatprep.subr.bf16.mxu0 %v18754_v19  ;;  %v14331_v57 = vand.u32 4294901760, %v14330_v26  ;;  %v14352_v44 = vand.u32 4294901760, %v14351_v34  ;;  %v22493_v26 = vand.u32 4294901760, %v21887_v13 }
 0xcfc   :  { %v21937_v6 = vpack.c.bf16 %v14310_v62, %v14303_v47  ;;  %v21947_v55 = vpack.c.bf16 %v14324_v16, %v14317_v5  ;;  %v14337_v12 = vsub.f32 %v21877_v2, %v22499_v52  ;;  %v22495_v47 = vand.u32 4294901760, %v21885_v38 }
 0xcfd   :  { %v21967_v62 = vpack.c.bf16 %v14352_v44, %v14345_v25  ;;  %v14358_v18 = vsub.f32 %v21883_v50, %v22496_v20  ;;  %v23438_v20 = vld [vmem:[#allocation72_spill] sm:$0xff] }
 0xcfe   :  { %18251 = vmatpush3.bf16.msra.mxu0 %v21849_v24  ;;  %v14338_v33 = vand.u32 4294901760, %v14337_v12  ;;  %v14365_v21 = vsub.f32 %v21885_v38, %v22495_v47  ;;  %v22494_v12 = vand.u32 4294901760, %v21895_v10 }
 0xcff   :  { %18252 = vmatprep.subr.bf16.mxu0 %v18754_v19  ;;  %v14359_v5 = vand.u32 4294901760, %v14358_v18  ;;  %v18292_v18 = vpack.c.bf16 %v21854_v4, %v21852_v49 }
 0xd00   :  { %v21957_v63 = vpack.c.bf16 %v14338_v33, %v14331_v57  ;;  %v14366_v16 = vand.u32 4294901760, %v14365_v21  ;;  %v14372_v33 = vsub.f32 %v21887_v13, %v22493_v26  ;;  %v14379_v3 = vsub.f32 %v21895_v10, %v22494_v12  ;;  %v23437_v12 = vld [vmem:[#allocation73_spill] sm:$0xff] }
 0xd01   :  { %v18295_v21 = vpack.c.bf16 %v21858_v7, %v21856_v58  ;;  %v18304_v26 = vpack.c.bf16 %v21877_v2, %v21875_v30 }
 0xd02   :  { %18254 = vmatpush3.bf16.msra.mxu0 %v21865_v9  ;;  %v21977_v57 = vpack.c.bf16 %v14366_v16, %v14359_v5  ;;  %v14373_v34 = vand.u32 4294901760, %v14372_v33  ;;  %v14380_v25 = vand.u32 4294901760, %v14379_v3  ;;  %v18298_v5 = vpack.c.bf16 %v21863_v53, %v21861_v11 }
 0xd03   :  { %18255 = vmatprep.subr.bf16.mxu0 %v18754_v19  ;;  %v18301_v16 = vpack.c.bf16 %v21869_v0, %v21867_v23 }
 0xd04   :  { %v21985_v44 = vpack.c.bf16 %v14380_v25, %v14373_v34  ;;  %v12408_v25 = vpop.permute.xlu1 %12407 }
 0xd05   :  { %v12410_v47 = vmul.f32 %v12408_v25, %v23437_v12  ;;  %v12411_v42 = vmul.f32 %v12408_v25, %v23438_v20  ;;  %v12412_v32 = vmul.f32 %v12408_v25, %v22882_v22  ;;  %v12413_v34 = vmul.f32 %v12408_v25, %v22883_v41 }
 0xd06   :  { %18257 = vmatpush3.bf16.msra.mxu0 %v21873_v61 }
 0xd07   :  { %18258 = vmatprep.subr.bf16.mxu0 %v18754_v19  ;;  %v12414_v52 = vadd.f32 %v12410_v47, %v23439_v15  ;;  %v12415_v1 = vadd.f32 %v12411_v42, %v23069_v54  ;;  %v12416_v12 = vadd.f32 %v12412_v32, %v20214_v14  ;;  %v12417_v15 = vadd.f32 %v12413_v34, %v20217_v37 }
 0xd0a   :  { %18260 = vmatpush3.bf16.msra.mxu0 %v21890_v48 }
 0xd0b   :  { %18261 = vmatprep.subr.bf16.mxu0 %v18754_v19 }
 0xd0e   :  { %18263 = vmatpush3.bf16.msra.mxu0 %v21898_v17 }
 0xd0f   :  { %18264 = vmatprep.subr.bf16.mxu0 %v18754_v19 }
 0xd12   :  { %18266 = vmatpush3.bf16.msra.mxu0 %v21902_v56 }
 0xd13   :  { %18267 = vmatprep.subr.bf16.mxu0 %v18754_v19 }
 0xdc8   :  { %v13268_v59 = vpop.f32.mrb[14].mxu0  ;;  %v14123_v60 = vpop.f32.mrb[16].mxu1 }
 0xdc9   :  { %v14128_v27 = vadd.f32 %v13268_v59, %v12414_v52  ;;  %v13270_v28 = vpop.f32.mrb[15].mxu0  ;;  %v14125_v51 = vpop.f32.mrb[17].mxu1  ;;  %v14130_v20 = vadd.f32 %v14123_v60, %v12416_v12 }
 0xdca   :  { %v14129_v36 = vadd.f32 %v13270_v28, %v12415_v1  ;;  %v14131_v47 = vadd.f32 %v14125_v51, %v12417_v15 }
 0xdcb   :  { %v14855_v40 = vmul.f32 -1.442695, %v14128_v27  ;;  %v14857_v33 = vmul.f32 -1.442695, %v14130_v20 }
 0xdcc   :  { %v14856_v3 = vmul.f32 -1.442695, %v14129_v36 }
 0xdcd   :  { %18682 = vpow2.f32 %v14855_v40 }
 0xdce   :  { %18684 = vpow2.f32 %v14856_v3 }
 0xdcf   :  { %18686 = vtanh.f32 %v14131_v47 }
 0xdd0   :  { %18688 = vpow2.f32 %v14857_v33 }
 0xdd7   :  { %v18683_v54 = vpop.eup %18682 }
 0xdd8   :  { %v14141_v59 = vadd.f32 1.0, %v18683_v54  ;;  %v18685_v52 = vpop.eup %18684 }
 0xdd9   :  { %v14142_v22 = vadd.f32 1.0, %v18685_v52  ;;  %v18687_v36 = vpop.eup %18686 }
 0xdda   :  { %18690 = vrcp.f32 %v14141_v59  ;;  %v18689_v40 = vpop.eup %18688 }
 0xddb   :  { %18692 = vrcp.f32 %v14142_v22  ;;  %v14143_v14 = vadd.f32 1.0, %v18689_v40 }
 0xddd   :  { %18694 = vrcp.f32 %v14143_v14 }
 0xde4   :  { %v18691_v28 = vpop.eup %18690 }
 0xde5   :  { %v14152_v41 = vmul.f32 %v18691_v28, %v18687_v36  ;;  %v18693_v27 = vpop.eup %18692 }
 0xde6   :  { %v14151_v32 = vmul.f32 %v18693_v27, %v21649_v46  ;;  %v23440_v46 = vpack.c.bf16 %v21881_v31, %v21879_v43 }
 0xde7   :  { %v18695_v37 = vpop.eup %18694 }
 0xde8   :  { %v14153_v1 = vadd.f32 %v14152_v41, %v14151_v32 }
 0xdea   :  { %18696 = vtanh.f32 %v14153_v1 }
 0xdf4   :  { %v18697_v51 = vpop.eup %18696 }
 0xdf5   :  { %v14155_v60 = vmul.f32 %v18697_v51, %v18695_v37 }
 0xdf7   :  { %v22012_v42 = vand.u32 4294901760, %v14155_v60 }
 0xdf9   :  { %v14261_v33 = vsub.f32 %v14155_v60, %v22012_v42 }
 0xdfb   :  { %v14262_v3 = vand.u32 4294901760, %v14261_v33 }
 0xdfd   :  { %v14263_v34 = vsub.f32 %v14261_v33, %v14262_v3 }
 0xdff   :  { %v14264_v25 = vand.u32 4294901760, %v14263_v34 }
 0xe01   :  { %14994 = vmatmul.mubr.f32.vlgmr.msra.gmra.mrb[16].mxu0 %v14264_v25 }
 0xe02   :  { %18269 = vmatpush3.bf16.msra.mxu0 %v21917_v39  ;;  %15028 = vmatprep.mubr.msk.f32.mxu0 %vm18755_vm0, %v22559_v29  ;;  %v23441_v39 = vpack.c.bf16 %v21885_v38, %v21883_v50 }
 0xe03   :  { %18270 = vmatprep.subr.bf16.mxu0 %v18754_v19 }
 0xe06   :  { %18272 = vmatpush3.bf16.msra.mxu0 %v21927_v35  ;;  %v23442_v35 = vpack.c.bf16 %v21895_v10, %v21887_v13 }
 0xe07   :  { %18273 = vmatprep.subr.bf16.mxu0 %v18754_v19 }
 0xe0a   :  { %18275 = vmatpush3.bf16.msra.mxu0 %v21937_v6  ;;  %v23443_v6 = vand.u32 4294901760, %v21852_v49  ;;  %v23447_v49 = vand.u32 4294901760, %v21861_v11  ;;  %v23453_v11 = vand.u32 4294901760, %v21879_v43 }
 0xe0b   :  { %18276 = vmatprep.subr.bf16.mxu0 %v18754_v19 }
 0xe0e   :  { %18278 = vmatpush3.bf16.msra.mxu0 %v21947_v55  ;;  %v23444_v55 = vand.u32 4294901760, %v21854_v4  ;;  %v23448_v4 = vand.u32 4294901760, %v21863_v53  ;;  %v23454_v53 = vand.u32 4294901760, %v21881_v31 }
 0xe0f   :  { %18279 = vmatprep.subr.bf16.mxu0 %v18754_v19 }
 0xe10   :  { %v18355_v12 = vpack.c.bf16 %v23454_v53, %v23453_v11 }
 0xe12   :  { %18281 = vmatpush3.bf16.msra.mxu0 %v21957_v63  ;;  %v18340_v63 = vpack.c.bf16 %v23444_v55, %v23443_v6 }
 0xe13   :  { %18282 = vmatprep.subr.bf16.mxu0 %v18754_v19 }
 0xe16   :  { %18284 = vmatpush3.bf16.msra.mxu0 %v21967_v62  ;;  %v23445_v62 = vand.u32 4294901760, %v21856_v58  ;;  %v23450_v58 = vand.u32 4294901760, %v21869_v0  ;;  %v23456_v0 = vand.u32 4294901760, %v21885_v38 }
 0xe17   :  { %18285 = vmatprep.subr.bf16.mxu0 %v18754_v19 }
 0xe1a   :  { %18287 = vmatpush3.bf16.msra.mxu0 %v21977_v57 }
 0xe1b   :  { %18288 = vmatprep.subr.bf16.mxu0 %v18754_v19 }
 0xe1e   :  { %18290 = vmatpush3.bf16.msra.mxu0 %v21985_v44  ;;  %v18346_v44 = vpack.c.bf16 %v23448_v4, %v23447_v49 }
 0xe1f   :  { %18291 = vmatprep.subr.bf16.mxu0 %v18754_v19 }
 0xe21   :  { %15029 = vmatmul.mubr.f32.vlgmr.msra.gmra.mrb[16].mxu0 %v22012_v42 }
 0xe22   :  { %18293 = vmatpush3.bf16.msra.mxu0 %v18292_v18  ;;  %15063 = vmatprep.mubr.msk.f32.mxu0 %vm18755_vm0, %v22559_v29  ;;  %v23449_v18 = vand.u32 4294901760, %v21867_v23  ;;  %v23455_v23 = vand.u32 4294901760, %v21883_v50 }
 0xe23   :  { %18294 = vmatprep.subr.bf16.mxu0 %v18754_v19 }
 0xe24   :  { %v18358_v20 = vpack.c.bf16 %v23456_v0, %v23455_v23 }
 0xe26   :  { %18296 = vmatpush3.bf16.msra.mxu0 %v18295_v21  ;;  %v23451_v21 = vand.u32 4294901760, %v21875_v30  ;;  %v23457_v30 = vand.u32 4294901760, %v21887_v13 }
 0xe27   :  { %18297 = vmatprep.subr.bf16.mxu0 %v18754_v19 }
 0xe2a   :  { %18299 = vmatpush3.bf16.msra.mxu0 %v18298_v5  ;;  %v23452_v5 = vand.u32 4294901760, %v21877_v2  ;;  %v23458_v2 = vand.u32 4294901760, %v21895_v10 }
 0xe2b   :  { %18300 = vmatprep.subr.bf16.mxu0 %v18754_v19 }
 0xe2c   :  { %v18361_v15 = vpack.c.bf16 %v23458_v2, %v23457_v30 }
 0xe2e   :  { %18302 = vmatpush3.bf16.msra.mxu0 %v18301_v16  ;;  %v18352_v16 = vpack.c.bf16 %v23452_v5, %v23451_v21 }
 0xe2f   :  { %18303 = vmatprep.subr.bf16.mxu0 %v18754_v19 }
 0xe32   :  { %18305 = vmatpush3.bf16.msra.mxu0 %v18304_v26  ;;  %v23446_v26 = vand.u32 4294901760, %v21858_v7  ;;  %v18349_v7 = vpack.c.bf16 %v23450_v58, %v23449_v18 }
 0xe33   :  { %18306 = vmatprep.subr.bf16.mxu0 %v18754_v19 }
 0xe34   :  { %v18343_v57 = vpack.c.bf16 %v23446_v26, %v23445_v62 }
 0xe36   :  { %18308 = vmatpush3.bf16.msra.mxu0 %v23440_v46 }
 0xe37   :  { %18309 = vmatprep.subr.bf16.mxu0 %v18754_v19 }
 0xe3a   :  { %18311 = vmatpush3.bf16.msra.mxu0 %v23441_v39 }
 0xe3b   :  { %18312 = vmatprep.subr.bf16.mxu0 %v18754_v19 }
 0xe3e   :  { %18314 = vmatpush3.bf16.msra.mxu0 %v23442_v35 }
 0xe3f   :  { %18315 = vmatprep.subr.bf16.mxu0 %v18754_v19 }
 0xe41   :  { %15064 = vmatmul.mubr.f32.vlgmr.msra.gmra.mrb[16].mxu0 %v14261_v33 }
 0xe42   :  { %18317 = vmatpush3.bf16.msra.mxu0 %v21840_v8  ;;  %15098 = vmatprep.mubr.msk.f32.mxu0 %vm18755_vm0, %v22559_v29 }
 0xe43   :  { %18318 = vmatprep.subr.bf16.mxu0 %v18754_v19 }
 0xe46   :  { %18320 = vmatpush3.bf16.msra.mxu0 %v21845_v45 }
 0xe47   :  { %18321 = vmatprep.subr.bf16.mxu0 %v18754_v19 }
 0xe4a   :  { %18323 = vmatpush3.bf16.msra.mxu0 %v21849_v24 }
 0xe4b   :  { %18324 = vmatprep.subr.bf16.mxu0 %v18754_v19 }
 0xe4e   :  { %18326 = vmatpush3.bf16.msra.mxu0 %v21865_v9 }
 0xe4f   :  { %18327 = vmatprep.subr.bf16.mxu0 %v18754_v19 }
 0xe52   :  { %18329 = vmatpush3.bf16.msra.mxu0 %v21873_v61 }
 0xe53   :  { %18330 = vmatprep.subr.bf16.mxu0 %v18754_v19 }
 0xe56   :  { %18332 = vmatpush3.bf16.msra.mxu0 %v21890_v48 }
 0xe57   :  { %18333 = vmatprep.subr.bf16.mxu0 %v18754_v19 }
 0xe5a   :  { %18335 = vmatpush3.bf16.msra.mxu0 %v21898_v17 }
 0xe5b   :  { %18336 = vmatprep.subr.bf16.mxu0 %v18754_v19 }
 0xe5e   :  { %18338 = vmatpush3.bf16.msra.mxu0 %v21902_v56 }
 0xe5f   :  { %18339 = vmatprep.subr.bf16.mxu0 %v18754_v19 }
 0xe61   :  { %15099 = vmatmul.mubr.f32.vlgmr.msra.gmra.mrb[16].mxu0 %v14262_v3 }
 0xe62   :  { %18341 = vmatpush3.bf16.msra.mxu0 %v18340_v63  ;;  %15133 = vmatprep.mubr.msk.f32.mxu0 %vm18755_vm0, %v22559_v29 }
 0xe63   :  { %18342 = vmatprep.subr.bf16.mxu0 %v18754_v19 }
 0xe66   :  { %18344 = vmatpush3.bf16.msra.mxu0 %v18343_v57 }
 0xe67   :  { %18345 = vmatprep.subr.bf16.mxu0 %v18754_v19 }
 0xe6a   :  { %18347 = vmatpush3.bf16.msra.mxu0 %v18346_v44 }
 0xe6b   :  { %18348 = vmatprep.subr.bf16.mxu0 %v18754_v19 }
 0xe6e   :  { %18350 = vmatpush3.bf16.msra.mxu0 %v18349_v7 }
 0xe6f   :  { %18351 = vmatprep.subr.bf16.mxu0 %v18754_v19 }
 0xe72   :  { %18353 = vmatpush3.bf16.msra.mxu0 %v18352_v16 }
 0xe73   :  { %18354 = vmatprep.subr.bf16.mxu0 %v18754_v19 }
 0xe76   :  { %18356 = vmatpush3.bf16.msra.mxu0 %v18355_v12 }
 0xe77   :  { %18357 = vmatprep.subr.bf16.mxu0 %v18754_v19 }
 0xe7a   :  { %18359 = vmatpush3.bf16.msra.mxu0 %v18358_v20 }
 0xe7b   :  { %18360 = vmatprep.subr.bf16.mxu0 %v18754_v19 }
 0xe7e   :  { %18362 = vmatpush3.bf16.msra.mxu0 %v18361_v15 }
 0xe7f   :  { %18363 = vmatprep.subr.bf16.mxu0 %v18754_v19 }
 0xe81   :  { %15134 = vmatmul.mubr.f32.vlgmr.msra.gmra.mrb[16].mxu0 %v22012_v42 }
 0xe82   :  { %18365 = vmatpush3.bf16.msra.mxu0 %v21840_v8  ;;  %15168 = vmatprep.mubr.msk.f32.mxu0 %vm18755_vm0, %v22559_v29  ;;  %v14858_v29 = vld [vmem:[%s22158_s5] ss:$0 sm:$0xff] }
 0xe83   :  { %18366 = vmatprep.subr.bf16.mxu0 %v18754_v19 }
 0xe86   :  { %18368 = vmatpush3.bf16.msra.mxu0 %v21845_v45 }
 0xe87   :  { %18369 = vmatprep.subr.bf16.mxu0 %v18754_v19 }
 0xe8a   :  { %18371 = vmatpush3.bf16.msra.mxu0 %v21849_v24 }
 0xe8b   :  { %18372 = vmatprep.subr.bf16.mxu0 %v18754_v19 }
 0xe8e   :  { %18374 = vmatpush3.bf16.msra.mxu0 %v21865_v9 }
 0xe8f   :  { %18375 = vmatprep.subr.bf16.mxu0 %v18754_v19 }
 0xe92   :  { %18377 = vmatpush3.bf16.msra.mxu0 %v21873_v61 }
 0xe93   :  { %18378 = vmatprep.subr.bf16.mxu0 %v18754_v19 }
 0xe96   :  { %18380 = vmatpush3.bf16.msra.mxu0 %v21890_v48 }
 0xe97   :  { %18381 = vmatprep.subr.bf16.mxu0 %v18754_v19 }
 0xe9a   :  { %18383 = vmatpush3.bf16.msra.mxu0 %v21898_v17 }
 0xe9b   :  { %18384 = vmatprep.subr.bf16.mxu0 %v18754_v19 }
 0xe9e   :  { %18386 = vmatpush3.bf16.msra.mxu0 %v21902_v56 }
 0xea1   :  { %15169 = vmatmul.mubr.f32.vlgmr.msra.gmra.mrb[16].mxu0 %v22012_v42 }
 0xf74   :  { %v14816_v8 = vpop.f32.mrb[16].mxu0 }
 0xf75   :  { %v18389_v45 = vadd.f32 %v14858_v29, %v14816_v8  ;;  %v15170_v24 = vpop.f32.mrb[17].mxu0 }
 0xf77   :  { %14820 = vst [vmem:[%s22159_s6] sm:$0xff] %v18389_v45 }
 0xf78   :  { %14825 = vsyncpa [#allocation3], 1 }
 0xf79   :  { %14826 = vsyncpa [#allocation5], 1 }

</bundles_post_ra>
